<compile_context>
chip_gen: v7x
topology: tpu7x:2x2x1
jax: 0.10.0
libtpu: 0.0.40
codegen_flags: <defaults>
</compile_context>

<pallas_src>
import jax
import jax.numpy as jnp
import numpy as np
from jax.experimental import pallas as pl
from jax.experimental.pallas import tpu as pltpu


def _tnet_kernel(x_ref,
                 w1_ref, b1_ref,
                 w2_ref, b2_ref,
                 w3_ref, b3_ref,
                 w4_ref, b4_ref,
                 w5_ref, b5_ref,
                 w6_ref, b6_ref,
                 o_ref,
                 fmax_ref):
    """grid = (batch_tiles, point_tiles).

    x_ref   : (TB, Nt, d)     f32 point block
    wK_ref  : (inK, outK)     BN-folded bf16 weights
    bK_ref  : (1, outK)       f32 BN-folded biases (b6 also holds the identity)
    o_ref   : (1, TB, d*d)    f32 flattened transforms (written on last tile)
    fmax_ref: (TB, 1024)      f32 running max over point tiles (VMEM scratch)
    """
    ni = pl.program_id(1)
    bf16 = jnp.bfloat16
    f32 = jnp.float32

    @pl.when(ni == 0)
    def _init():
        fmax_ref[...] = jnp.full(fmax_ref.shape, -jnp.inf, dtype=fmax_ref.dtype)

    TB, Nt, d = x_ref.shape
    M = TB * Nt
    x = x_ref[...].reshape(M, d).astype(bf16)

    # block1: tiny-K matmul on the MXU (plenty of MXU slack; frees VPU/XLU).
    h = jnp.maximum(
        jnp.dot(x, w1_ref[...], preferred_element_type=f32) + b1_ref[...], 0.0)

    # block2: ReLU output emitted directly in bf16 (input dtype of block3).
    h = jnp.maximum(
        jnp.dot(h.astype(bf16), w2_ref[...], preferred_element_type=f32)
        + b2_ref[...], 0.0).astype(bf16)

    # block3: matmul only. Bias + ReLU are deferred until after the max-pool
    # (exact: per-channel bias commutes with max, ReLU is monotone).
    h3 = jnp.dot(h, w3_ref[...], preferred_element_type=f32)      # (M, 1024) f32

    # online global max-pool over the point axis.
    tile_max = jnp.max(h3.reshape(TB, Nt, -1), axis=1)            # (TB, 1024)
    fmax_ref[...] = jnp.maximum(fmax_ref[...], tile_max)

    # dense head (blocks 4-6) on the pooled features, last point tile only.
    @pl.when(ni == pl.num_programs(1) - 1)
    def _head():
        f = jnp.maximum(fmax_ref[...] + b3_ref[...], 0.0)          # deferred b3+ReLU
        g = jnp.maximum(
            jnp.dot(f.astype(bf16), w4_ref[...], preferred_element_type=f32)
            + b4_ref[...], 0.0)
        g = jnp.maximum(
            jnp.dot(g.astype(bf16), w5_ref[...], preferred_element_type=f32)
            + b5_ref[...], 0.0)
        out = (jnp.dot(g.astype(bf16), w6_ref[...], preferred_element_type=f32)
               + b6_ref[...])
        o_ref[...] = out[None].astype(o_ref.dtype)


def _device_kind():
    try:
        return jax.devices()[0].device_kind.lower()
    except Exception:
        return ""


def transformation_net_forward(x, params, batch_tile=None, point_tile=None):
    """x: (B, N, d) float32; params: BN-folded f32 params.  Returns (B, d, d)."""
    B, N, d = x.shape
    dd = d * d
    (w1, b1, w2, b2, w3, b3, w4, b4, w5, b5, w6, b6) = params

    # Fold the trailing identity-matrix add into the final bias.
    b6 = b6 + jnp.eye(d, dtype=jnp.float32).reshape(1, dd)
    # bf16 weights for all MXU layers (f32 accumulation inside the kernel).
    bf16 = jnp.bfloat16
    w1, w2, w3, w4, w5, w6 = (w.astype(bf16) for w in (w1, w2, w3, w4, w5, w6))

    kind = _device_kind()
    is_v7 = "v7" in kind
    is_v6 = "v6" in kind
    is_v5 = "v5" in kind

    # ---- batch tile ------------------------------------------------------
    if batch_tile is None:
        batch_tile = min(B, 8)
        if is_v7 and B >= 2:
            # guarantee >= 2 blocks on the "parallel" axis -> both TCs busy.
            batch_tile = min(batch_tile, -(-B // 2))
    TB = max(1, int(batch_tile))
    B_pad = -(-B // TB) * TB
    n_bt = B_pad // TB

    # ---- point tile, sized per generation's VMEM budget --------------------
    if point_tile is None:
        if is_v6:
            m_budget = 4096          # (M,1024) f32 intermediate ~16 MiB
        elif is_v5 or is_v7:
            m_budget = 2048          # ~8 MiB
        else:
            m_budget = 1024          # conservative for unknown generations
        point_tile = max(128, m_budget // TB)
    point_tile = max(1, min(int(point_tile), N))
    Nt = min(-(-point_tile // 8) * 8, -(-N // 8) * 8)   # sublane aligned
    N_pad = -(-N // Nt) * Nt
    n_nt = N_pad // Nt

    if (B_pad != B) or (N_pad != N):
        # edge-mode replication keeps the (deferred-bias) max-pool exact.
        x = jnp.pad(x, ((0, B_pad - B), (0, N_pad - N), (0, 0)), mode="edge")

    if is_v7:
        vmem_limit = 48 << 20        # only 64 MiB physical per TC on v7x
    elif is_v6:
        vmem_limit = 96 << 20
    elif is_v5:
        vmem_limit = 64 << 20
    else:
        vmem_limit = None            # keep the default scoped limit

    c3 = w3.shape[1]                 # 1024
    weights = (w1, b1, w2, b2, w3, b3, w4, b4, w5, b5, w6, b6)

    def _const(bi, ni):
        return (0, 0)

    def _build(single_buffer_weights):
        in_specs = [pl.BlockSpec((TB, Nt, d), lambda bi, ni: (bi, ni, 0))]
        for p in weights:
            if single_buffer_weights:
                # grid-invariant: one buffer is enough, saves ~1.6 MiB VMEM.
                spec = pl.BlockSpec(p.shape, _const, pipeline_mode=pl.Buffered(1))
            else:
                spec = pl.BlockSpec(p.shape, _const)
            in_specs.append(spec)
        return pl.pallas_call(
            _tnet_kernel,
            out_shape=jax.ShapeDtypeStruct((n_bt, TB, dd), jnp.float32),
            grid_spec=pltpu.PrefetchScalarGridSpec(
                num_scalar_prefetch=0,
                grid=(n_bt, n_nt),
                in_specs=in_specs,
                out_specs=pl.BlockSpec((1, TB, dd), lambda bi, ni: (bi, 0, 0)),
                scratch_shapes=[pltpu.VMEM((TB, c3), jnp.float32)],
            ),
            compiler_params=pltpu.CompilerParams(
                dimension_semantics=("parallel", "arbitrary"),
                vmem_limit_bytes=vmem_limit),
        )

    try:
        out = _build(True)(x, *weights)
    except Exception:
        # pl.Buffered(1) is a pure VMEM-saving hint; fall back to the default
        # double-buffered specs if this jax version rejects it.
        out = _build(False)(x, *weights)

    out = out.reshape(B_pad, dd)[:B]
    return out.reshape(B, d, d)


# ----------------------------------------------------------------------------
# Deterministic parameter construction (synthetic; mirrors module __init__
# shapes).  BatchNorm is folded (inference mode) into the preceding layer.
# ----------------------------------------------------------------------------
def _fold_bn(w_io, b, gamma, beta, mean, var, eps=1e-5):
    """w_io: (in, out) weight, b: (out,).  Returns folded (w, b) for y = x@w+b."""
    scale = gamma / jnp.sqrt(var + eps)                 # (out,)
    w_f = w_io * scale[None, :]
    b_f = scale * (b - mean) + beta
    return w_f.astype(jnp.float32), b_f.reshape(1, -1).astype(jnp.float32)


def make_params(key, input_d=3):
    dims = [(input_d, 64), (64, 128), (128, 1024), (1024, 512), (512, 256),
            (256, input_d ** 2)]
    keys = jax.random.split(key, 4 * len(dims))
    params = []
    ki = 0
    for idx, (cin, cout) in enumerate(dims):
        bound = 1.0 / np.sqrt(cin)
        w = jax.random.uniform(keys[ki], (cin, cout), jnp.float32, -bound, bound); ki += 1
        b = jax.random.uniform(keys[ki], (cout,), jnp.float32, -bound, bound);      ki += 1
        if idx < 5:  # blocks 1-5 have BatchNorm (block6 does not)
            gamma = jax.random.uniform(keys[ki], (cout,), jnp.float32, 0.5, 1.5);   ki += 1
            beta = jax.random.uniform(keys[ki], (cout,), jnp.float32, -0.1, 0.1);   ki += 1
            mean = jnp.zeros((cout,), jnp.float32)   # running stats at init
            var = jnp.ones((cout,), jnp.float32)
            w, b2d = _fold_bn(w, b, gamma, beta, mean, var)
            params += [w, b2d]
        else:
            ki += 2
            params += [w.astype(jnp.float32), b.reshape(1, -1).astype(jnp.float32)]
    return tuple(params)


def reference_forward(x, params, input_d=3):
    """Pure-JAX reference with the same precision policy as the kernel
    (bf16 MXU inputs/weights, f32 accumulation, bias+ReLU applied in the
    conventional order — mathematically identical to the kernel's deferral)."""
    (w1, b1, w2, b2, w3, b3, w4, b4, w5, b5, w6, b6) = params
    bf16 = jnp.bfloat16
    f32 = jnp.float32
    h = jnp.maximum(jnp.dot(x.astype(bf16), w1.astype(bf16),
                            preferred_element_type=f32) + b1, 0.0)
    h = jnp.maximum(jnp.dot(h.astype(bf16), w2.astype(bf16),
                            preferred_element_type=f32) + b2, 0.0)
    h = jnp.maximum(jnp.dot(h.astype(bf16), w3.astype(bf16),
                            preferred_element_type=f32) + b3, 0.0)
    f = jnp.max(h, axis=1)                     # (B, 1024) max over points
    g = jnp.maximum(jnp.dot(f.astype(bf16), w4.astype(bf16),
                            preferred_element_type=f32) + b4, 0.0)
    g = jnp.maximum(jnp.dot(g.astype(bf16), w5.astype(bf16),
                            preferred_element_type=f32) + b5, 0.0)
    out = jnp.dot(g.astype(bf16), w6.astype(bf16),
                  preferred_element_type=f32) + b6
    out = out + jnp.eye(input_d, dtype=f32).reshape(1, -1)
    return out.reshape(-1, input_d, input_d)


if __name__ == "__main__":
    input_d = 3
    B, N = 2, 16

    key = jax.random.PRNGKey(0)
    kx, kp = jax.random.split(key)
    x = jax.random.normal(kx, (B, N, input_d), dtype=jnp.float32)
    params = make_params(kp, input_d)

    out = transformation_net_forward(x, params)
    out = jax.block_until_ready(out)

    ref = reference_forward(x, params, input_d)
    np.testing.assert_allclose(np.asarray(out), np.asarray(ref),
                               rtol=2e-3, atol=2e-3)
    assert out.shape == (B, input_d, input_d)

    print("KERNEL_OK")
</pallas_src>

<mosaic_0001>
module attributes {stable_mosaic.version = 11 : i64} {
  func.func @_tnet_kernel(%arg0: i32, %arg1: i32, %arg2: memref<2x16x3xf32, #tpu.memory_space<vmem>>, %arg3: memref<3x64xbf16, #tpu.memory_space<vmem>>, %arg4: memref<1x64xf32, #tpu.memory_space<vmem>>, %arg5: memref<64x128xbf16, #tpu.memory_space<vmem>>, %arg6: memref<1x128xf32, #tpu.memory_space<vmem>>, %arg7: memref<128x1024xbf16, #tpu.memory_space<vmem>>, %arg8: memref<1x1024xf32, #tpu.memory_space<vmem>>, %arg9: memref<1024x512xbf16, #tpu.memory_space<vmem>>, %arg10: memref<1x512xf32, #tpu.memory_space<vmem>>, %arg11: memref<512x256xbf16, #tpu.memory_space<vmem>>, %arg12: memref<1x256xf32, #tpu.memory_space<vmem>>, %arg13: memref<256x9xbf16, #tpu.memory_space<vmem>>, %arg14: memref<1x9xf32, #tpu.memory_space<vmem>>, %arg15: memref<1x2x9xf32, #tpu.memory_space<vmem>>, %arg16: memref<2x1024xf32, #tpu.memory_space<vmem>>) attributes {dimension_semantics = [#tpu.dimension_semantics<parallel>, #tpu.dimension_semantics<arbitrary>], iteration_bounds = array<i64: 1, 1>, scalar_prefetch = 0 : i64, scratch_operands = 1 : i64, tpu.core_type = #tpu.core_type<tc>, window_params = [{transform_indices = @transform_0, window_bounds = array<i64: 2, 16, 3>}, {pipeline_mode = #tpu.pipeline_mode<synchronous>, transform_indices = @transform_1, window_bounds = array<i64: 3, 64>}, {pipeline_mode = #tpu.pipeline_mode<synchronous>, transform_indices = @transform_2, window_bounds = array<i64: 1, 64>}, {pipeline_mode = #tpu.pipeline_mode<synchronous>, transform_indices = @transform_3, window_bounds = array<i64: 64, 128>}, {pipeline_mode = #tpu.pipeline_mode<synchronous>, transform_indices = @transform_4, window_bounds = array<i64: 1, 128>}, {pipeline_mode = #tpu.pipeline_mode<synchronous>, transform_indices = @transform_5, window_bounds = array<i64: 128, 1024>}, {pipeline_mode = #tpu.pipeline_mode<synchronous>, transform_indices = @transform_6, window_bounds = array<i64: 1, 1024>}, {pipeline_mode = #tpu.pipeline_mode<synchronous>, transform_indices = @transform_7, window_bounds = array<i64: 1024, 512>}, {pipeline_mode = #tpu.pipeline_mode<synchronous>, transform_indices = @transform_8, window_bounds = array<i64: 1, 512>}, {pipeline_mode = #tpu.pipeline_mode<synchronous>, transform_indices = @transform_9, window_bounds = array<i64: 512, 256>}, {pipeline_mode = #tpu.pipeline_mode<synchronous>, transform_indices = @transform_10, window_bounds = array<i64: 1, 256>}, {pipeline_mode = #tpu.pipeline_mode<synchronous>, transform_indices = @transform_11, window_bounds = array<i64: 256, 9>}, {pipeline_mode = #tpu.pipeline_mode<synchronous>, transform_indices = @transform_12, window_bounds = array<i64: 1, 9>}, {transform_indices = @transform_13, window_bounds = array<i64: 1, 2, 9>}]} {
    %c0_i32 = arith.constant 0 : i32
    %0 = arith.cmpi eq, %arg1, %c0_i32 : i32
    %1 = arith.extui %0 : i1 to i32
    %c0_i32_0 = arith.constant 0 : i32
    %2 = arith.cmpi ne, %1, %c0_i32_0 : i32
    scf.if %2 {
      %cst_24 = arith.constant 0xFF800000 : f32
      %32 = vector.broadcast %cst_24 : f32 to vector<2x1024xf32>
      %c0_25 = arith.constant 0 : index
      %c0_26 = arith.constant 0 : index
      %33 = vector.load %arg16[%c0_25, %c0_26] : memref<2x1024xf32, #tpu.memory_space<vmem>>, vector<2x1024xf32>
      tpu.vector_store %arg16[%c0_25, %c0_26], %32 {strides = array<i32>} : memref<2x1024xf32, #tpu.memory_space<vmem>>, vector<2x1024xf32>,
    } else {
    }
    %c0 = arith.constant 0 : index
    %c0_1 = arith.constant 0 : index
    %c0_2 = arith.constant 0 : index
    %3 = vector.load %arg2[%c0, %c0_1, %c0_2] : memref<2x16x3xf32, #tpu.memory_space<vmem>>, vector<2x16x3xf32>
    %4 = vector.shape_cast %3 : vector<2x16x3xf32> to vector<32x3xf32>
    %5 = arith.truncf %4 : vector<32x3xf32> to vector<32x3xbf16>
    %c0_3 = arith.constant 0 : index
    %c0_4 = arith.constant 0 : index
    %6 = vector.load %arg3[%c0_3, %c0_4] : memref<3x64xbf16, #tpu.memory_space<vmem>>, vector<3x64xbf16>
    %cst = arith.constant dense<0.000000e+00> : vector<32x64xf32>
    %7 = tpu.matmul %5, %6, %cst {dimension_numbers = #tpu.dot_dimension_numbers<[1], [0], [0], [1], [0, 0, 1, 1], [], []>} : vector<32x3xbf16>, vector<3x64xbf16>, vector<32x64xf32> -> vector<32x64xf32>
    %c0_5 = arith.constant 0 : index
    %c0_6 = arith.constant 0 : index
    %8 = vector.load %arg4[%c0_5, %c0_6] : memref<1x64xf32, #tpu.memory_space<vmem>>, vector<1x64xf32>
    %9 = vector.broadcast %8 : vector<1x64xf32> to vector<32x64xf32>
    %10 = arith.addf %7, %9 : vector<32x64xf32>
    %cst_7 = arith.constant 0.000000e+00 : f32
    %11 = vector.broadcast %cst_7 : f32 to vector<32x64xf32>
    %12 = arith.maximumf %10, %11 : vector<32x64xf32>
    %13 = arith.truncf %12 : vector<32x64xf32> to vector<32x64xbf16>
    %c0_8 = arith.constant 0 : index
    %c0_9 = arith.constant 0 : index
    %14 = vector.load %arg5[%c0_8, %c0_9] : memref<64x128xbf16, #tpu.memory_space<vmem>>, vector<64x128xbf16>
    %cst_10 = arith.constant dense<0.000000e+00> : vector<32x128xf32>
    %15 = tpu.matmul %13, %14, %cst_10 {dimension_numbers = #tpu.dot_dimension_numbers<[1], [0], [0], [1], [0, 0, 1, 1], [], []>} : vector<32x64xbf16>, vector<64x128xbf16>, vector<32x128xf32> -> vector<32x128xf32>
    %c0_11 = arith.constant 0 : index
    %c0_12 = arith.constant 0 : index
    %16 = vector.load %arg6[%c0_11, %c0_12] : memref<1x128xf32, #tpu.memory_space<vmem>>, vector<1x128xf32>
    %17 = vector.broadcast %16 : vector<1x128xf32> to vector<32x128xf32>
    %18 = arith.addf %15, %17 : vector<32x128xf32>
    %cst_13 = arith.constant 0.000000e+00 : f32
    %19 = vector.broadcast %cst_13 : f32 to vector<32x128xf32>
    %20 = arith.maximumf %18, %19 : vector<32x128xf32>
    %21 = arith.truncf %20 : vector<32x128xf32> to vector<32x128xbf16>
    %c0_14 = arith.constant 0 : index
    %c0_15 = arith.constant 0 : index
    %22 = vector.load %arg7[%c0_14, %c0_15] : memref<128x1024xbf16, #tpu.memory_space<vmem>>, vector<128x1024xbf16>
    %cst_16 = arith.constant dense<0.000000e+00> : vector<32x1024xf32>
    %23 = tpu.matmul %21, %22, %cst_16 {dimension_numbers = #tpu.dot_dimension_numbers<[1], [0], [0], [1], [0, 0, 1, 1], [], []>} : vector<32x128xbf16>, vector<128x1024xbf16>, vector<32x1024xf32> -> vector<32x1024xf32>
    %24 = vector.shape_cast %23 : vector<32x1024xf32> to vector<2x16x1024xf32>
    %cst_17 = arith.constant dense<0xFF800000> : vector<2x1024xf32>
    %25 = vector.multi_reduction <maximumf>, %24, %cst_17 [1] : vector<2x16x1024xf32> to vector<2x1024xf32>
    %c0_18 = arith.constant 0 : index
    %c0_19 = arith.constant 0 : index
    %26 = vector.load %arg16[%c0_18, %c0_19] : memref<2x1024xf32, #tpu.memory_space<vmem>>, vector<2x1024xf32>
    %27 = arith.maximumf %26, %25 : vector<2x1024xf32>
    %c0_20 = arith.constant 0 : index
    %c0_21 = arith.constant 0 : index
    %28 = vector.load %arg16[%c0_20, %c0_21] : memref<2x1024xf32, #tpu.memory_space<vmem>>, vector<2x1024xf32>
    tpu.vector_store %arg16[%c0_20, %c0_21], %27 {strides = array<i32>} : memref<2x1024xf32, #tpu.memory_space<vmem>>, vector<2x1024xf32>,
    %c0_i32_22 = arith.constant 0 : i32
    %29 = arith.cmpi eq, %arg1, %c0_i32_22 : i32
    %30 = arith.extui %29 : i1 to i32
    %c0_i32_23 = arith.constant 0 : i32
    %31 = arith.cmpi ne, %30, %c0_i32_23 : i32
    scf.if %31 {
      %c0_24 = arith.constant 0 : index
      %c0_25 = arith.constant 0 : index
      %32 = vector.load %arg16[%c0_24, %c0_25] : memref<2x1024xf32, #tpu.memory_space<vmem>>, vector<2x1024xf32>
      %c0_26 = arith.constant 0 : index
      %c0_27 = arith.constant 0 : index
      %33 = vector.load %arg8[%c0_26, %c0_27] : memref<1x1024xf32, #tpu.memory_space<vmem>>, vector<1x1024xf32>
      %34 = vector.broadcast %33 : vector<1x1024xf32> to vector<2x1024xf32>
      %35 = arith.addf %32, %34 : vector<2x1024xf32>
      %cst_28 = arith.constant 0.000000e+00 : f32
      %36 = vector.broadcast %cst_28 : f32 to vector<2x1024xf32>
      %37 = arith.maximumf %35, %36 : vector<2x1024xf32>
      %38 = arith.truncf %37 : vector<2x1024xf32> to vector<2x1024xbf16>
      %c0_29 = arith.constant 0 : index
      %c0_30 = arith.constant 0 : index
      %39 = vector.load %arg9[%c0_29, %c0_30] : memref<1024x512xbf16, #tpu.memory_space<vmem>>, vector<1024x512xbf16>
      %cst_31 = arith.constant dense<0.000000e+00> : vector<2x512xf32>
      %40 = tpu.matmul %38, %39, %cst_31 {dimension_numbers = #tpu.dot_dimension_numbers<[1], [0], [0], [1], [0, 0, 1, 1], [], []>} : vector<2x1024xbf16>, vector<1024x512xbf16>, vector<2x512xf32> -> vector<2x512xf32>
      %c0_32 = arith.constant 0 : index
      %c0_33 = arith.constant 0 : index
      %41 = vector.load %arg10[%c0_32, %c0_33] : memref<1x512xf32, #tpu.memory_space<vmem>>, vector<1x512xf32>
      %42 = vector.broadcast %41 : vector<1x512xf32> to vector<2x512xf32>
      %43 = arith.addf %40, %42 : vector<2x512xf32>
      %cst_34 = arith.constant 0.000000e+00 : f32
      %44 = vector.broadcast %cst_34 : f32 to vector<2x512xf32>
      %45 = arith.maximumf %43, %44 : vector<2x512xf32>
      %46 = arith.truncf %45 : vector<2x512xf32> to vector<2x512xbf16>
      %c0_35 = arith.constant 0 : index
      %c0_36 = arith.constant 0 : index
      %47 = vector.load %arg11[%c0_35, %c0_36] : memref<512x256xbf16, #tpu.memory_space<vmem>>, vector<512x256xbf16>
      %cst_37 = arith.constant dense<0.000000e+00> : vector<2x256xf32>
      %48 = tpu.matmul %46, %47, %cst_37 {dimension_numbers = #tpu.dot_dimension_numbers<[1], [0], [0], [1], [0, 0, 1, 1], [], []>} : vector<2x512xbf16>, vector<512x256xbf16>, vector<2x256xf32> -> vector<2x256xf32>
      %c0_38 = arith.constant 0 : index
      %c0_39 = arith.constant 0 : index
      %49 = vector.load %arg12[%c0_38, %c0_39] : memref<1x256xf32, #tpu.memory_space<vmem>>, vector<1x256xf32>
      %50 = vector.broadcast %49 : vector<1x256xf32> to vector<2x256xf32>
      %51 = arith.addf %48, %50 : vector<2x256xf32>
      %cst_40 = arith.constant 0.000000e+00 : f32
      %52 = vector.broadcast %cst_40 : f32 to vector<2x256xf32>
      %53 = arith.maximumf %51, %52 : vector<2x256xf32>
      %54 = arith.truncf %53 : vector<2x256xf32> to vector<2x256xbf16>
      %c0_41 = arith.constant 0 : index
      %c0_42 = arith.constant 0 : index
      %55 = vector.load %arg13[%c0_41, %c0_42] : memref<256x9xbf16, #tpu.memory_space<vmem>>, vector<256x9xbf16>
      %cst_43 = arith.constant dense<0.000000e+00> : vector<2x9xf32>
      %56 = tpu.matmul %54, %55, %cst_43 {dimension_numbers = #tpu.dot_dimension_numbers<[1], [0], [0], [1], [0, 0, 1, 1], [], []>} : vector<2x256xbf16>, vector<256x9xbf16>, vector<2x9xf32> -> vector<2x9xf32>
      %c0_44 = arith.constant 0 : index
      %c0_45 = arith.constant 0 : index
      %57 = vector.load %arg14[%c0_44, %c0_45] : memref<1x9xf32, #tpu.memory_space<vmem>>, vector<1x9xf32>
      %58 = vector.broadcast %57 : vector<1x9xf32> to vector<2x9xf32>
      %59 = arith.addf %56, %58 : vector<2x9xf32>
      %60 = vector.shape_cast %59 : vector<2x9xf32> to vector<1x2x9xf32>
      %c0_46 = arith.constant 0 : index
      %c0_47 = arith.constant 0 : index
      %c0_48 = arith.constant 0 : index
      %61 = vector.load %arg15[%c0_46, %c0_47, %c0_48] : memref<1x2x9xf32, #tpu.memory_space<vmem>>, vector<1x2x9xf32>
      tpu.vector_store %arg15[%c0_46, %c0_47, %c0_48], %60 {strides = array<i32>} : memref<1x2x9xf32, #tpu.memory_space<vmem>>, vector<1x2x9xf32>,
    } else {
    }
    return
  }
  func.func @transform_0(%arg0: i32, %arg1: i32) -> (i32, i32, i32) {
    %c0_i32 = arith.constant 0 : i32
    %c0_i32_0 = arith.constant 0 : i32
    return %arg0, %arg1, %c0_i32 : i32, i32, i32
  }
  func.func @transform_1(%arg0: i32, %arg1: i32) -> (i32, i32) {
    %c0_i32 = arith.constant 0 : i32
    %c0_i32_0 = arith.constant 0 : i32
    %c0_i32_1 = arith.constant 0 : i32
    return %c0_i32, %c0_i32_0 : i32, i32
  }
  func.func @transform_2(%arg0: i32, %arg1: i32) -> (i32, i32) {
    %c0_i32 = arith.constant 0 : i32
    %c0_i32_0 = arith.constant 0 : i32
    %c0_i32_1 = arith.constant 0 : i32
    return %c0_i32, %c0_i32_0 : i32, i32
  }
  func.func @transform_3(%arg0: i32, %arg1: i32) -> (i32, i32) {
    %c0_i32 = arith.constant 0 : i32
    %c0_i32_0 = arith.constant 0 : i32
    %c0_i32_1 = arith.constant 0 : i32
    return %c0_i32, %c0_i32_0 : i32, i32
  }
  func.func @transform_4(%arg0: i32, %arg1: i32) -> (i32, i32) {
    %c0_i32 = arith.constant 0 : i32
    %c0_i32_0 = arith.constant 0 : i32
    %c0_i32_1 = arith.constant 0 : i32
    return %c0_i32, %c0_i32_0 : i32, i32
  }
  func.func @transform_5(%arg0: i32, %arg1: i32) -> (i32, i32) {
    %c0_i32 = arith.constant 0 : i32
    %c0_i32_0 = arith.constant 0 : i32
    %c0_i32_1 = arith.constant 0 : i32
    return %c0_i32, %c0_i32_0 : i32, i32
  }
  func.func @transform_6(%arg0: i32, %arg1: i32) -> (i32, i32) {
    %c0_i32 = arith.constant 0 : i32
    %c0_i32_0 = arith.constant 0 : i32
    %c0_i32_1 = arith.constant 0 : i32
    return %c0_i32, %c0_i32_0 : i32, i32
  }
  func.func @transform_7(%arg0: i32, %arg1: i32) -> (i32, i32) {
    %c0_i32 = arith.constant 0 : i32
    %c0_i32_0 = arith.constant 0 : i32
    %c0_i32_1 = arith.constant 0 : i32
    return %c0_i32, %c0_i32_0 : i32, i32
  }
  func.func @transform_8(%arg0: i32, %arg1: i32) -> (i32, i32) {
    %c0_i32 = arith.constant 0 : i32
    %c0_i32_0 = arith.constant 0 : i32
    %c0_i32_1 = arith.constant 0 : i32
    return %c0_i32, %c0_i32_0 : i32, i32
  }
  func.func @transform_9(%arg0: i32, %arg1: i32) -> (i32, i32) {
    %c0_i32 = arith.constant 0 : i32
    %c0_i32_0 = arith.constant 0 : i32
    %c0_i32_1 = arith.constant 0 : i32
    return %c0_i32, %c0_i32_0 : i32, i32
  }
  func.func @transform_10(%arg0: i32, %arg1: i32) -> (i32, i32) {
    %c0_i32 = arith.constant 0 : i32
    %c0_i32_0 = arith.constant 0 : i32
    %c0_i32_1 = arith.constant 0 : i32
    return %c0_i32, %c0_i32_0 : i32, i32
  }
  func.func @transform_11(%arg0: i32, %arg1: i32) -> (i32, i32) {
    %c0_i32 = arith.constant 0 : i32
    %c0_i32_0 = arith.constant 0 : i32
    %c0_i32_1 = arith.constant 0 : i32
    return %c0_i32, %c0_i32_0 : i32, i32
  }
  func.func @transform_12(%arg0: i32, %arg1: i32) -> (i32, i32) {
    %c0_i32 = arith.constant 0 : i32
    %c0_i32_0 = arith.constant 0 : i32
    %c0_i32_1 = arith.constant 0 : i32
    return %c0_i32, %c0_i32_0 : i32, i32
  }
  func.func @transform_13(%arg0: i32, %arg1: i32) -> (i32, i32, i32) {
    %c0_i32 = arith.constant 0 : i32
    %c0_i32_0 = arith.constant 0 : i32
    %c0_i32_1 = arith.constant 0 : i32
    return %arg0, %c0_i32, %c0_i32_0 : i32, i32, i32
  }
}

module attributes {stable_mosaic.version = 11 : i64} {
  func.func @_tnet_kernel(%arg0: i32, %arg1: i32, %arg2: memref<2x16x3xf32, #tpu.memory_space<vmem>>, %arg3: memref<3x64xbf16, #tpu.memory_space<vmem>>, %arg4: memref<1x64xf32, #tpu.memory_space<vmem>>, %arg5: memref<64x128xbf16, #tpu.memory_space<vmem>>, %arg6: memref<1x128xf32, #tpu.memory_space<vmem>>, %arg7: memref<128x1024xbf16, #tpu.memory_space<vmem>>, %arg8: memref<1x1024xf32, #tpu.memory_space<vmem>>, %arg9: memref<1024x512xbf16, #tpu.memory_space<vmem>>, %arg10: memref<1x512xf32, #tpu.memory_space<vmem>>, %arg11: memref<512x256xbf16, #tpu.memory_space<vmem>>, %arg12: memref<1x256xf32, #tpu.memory_space<vmem>>, %arg13: memref<256x9xbf16, #tpu.memory_space<vmem>>, %arg14: memref<1x9xf32, #tpu.memory_space<vmem>>, %arg15: memref<1x2x9xf32, #tpu.memory_space<vmem>>, %arg16: memref<2x1024xf32, #tpu.memory_space<vmem>>) attributes {dimension_semantics = [#tpu.dimension_semantics<parallel>, #tpu.dimension_semantics<arbitrary>], iteration_bounds = array<i64: 1, 1>, scalar_prefetch = 0 : i64, scratch_operands = 1 : i64, tpu.core_type = #tpu.core_type<tc>, window_params = [{transform_indices = @transform_0, window_bounds = array<i64: 2, 16, 3>}, {pipeline_mode = #tpu.pipeline_mode<synchronous>, transform_indices = @transform_1, window_bounds = array<i64: 3, 64>}, {pipeline_mode = #tpu.pipeline_mode<synchronous>, transform_indices = @transform_2, window_bounds = array<i64: 1, 64>}, {pipeline_mode = #tpu.pipeline_mode<synchronous>, transform_indices = @transform_3, window_bounds = array<i64: 64, 128>}, {pipeline_mode = #tpu.pipeline_mode<synchronous>, transform_indices = @transform_4, window_bounds = array<i64: 1, 128>}, {pipeline_mode = #tpu.pipeline_mode<synchronous>, transform_indices = @transform_5, window_bounds = array<i64: 128, 1024>}, {pipeline_mode = #tpu.pipeline_mode<synchronous>, transform_indices = @transform_6, window_bounds = array<i64: 1, 1024>}, {pipeline_mode = #tpu.pipeline_mode<synchronous>, transform_indices = @transform_7, window_bounds = array<i64: 1024, 512>}, {pipeline_mode = #tpu.pipeline_mode<synchronous>, transform_indices = @transform_8, window_bounds = array<i64: 1, 512>}, {pipeline_mode = #tpu.pipeline_mode<synchronous>, transform_indices = @transform_9, window_bounds = array<i64: 512, 256>}, {pipeline_mode = #tpu.pipeline_mode<synchronous>, transform_indices = @transform_10, window_bounds = array<i64: 1, 256>}, {pipeline_mode = #tpu.pipeline_mode<synchronous>, transform_indices = @transform_11, window_bounds = array<i64: 256, 9>}, {pipeline_mode = #tpu.pipeline_mode<synchronous>, transform_indices = @transform_12, window_bounds = array<i64: 1, 9>}, {transform_indices = @transform_13, window_bounds = array<i64: 1, 2, 9>}]} {
    %c0_i32 = arith.constant 0 : i32
    %0 = arith.cmpi eq, %arg1, %c0_i32 : i32
    %1 = arith.extui %0 : i1 to i32
    %c0_i32_0 = arith.constant 0 : i32
    %2 = arith.cmpi ne, %1, %c0_i32_0 : i32
    scf.if %2 {
      %cst_24 = arith.constant 0xFF800000 : f32
      %32 = vector.broadcast %cst_24 : f32 to vector<2x1024xf32>
      %c0_25 = arith.constant 0 : index
      %c0_26 = arith.constant 0 : index
      %33 = vector.load %arg16[%c0_25, %c0_26] : memref<2x1024xf32, #tpu.memory_space<vmem>>, vector<2x1024xf32>
      tpu.vector_store %arg16[%c0_25, %c0_26], %32 {strides = array<i32>} : memref<2x1024xf32, #tpu.memory_space<vmem>>, vector<2x1024xf32>,
    } else {
    }
    %c0 = arith.constant 0 : index
    %c0_1 = arith.constant 0 : index
    %c0_2 = arith.constant 0 : index
    %3 = vector.load %arg2[%c0, %c0_1, %c0_2] : memref<2x16x3xf32, #tpu.memory_space<vmem>>, vector<2x16x3xf32>
    %4 = vector.shape_cast %3 : vector<2x16x3xf32> to vector<32x3xf32>
    %5 = arith.truncf %4 : vector<32x3xf32> to vector<32x3xbf16>
    %c0_3 = arith.constant 0 : index
    %c0_4 = arith.constant 0 : index
    %6 = vector.load %arg3[%c0_3, %c0_4] : memref<3x64xbf16, #tpu.memory_space<vmem>>, vector<3x64xbf16>
    %cst = arith.constant dense<0.000000e+00> : vector<32x64xf32>
    %7 = tpu.matmul %5, %6, %cst {dimension_numbers = #tpu.dot_dimension_numbers<[1], [0], [0], [1], [0, 0, 1, 1], [], []>} : vector<32x3xbf16>, vector<3x64xbf16>, vector<32x64xf32> -> vector<32x64xf32>
    %c0_5 = arith.constant 0 : index
    %c0_6 = arith.constant 0 : index
    %8 = vector.load %arg4[%c0_5, %c0_6] : memref<1x64xf32, #tpu.memory_space<vmem>>, vector<1x64xf32>
    %9 = vector.broadcast %8 : vector<1x64xf32> to vector<32x64xf32>
    %10 = arith.addf %7, %9 : vector<32x64xf32>
    %cst_7 = arith.constant 0.000000e+00 : f32
    %11 = vector.broadcast %cst_7 : f32 to vector<32x64xf32>
    %12 = arith.maximumf %10, %11 : vector<32x64xf32>
    %13 = arith.truncf %12 : vector<32x64xf32> to vector<32x64xbf16>
    %c0_8 = arith.constant 0 : index
    %c0_9 = arith.constant 0 : index
    %14 = vector.load %arg5[%c0_8, %c0_9] : memref<64x128xbf16, #tpu.memory_space<vmem>>, vector<64x128xbf16>
    %cst_10 = arith.constant dense<0.000000e+00> : vector<32x128xf32>
    %15 = tpu.matmul %13, %14, %cst_10 {dimension_numbers = #tpu.dot_dimension_numbers<[1], [0], [0], [1], [0, 0, 1, 1], [], []>} : vector<32x64xbf16>, vector<64x128xbf16>, vector<32x128xf32> -> vector<32x128xf32>
    %c0_11 = arith.constant 0 : index
    %c0_12 = arith.constant 0 : index
    %16 = vector.load %arg6[%c0_11, %c0_12] : memref<1x128xf32, #tpu.memory_space<vmem>>, vector<1x128xf32>
    %17 = vector.broadcast %16 : vector<1x128xf32> to vector<32x128xf32>
    %18 = arith.addf %15, %17 : vector<32x128xf32>
    %cst_13 = arith.constant 0.000000e+00 : f32
    %19 = vector.broadcast %cst_13 : f32 to vector<32x128xf32>
    %20 = arith.maximumf %18, %19 : vector<32x128xf32>
    %21 = arith.truncf %20 : vector<32x128xf32> to vector<32x128xbf16>
    %c0_14 = arith.constant 0 : index
    %c0_15 = arith.constant 0 : index
    %22 = vector.load %arg7[%c0_14, %c0_15] : memref<128x1024xbf16, #tpu.memory_space<vmem>>, vector<128x1024xbf16>
    %cst_16 = arith.constant dense<0.000000e+00> : vector<32x1024xf32>
    %23 = tpu.matmul %21, %22, %cst_16 {dimension_numbers = #tpu.dot_dimension_numbers<[1], [0], [0], [1], [0, 0, 1, 1], [], []>} : vector<32x128xbf16>, vector<128x1024xbf16>, vector<32x1024xf32> -> vector<32x1024xf32>
    %24 = vector.shape_cast %23 : vector<32x1024xf32> to vector<2x16x1024xf32>
    %cst_17 = arith.constant dense<0xFF800000> : vector<2x1024xf32>
    %25 = vector.multi_reduction <maximumf>, %24, %cst_17 [1] : vector<2x16x1024xf32> to vector<2x1024xf32>
    %c0_18 = arith.constant 0 : index
    %c0_19 = arith.constant 0 : index
    %26 = vector.load %arg16[%c0_18, %c0_19] : memref<2x1024xf32, #tpu.memory_space<vmem>>, vector<2x1024xf32>
    %27 = arith.maximumf %26, %25 : vector<2x1024xf32>
    %c0_20 = arith.constant 0 : index
    %c0_21 = arith.constant 0 : index
    %28 = vector.load %arg16[%c0_20, %c0_21] : memref<2x1024xf32, #tpu.memory_space<vmem>>, vector<2x1024xf32>
    tpu.vector_store %arg16[%c0_20, %c0_21], %27 {strides = array<i32>} : memref<2x1024xf32, #tpu.memory_space<vmem>>, vector<2x1024xf32>,
    %c0_i32_22 = arith.constant 0 : i32
    %29 = arith.cmpi eq, %arg1, %c0_i32_22 : i32
    %30 = arith.extui %29 : i1 to i32
    %c0_i32_23 = arith.constant 0 : i32
    %31 = arith.cmpi ne, %30, %c0_i32_23 : i32
    scf.if %31 {
      %c0_24 = arith.constant 0 : index
      %c0_25 = arith.constant 0 : index
      %32 = vector.load %arg16[%c0_24, %c0_25] : memref<2x1024xf32, #tpu.memory_space<vmem>>, vector<2x1024xf32>
      %c0_26 = arith.constant 0 : index
      %c0_27 = arith.constant 0 : index
      %33 = vector.load %arg8[%c0_26, %c0_27] : memref<1x1024xf32, #tpu.memory_space<vmem>>, vector<1x1024xf32>
      %34 = vector.broadcast %33 : vector<1x1024xf32> to vector<2x1024xf32>
      %35 = arith.addf %32, %34 : vector<2x1024xf32>
      %cst_28 = arith.constant 0.000000e+00 : f32
      %36 = vector.broadcast %cst_28 : f32 to vector<2x1024xf32>
      %37 = arith.maximumf %35, %36 : vector<2x1024xf32>
      %38 = arith.truncf %37 : vector<2x1024xf32> to vector<2x1024xbf16>
      %c0_29 = arith.constant 0 : index
      %c0_30 = arith.constant 0 : index
      %39 = vector.load %arg9[%c0_29, %c0_30] : memref<1024x512xbf16, #tpu.memory_space<vmem>>, vector<1024x512xbf16>
      %cst_31 = arith.constant dense<0.000000e+00> : vector<2x512xf32>
      %40 = tpu.matmul %38, %39, %cst_31 {dimension_numbers = #tpu.dot_dimension_numbers<[1], [0], [0], [1], [0, 0, 1, 1], [], []>} : vector<2x1024xbf16>, vector<1024x512xbf16>, vector<2x512xf32> -> vector<2x512xf32>
      %c0_32 = arith.constant 0 : index
      %c0_33 = arith.constant 0 : index
      %41 = vector.load %arg10[%c0_32, %c0_33] : memref<1x512xf32, #tpu.memory_space<vmem>>, vector<1x512xf32>
      %42 = vector.broadcast %41 : vector<1x512xf32> to vector<2x512xf32>
      %43 = arith.addf %40, %42 : vector<2x512xf32>
      %cst_34 = arith.constant 0.000000e+00 : f32
      %44 = vector.broadcast %cst_34 : f32 to vector<2x512xf32>
      %45 = arith.maximumf %43, %44 : vector<2x512xf32>
      %46 = arith.truncf %45 : vector<2x512xf32> to vector<2x512xbf16>
      %c0_35 = arith.constant 0 : index
      %c0_36 = arith.constant 0 : index
      %47 = vector.load %arg11[%c0_35, %c0_36] : memref<512x256xbf16, #tpu.memory_space<vmem>>, vector<512x256xbf16>
      %cst_37 = arith.constant dense<0.000000e+00> : vector<2x256xf32>
      %48 = tpu.matmul %46, %47, %cst_37 {dimension_numbers = #tpu.dot_dimension_numbers<[1], [0], [0], [1], [0, 0, 1, 1], [], []>} : vector<2x512xbf16>, vector<512x256xbf16>, vector<2x256xf32> -> vector<2x256xf32>
      %c0_38 = arith.constant 0 : index
      %c0_39 = arith.constant 0 : index
      %49 = vector.load %arg12[%c0_38, %c0_39] : memref<1x256xf32, #tpu.memory_space<vmem>>, vector<1x256xf32>
      %50 = vector.broadcast %49 : vector<1x256xf32> to vector<2x256xf32>
      %51 = arith.addf %48, %50 : vector<2x256xf32>
      %cst_40 = arith.constant 0.000000e+00 : f32
      %52 = vector.broadcast %cst_40 : f32 to vector<2x256xf32>
      %53 = arith.maximumf %51, %52 : vector<2x256xf32>
      %54 = arith.truncf %53 : vector<2x256xf32> to vector<2x256xbf16>
      %c0_41 = arith.constant 0 : index
      %c0_42 = arith.constant 0 : index
      %55 = vector.load %arg13[%c0_41, %c0_42] : memref<256x9xbf16, #tpu.memory_space<vmem>>, vector<256x9xbf16>
      %cst_43 = arith.constant dense<0.000000e+00> : vector<2x9xf32>
      %56 = tpu.matmul %54, %55, %cst_43 {dimension_numbers = #tpu.dot_dimension_numbers<[1], [0], [0], [1], [0, 0, 1, 1], [], []>} : vector<2x256xbf16>, vector<256x9xbf16>, vector<2x9xf32> -> vector<2x9xf32>
      %c0_44 = arith.constant 0 : index
      %c0_45 = arith.constant 0 : index
      %57 = vector.load %arg14[%c0_44, %c0_45] : memref<1x9xf32, #tpu.memory_space<vmem>>, vector<1x9xf32>
      %58 = vector.broadcast %57 : vector<1x9xf32> to vector<2x9xf32>
      %59 = arith.addf %56, %58 : vector<2x9xf32>
      %60 = vector.shape_cast %59 : vector<2x9xf32> to vector<1x2x9xf32>
      %c0_46 = arith.constant 0 : index
      %c0_47 = arith.constant 0 : index
      %c0_48 = arith.constant 0 : index
      %61 = vector.load %arg15[%c0_46, %c0_47, %c0_48] : memref<1x2x9xf32, #tpu.memory_space<vmem>>, vector<1x2x9xf32>
      tpu.vector_store %arg15[%c0_46, %c0_47, %c0_48], %60 {strides = array<i32>} : memref<1x2x9xf32, #tpu.memory_space<vmem>>, vector<1x2x9xf32>,
    } else {
    }
    return
  }
  func.func @transform_0(%arg0: i32, %arg1: i32) -> (i32, i32, i32) {
    %c0_i32 = arith.constant 0 : i32
    %c0_i32_0 = arith.constant 0 : i32
    return %arg0, %arg1, %c0_i32 : i32, i32, i32
  }
  func.func @transform_1(%arg0: i32, %arg1: i32) -> (i32, i32) {
    %c0_i32 = arith.constant 0 : i32
    %c0_i32_0 = arith.constant 0 : i32
    %c0_i32_1 = arith.constant 0 : i32
    return %c0_i32, %c0_i32_0 : i32, i32
  }
  func.func @transform_2(%arg0: i32, %arg1: i32) -> (i32, i32) {
    %c0_i32 = arith.constant 0 : i32
    %c0_i32_0 = arith.constant 0 : i32
    %c0_i32_1 = arith.constant 0 : i32
    return %c0_i32, %c0_i32_0 : i32, i32
  }
  func.func @transform_3(%arg0: i32, %arg1: i32) -> (i32, i32) {
    %c0_i32 = arith.constant 0 : i32
    %c0_i32_0 = arith.constant 0 : i32
    %c0_i32_1 = arith.constant 0 : i32
    return %c0_i32, %c0_i32_0 : i32, i32
  }
  func.func @transform_4(%arg0: i32, %arg1: i32) -> (i32, i32) {
    %c0_i32 = arith.constant 0 : i32
    %c0_i32_0 = arith.constant 0 : i32
    %c0_i32_1 = arith.constant 0 : i32
    return %c0_i32, %c0_i32_0 : i32, i32
  }
  func.func @transform_5(%arg0: i32, %arg1: i32) -> (i32, i32) {
    %c0_i32 = arith.constant 0 : i32
    %c0_i32_0 = arith.constant 0 : i32
    %c0_i32_1 = arith.constant 0 : i32
    return %c0_i32, %c0_i32_0 : i32, i32
  }
  func.func @transform_6(%arg0: i32, %arg1: i32) -> (i32, i32) {
    %c0_i32 = arith.constant 0 : i32
    %c0_i32_0 = arith.constant 0 : i32
    %c0_i32_1 = arith.constant 0 : i32
    return %c0_i32, %c0_i32_0 : i32, i32
  }
  func.func @transform_7(%arg0: i32, %arg1: i32) -> (i32, i32) {
    %c0_i32 = arith.constant 0 : i32
    %c0_i32_0 = arith.constant 0 : i32
    %c0_i32_1 = arith.constant 0 : i32
    return %c0_i32, %c0_i32_0 : i32, i32
  }
  func.func @transform_8(%arg0: i32, %arg1: i32) -> (i32, i32) {
    %c0_i32 = arith.constant 0 : i32
    %c0_i32_0 = arith.constant 0 : i32
    %c0_i32_1 = arith.constant 0 : i32
    return %c0_i32, %c0_i32_0 : i32, i32
  }
  func.func @transform_9(%arg0: i32, %arg1: i32) -> (i32, i32) {
    %c0_i32 = arith.constant 0 : i32
    %c0_i32_0 = arith.constant 0 : i32
    %c0_i32_1 = arith.constant 0 : i32
    return %c0_i32, %c0_i32_0 : i32, i32
  }
  func.func @transform_10(%arg0: i32, %arg1: i32) -> (i32, i32) {
    %c0_i32 = arith.constant 0 : i32
    %c0_i32_0 = arith.constant 0 : i32
    %c0_i32_1 = arith.constant 0 : i32
    return %c0_i32, %c0_i32_0 : i32, i32
  }
  func.func @transform_11(%arg0: i32, %arg1: i32) -> (i32, i32) {
    %c0_i32 = arith.constant 0 : i32
    %c0_i32_0 = arith.constant 0 : i32
    %c0_i32_1 = arith.constant 0 : i32
    return %c0_i32, %c0_i32_0 : i32, i32
  }
  func.func @transform_12(%arg0: i32, %arg1: i32) -> (i32, i32) {
    %c0_i32 = arith.constant 0 : i32
    %c0_i32_0 = arith.constant 0 : i32
    %c0_i32_1 = arith.constant 0 : i32
    return %c0_i32, %c0_i32_0 : i32, i32
  }
  func.func @transform_13(%arg0: i32, %arg1: i32) -> (i32, i32, i32) {
    %c0_i32 = arith.constant 0 : i32
    %c0_i32_0 = arith.constant 0 : i32
    %c0_i32_1 = arith.constant 0 : i32
    return %arg0, %c0_i32, %c0_i32_0 : i32, i32, i32
  }
}

</mosaic_0001>

<bundles_post_ra>
// kernel: tpu_custom_call.1
= control target key start
LH: loop header
LB: loop body
LE: loop exit
PB: predicated region body
PF: predicated region fallthrough
CT: control target
= control target key end

     0   :  { %18 = vsyncpa [#allocation4], 0  ;;  %s5277_s0 = inlined_call_operand.vmem [shape: f32[2,16,3], index: 0, kind: input, shape index: {}]   ;;  %s5278_s1 = inlined_call_operand.vmem [shape: bf16[3,64], index: 1, kind: input, shape index: {}]   ;;  %s5279_s2 = inlined_call_operand.vmem [shape: f32[1,64], index: 2, kind: input, shape index: {}]   ;;  %s5280_s3 = inlined_call_operand.vmem [shape: bf16[64,128], index: 3, kind: input, shape index: {}]   ;;  %s5281_s4 = inlined_call_operand.vmem [shape: f32[1,128], index: 4, kind: input, shape index: {}]   ;;  %s5282_s5 = inlined_call_operand.hbm [shape: bf16[128,1024], index: 5, kind: input, shape index: {}]   ;;  %s5283_s6 = inlined_call_operand.vmem [shape: f32[1,1024], index: 6, kind: input, shape index: {}]   ;;  %s5284_s7 = inlined_call_operand.hbm [shape: bf16[1024,512], index: 7, kind: input, shape index: {}]   ;;  %s5285_s8 = inlined_call_operand.vmem [shape: f32[1,512], index: 8, kind: input, shape index: {}]   ;;  %s5286_s9 = inlined_call_operand.hbm [shape: bf16[512,256], index: 9, kind: input, shape index: {}]   ;;  %s5287_s10 = inlined_call_operand.vmem [shape: f32[1,256], index: 10, kind: input, shape index: {}]   ;;  %s5288_s11 = inlined_call_operand.vmem [shape: bf16[256,9], index: 11, kind: input, shape index: {}]   ;;  %s5289_s12 = inlined_call_operand.vmem [shape: f32[1,9], index: 12, kind: input, shape index: {}]   ;;  %s5290_s13 = inlined_call_operand.hbm [shape: f32[1,2,9], index: 13, kind: output, shape index: {}]  }
   0x1   :  { %19 = vsyncpa [#allocation7], 0 }
   0x2   :  { %20 = vsyncpa [#allocation5], 0  ;;  %s4898_s25 = smov [#allocation6]   ;;  %s4804_s29 = scalar_lea.hbm %s5284_s7, 32768 }
   0x3   :  { %s50_s26 = sshll.u32 %s4898_s25, 4  ;;  %p4805_p0 = scmp.ne.s32.totalorder %s5284_s7, %s4804_s29  ;;  %s51_s26 = int_to_ptr.vmem [resolvable:$true] %s50_s26 }
   0x4   :  { %p4808_p1 = scmp.lt.u32.totalorder %s4804_s29, %s5284_s7 }
   0x6   :  { %p4810_p2 = pnand %p4808_p1, %p4805_p0 }
   0x8   :  { %4813 = shalt.err (!%p4810_p2)
}
   0x9   :  { %s4814_s17 = scalar_lea.vmem %s51_s26, 32768  ;;  %p4819_p4 = scmp.lt.s32.totalorder %s51_s26, %s51_s26 }
   0xa   :  { %p4815_p3 = scmp.ne.s32.totalorder %s51_s26, %s4814_s17  ;;  %p4820_p5 = scmp.lt.s32.totalorder %s4814_s17, %s4814_s17 }
   0xc   :  { %p4821_p6 = por %p4820_p5, %p4819_p4 }
   0xe   :  { %p4822_p7 = pnand %p4821_p6, %p4815_p3 }
  0x10   :  { %4825 = shalt.err (!%p4822_p7)
}
  0x11   :  { %s4899_s18 = smov 256   ;;  %s4900_s19 = smov 16  }
  0x12   :  { %56 = dma.hbm_to_vmem [thread:$0]  %s5284_s7, 32768, %s51_s26, [#allocation7], %s4899_s18, %s4899_s18, %s4900_s19  }
  0x13   :  { %s4901_s22 = smov [#allocation3]   ;;  %s4826_s27 = scalar_lea.hbm %s5282_s5, 8192 }
  0x14   :  { %s36_s23 = sshll.u32 %s4901_s22, 4  ;;  %p4827_p8 = scmp.ne.s32.totalorder %s5282_s5, %s4826_s27  ;;  %s37_s23 = int_to_ptr.vmem [resolvable:$true] %s36_s23 }
  0x15   :  { %p4830_p9 = scmp.lt.u32.totalorder %s4826_s27, %s5282_s5 }
  0x17   :  { %p4832_p10 = pnand %p4830_p9, %p4827_p8 }
  0x19   :  { %4835 = shalt.err (!%p4832_p10)
}
  0x1a   :  { %s4836_s15 = scalar_lea.vmem %s37_s23, 8192  ;;  %p4841_p12 = scmp.lt.s32.totalorder %s37_s23, %s37_s23 }
  0x1b   :  { %p4837_p11 = scmp.ne.s32.totalorder %s37_s23, %s4836_s15  ;;  %p4842_p13 = scmp.lt.s32.totalorder %s4836_s15, %s4836_s15 }
  0x1d   :  { %p4843_p0 = por %p4842_p13, %p4841_p12 }
  0x1f   :  { %p4844_p1 = pnand %p4843_p0, %p4837_p11 }
  0x21   :  { %4847 = shalt.err (!%p4844_p1)
}
  0x22   :  { %s4902_s7 = smov 512   ;;  %s4903_s26 = smov 32  }
  0x23   :  { %42 = dma.hbm_to_vmem [thread:$0]  %s5282_s5, 8192, %s37_s23, [#allocation4], %s4902_s7, %s4902_s7, %s4903_s26  }
  0x24   :  { %s4904_s18 = smov [#allocation8]   ;;  %s4848_s22 = scalar_lea.hbm %s5286_s9, 8192 }
  0x25   :  { %s64_s19 = sshll.u32 %s4904_s18, 4  ;;  %p4849_p2 = scmp.ne.s32.totalorder %s5286_s9, %s4848_s22  ;;  %s65_s19 = int_to_ptr.vmem [resolvable:$true] %s64_s19 }
  0x26   :  { %p4852_p3 = scmp.lt.u32.totalorder %s4848_s22, %s5286_s9 }
  0x28   :  { %p4854_p4 = pnand %p4852_p3, %p4849_p2 }
  0x2a   :  { %4857 = shalt.err (!%p4854_p4)
}
  0x2b   :  { %s4858_s29 = scalar_lea.vmem %s65_s19, 8192  ;;  %p4863_p6 = scmp.lt.s32.totalorder %s65_s19, %s65_s19 }
  0x2c   :  { %p4859_p5 = scmp.ne.s32.totalorder %s65_s19, %s4858_s29  ;;  %p4864_p7 = scmp.lt.s32.totalorder %s4858_s29, %s4858_s29 }
  0x2e   :  { %p4865_p8 = por %p4864_p7, %p4863_p6 }
  0x30   :  { %p4866_p9 = pnand %p4865_p8, %p4859_p5 }
  0x32   :  { %4869 = shalt.err (!%p4866_p9)
}
  0x33   :  { %s4905_s5 = smov 128   ;;  %s4906_s23 = smov 8  }
  0x34   :  { %70 = dma.hbm_to_vmem [thread:$0]  %s5286_s9, 8192, %s65_s19, [#allocation7], %s4905_s5, %s4905_s5, %s4906_s23  }
  0x35   :  { %4892 = dma.done.wait [#allocation4], 8192  }
  0x36   :  { %4893 = vsyncadd [#allocation4], 4294959104 }
  0x37   :  { %4894 = dma.done.wait [#allocation7], 40960  }
  0x38   :  { %4895 = vsyncadd [#allocation7], 4294926336  ;;  %vm114_vm0 = vcmask 1040384   ;;  %vm115_vm1 = vcmask 1041408   ;;  %v4907_v0 = vmov 65535   ;;  %v93_v4 = vld [vmem:[%s5277_s0] sm:$0xff] }
  0x39   :  { %v116_v1 = vsel %vm114_vm0, 4294967295, %v4907_v0  ;;  %v99_v3 = vld [vmem:[%s5278_s1] sm:$0x3]  ;;  %v94_v5 = vld [vmem:[%s5277_s0 + $0x8] sm:$0xff]  ;;  %vm107_vm2 = vcmask 23552   ;;  %v95_v8 = vld [vmem:[%s5277_s0 + $0x10] sm:$0xff] }
  0x3a   :  { %v117_v2 = vsel %vm115_vm1, %v116_v1, 0  ;;  %v97_v7 = vpack.c.bf16 %v94_v5, %v93_v4  ;;  %v96_v9 = vld [vmem:[%s5277_s0 + $0x18] sm:$0xff]  ;;  %v4304_v10 = vld [vmem:[%s5280_s3] sm:$0xff]   ;;  %v4305_v12 = vld [vmem:[%s5280_s3 + $0x8] sm:$0xff]   ;;  %vm215_vm3 = vcmask 523264   ;;  %vm1076_vm4 = vcmask 1041409  }
  0x3b   :  { %v119_v6 = vand.u32 %v117_v2, %v99_v3  ;;  %v98_v11 = vpack.c.bf16 %v96_v9, %v95_v8  ;;  %v4306_v13 = vld [vmem:[%s5280_s3 + $0x10] sm:$0xff]   ;;  %v4307_v14 = vld [vmem:[%s5280_s3 + $0x18] sm:$0xff]   ;;  %v5044_v15 = vld [vmem:[#allocation3] sm:$0xff]  ;;  %vm1078_vm5 = vcmask 1043459   ;;  %vm1080_vm6 = vcmask 1045509  }
  0x3c   :  { %4241 = vmatprep.mubr.msk.bf16.mxu1 %vm107_vm2, %v97_v7  ;;  %v5046_v16 = vld [vmem:[#allocation3 + $0x20] sm:$0xff]  ;;  %v279_v19 = vld [vmem:[#allocation3 + $0x10] sm:$0xff]  ;;  %vm1082_vm7 = vcmask 1047559   ;;  %vm3779_vm8 = vcmask 66560  }
  0x3d   :  { %4239 = vmatprep.subr.bf16.mxu1 %v119_v6  ;;  %v3807_v17 = vcombine.low %v5044_v15, %v5046_v16  ;;  %v3808_v18 = vcombine.high %v5044_v15, %v5046_v16  ;;  %v283_v20 = vld [vmem:[#allocation3 + $0x30] sm:$0xff]  ;;  %v3797_v43 = vld [vmem:[%s5279_s2] ss:$0 sm:$0xff] }
  0x3e   :  { %4240 = vmatpush3.bf16.msra.mxu1 %v119_v6  ;;  %v3812_v21 = vcombine.high %v279_v19, %v283_v20  ;;  %v3811_v22 = vcombine.low %v279_v19, %v283_v20  ;;  %v287_v23 = vld [vmem:[#allocation3 + $0x50] sm:$0xff]  ;;  %v285_v56 = vld [vmem:[#allocation3 + $0x40] sm:$0xff] }
  0x3f   :  { %4245 = vmatprep.subr.bf16.mxu1 %v4304_v10  ;;  %v291_v24 = vld [vmem:[#allocation3 + $0x70] sm:$0xff]  ;;  %v289_v57 = vld [vmem:[#allocation3 + $0x60] sm:$0xff] }
  0x40   :  { %767 = vmatprep.subr.bf16.mxu0 %v3812_v21  ;;  %v3820_v25 = vcombine.high %v287_v23, %v291_v24  ;;  %v3819_v26 = vcombine.low %v287_v23, %v291_v24  ;;  %v295_v27 = vld [vmem:[#allocation3 + $0x90] sm:$0xff]  ;;  %v3816_v60 = vcombine.high %v285_v56, %v289_v57  ;;  %v293_v61 = vld [vmem:[#allocation3 + $0x80] sm:$0xff]  ;;  %v3815_v63 = vcombine.low %v285_v56, %v289_v57  ;;  %v302_v57 = vld [vmem:[#allocation3 + $0xc8] sm:$0xff] }
  0x41   :  { %4242 = vmatmul.mubr.msk.bf16.vlgmr.msra.gmra.mrb[0].mxu1 %vm107_vm2, %v98_v11  ;;  %768 = vmatpush1.bf16.msra.mxu0 %v3811_v22  ;;  %v299_v28 = vld [vmem:[#allocation3 + $0xb0] sm:$0xff]  ;;  %v297_v62 = vld [vmem:[#allocation3 + $0xa0] sm:$0xff] }
  0x42   :  { %4246 = vmatpush3.bf16.msra.mxu1 %v4304_v10  ;;  %769 = vmatprep.subr.bf16.mxu0 %v3820_v25  ;;  %v3828_v29 = vcombine.high %v295_v27, %v299_v28  ;;  %v3827_v30 = vcombine.low %v295_v27, %v299_v28  ;;  %v303_v31 = vld [vmem:[#allocation3 + $0xd0] sm:$0xff]  ;;  %v3824_v0 = vcombine.high %v293_v61, %v297_v62  ;;  %v301_v1 = vld [vmem:[#allocation3 + $0xc0] sm:$0xff] }
  0x43   :  { %4247 = vmatprep.subr.bf16.mxu1 %v4305_v12  ;;  %v307_v32 = vld [vmem:[#allocation3 + $0xf0] sm:$0xff]  ;;  %v305_v2 = vld [vmem:[#allocation3 + $0xe0] sm:$0xff]  ;;  %v3823_v3 = vcombine.low %v293_v61, %v297_v62  ;;  %v310_v61 = vld [vmem:[#allocation3 + $0x108] sm:$0xff] }
  0x44   :  { %v3836_v33 = vcombine.high %v303_v31, %v307_v32  ;;  %v3835_v34 = vcombine.low %v303_v31, %v307_v32  ;;  %v311_v35 = vld [vmem:[#allocation3 + $0x110] sm:$0xff]  ;;  %v3832_v4 = vcombine.high %v301_v1, %v305_v2  ;;  %v309_v5 = vld [vmem:[#allocation3 + $0x100] sm:$0xff]  ;;  %v3831_v7 = vcombine.low %v301_v1, %v305_v2  ;;  %v282_v31 = vld [vmem:[#allocation3 + $0x28] sm:$0xff] }
  0x45   :  { %770 = vmatpush1.bf16.msra.mxu0 %v3819_v26  ;;  %v315_v36 = vld [vmem:[#allocation3 + $0x130] sm:$0xff]  ;;  %v313_v6 = vld [vmem:[#allocation3 + $0x120] sm:$0xff]  ;;  %v314_v62 = vld [vmem:[#allocation3 + $0x128] sm:$0xff] }
  0x46   :  { %4248 = vmatpush3.bf16.msra.mxu1 %v4305_v12  ;;  %771 = vmatprep.subr.bf16.mxu0 %v3828_v29  ;;  %v3844_v37 = vcombine.high %v311_v35, %v315_v36  ;;  %v3843_v38 = vcombine.low %v311_v35, %v315_v36  ;;  %v319_v39 = vld [vmem:[#allocation3 + $0x150] sm:$0xff]  ;;  %v3840_v8 = vcombine.high %v309_v5, %v313_v6  ;;  %v317_v9 = vld [vmem:[#allocation3 + $0x140] sm:$0xff]  ;;  %v318_v1 = vld [vmem:[#allocation3 + $0x148] sm:$0xff] }
  0x47   :  { %4249 = vmatprep.subr.bf16.mxu1 %v4306_v13  ;;  %v323_v40 = vld [vmem:[#allocation3 + $0x170] sm:$0xff]  ;;  %v321_v10 = vld [vmem:[#allocation3 + $0x160] sm:$0xff]  ;;  %v3839_v11 = vcombine.low %v309_v5, %v313_v6  ;;  %v322_v2 = vld [vmem:[#allocation3 + $0x168] sm:$0xff] }
  0x48   :  { %v3852_v41 = vcombine.high %v319_v39, %v323_v40  ;;  %v3851_v42 = vcombine.low %v319_v39, %v323_v40  ;;  %v3848_v12 = vcombine.high %v317_v9, %v321_v10  ;;  %v329_v15 = vld [vmem:[#allocation3 + $0x1a0] sm:$0xff]  ;;  %v335_v25 = vld [vmem:[#allocation3 + $0x1d0] sm:$0xff]  ;;  %v326_v5 = vld [vmem:[#allocation3 + $0x188] sm:$0xff] }
  0x49   :  { %772 = vmatpush1.bf16.msra.mxu0 %v3827_v30  ;;  %v333_v22 = vld [vmem:[#allocation3 + $0x1c0] sm:$0xff]  ;;  %v339_v26 = vld [vmem:[#allocation3 + $0x1f0] sm:$0xff]  ;;  %v278_v30 = vld [vmem:[#allocation3 + $0x8] sm:$0xff] }
  0x4a   :  { %4250 = vmatpush3.bf16.msra.mxu1 %v4306_v13  ;;  %773 = vmatprep.subr.bf16.mxu0 %v3836_v33  ;;  %v3847_v13 = vcombine.low %v317_v9, %v321_v10  ;;  %v337_v23 = vld [vmem:[#allocation3 + $0x1e0] sm:$0xff]  ;;  %v3868_v28 = vcombine.high %v335_v25, %v339_v26  ;;  %v3867_v29 = vcombine.low %v335_v25, %v339_v26  ;;  %v330_v6 = vld [vmem:[#allocation3 + $0x1a8] sm:$0xff]  ;;  %v304_v25 = vld [vmem:[#allocation3 + $0xd8] sm:$0xff] }
  0x4b   :  { %4251 = vmatprep.subr.bf16.mxu1 %v4307_v14  ;;  %v3864_v24 = vcombine.high %v333_v22, %v337_v23  ;;  %v3863_v27 = vcombine.low %v333_v22, %v337_v23  ;;  %v3810_v32 = vcombine.high %v278_v30, %v282_v31  ;;  %v3809_v33 = vcombine.low %v278_v30, %v282_v31  ;;  %v3800_v35 = vld [vmem:[%s5281_s4] ss:$0 sm:$0xff]  ;;  %v334_v9 = vld [vmem:[#allocation3 + $0x1c8] sm:$0xff]  ;;  %v300_v22 = vld [vmem:[#allocation3 + $0xb8] sm:$0xff] }
  0x4c   :  { %v338_v10 = vld [vmem:[#allocation3 + $0x1e8] sm:$0xff]  ;;  %v308_v26 = vld [vmem:[#allocation3 + $0xf8] sm:$0xff] }
  0x4d   :  { %774 = vmatpush1.bf16.msra.mxu0 %v3835_v34  ;;  %v4908_v34 = vmov 0   ;;  %v316_v30 = vld [vmem:[#allocation3 + $0x138] sm:$0xff]  ;;  %v3837_v31 = vcombine.low %v304_v25, %v308_v26 }
  0x4e   :  { %4252 = vmatpush3.bf16.msra.mxu1 %v4307_v14  ;;  %775 = vmatprep.subr.bf16.mxu0 %v3844_v37  ;;  %v325_v14 = vld [vmem:[#allocation3 + $0x180] sm:$0xff] }
  0x4f   :  { %661 = vmatprep.subr.bf16.mxu1 %v3808_v18  ;;  %v3856_v16 = vcombine.high %v325_v14, %v329_v15  ;;  %v331_v18 = vld [vmem:[#allocation3 + $0x1b0] sm:$0xff]  ;;  %v3855_v19 = vcombine.low %v325_v14, %v329_v15  ;;  %799 = vmatprep.mubr.bf16.mxu0 %v4908_v34  ;;  %v284_v14 = vld [vmem:[#allocation3 + $0x38] sm:$0xff]  ;;  %v3865_v15 = vcombine.low %v334_v9, %v338_v10 }
  0x51   :  { %776 = vmatpush1.bf16.msra.mxu0 %v3843_v38 }
  0x52   :  { %777 = vmatprep.subr.bf16.mxu0 %v3852_v41 }
  0x55   :  { %778 = vmatpush1.bf16.msra.mxu0 %v3851_v42 }
 0x114   :  { %v4243_v44 = vpop.f32.mrb[0].mxu1 }
 0x115   :  { %v164_v45 = vadd.f32 %v4243_v44, %v3797_v43  ;;  %v155_v46 = vpop.f32.mrb[1].mxu1 }
 0x116   :  { %v156_v47 = vadd.f32 %v3797_v43, %v155_v46  ;;  %v4244_v48 = vpop.f32.mrb[2].mxu1  ;;  %v286_v46 = vld [vmem:[#allocation3 + $0x48] sm:$0xff] }
 0x117   :  { %v167_v49 = vadd.f32 %v4244_v48, %v3797_v43  ;;  %v158_v50 = vpop.f32.mrb[3].mxu1  ;;  %v172_v52 = vmax.f32 %v164_v45, 0.0 }
 0x118   :  { %v159_v51 = vadd.f32 %v3797_v43, %v158_v50  ;;  %v170_v54 = vmax.f32 %v156_v47, 0.0  ;;  %v290_v47 = vld [vmem:[#allocation3 + $0x68] sm:$0xff] }
 0x119   :  { %v173_v53 = vmax.f32 %v167_v49, 0.0 }
 0x11a   :  { %v171_v55 = vmax.f32 %v159_v51, 0.0 }
 0x11b   :  { %v175_v58 = vpack.c.bf16 %v173_v53, %v172_v52  ;;  %v3818_v52 = vcombine.high %v286_v46, %v290_v47  ;;  %v294_v53 = vld [vmem:[#allocation3 + $0x88] sm:$0xff] }
 0x11c   :  { %v174_v59 = vpack.c.bf16 %v171_v55, %v170_v54  ;;  %v298_v54 = vld [vmem:[#allocation3 + $0xa8] sm:$0xff]  ;;  %v3817_v55 = vcombine.low %v286_v46, %v290_v47  ;;  %v4310_v47 = vld [vmem:[#allocation6 + $0x4] ss:$16 sps:$4 sm:$0xff]  }
 0x11d   :  { %v3826_v56 = vcombine.high %v294_v53, %v298_v54 }
 0x11e   :  { %4253 = vmatprep.mubr.msk.bf16.mxu1 %vm215_vm3, %v174_v59  ;;  %v3825_v59 = vcombine.low %v294_v53, %v298_v54  ;;  %v4316_v53 = vld [vmem:[#allocation6 + $0x24] ss:$16 sps:$4 sm:$0xff]   ;;  %v4319_v54 = vld [vmem:[#allocation6 + $0x2c] ss:$16 sps:$4 sm:$0xff]  }
 0x11f   :  { %4254 = vmatmul.mubr.msk.bf16.vlgmr.msra.gmra.mrb[4].mxu1 %vm215_vm3, %v175_v58  ;;  %v306_v58 = vld [vmem:[#allocation3 + $0xe8] sm:$0xff] }
 0x120   :  { %662 = vmatpush1.bf16.msra.mxu1 %v3807_v17  ;;  %v327_v17 = vld [vmem:[#allocation3 + $0x190] sm:$0xff]  ;;  %693 = vmatprep.mubr.bf16.mxu1 %v4908_v34 }
 0x121   :  { %663 = vmatprep.subr.bf16.mxu1 %v3816_v60  ;;  %v3860_v20 = vcombine.high %v327_v17, %v331_v18  ;;  %v3859_v21 = vcombine.low %v327_v17, %v331_v18  ;;  %v3834_v60 = vcombine.high %v302_v57, %v306_v58  ;;  %v288_v17 = vld [vmem:[#allocation3 + $0x58] sm:$0xff] }
 0x122   :  { %v292_v18 = vld [vmem:[#allocation3 + $0x78] sm:$0xff] }
 0x123   :  { %779 = vmatprep.subr.bf16.mxu0 %v3860_v20  ;;  %v3822_v20 = vcombine.high %v288_v17, %v292_v18  ;;  %v3821_v23 = vcombine.low %v288_v17, %v292_v18  ;;  %v4359_v17 = vld [vmem:[#allocation6 + $0x108] ss:$16 sps:$4 sm:$0xff]   ;;  %v4364_v18 = vld [vmem:[#allocation6 + $0x124] ss:$16 sps:$4 sm:$0xff]  }
 0x124   :  { %664 = vmatpush1.bf16.msra.mxu1 %v3815_v63  ;;  %780 = vmatpush1.bf16.msra.mxu0 %v3859_v21  ;;  %v3833_v63 = vcombine.low %v302_v57, %v306_v58  ;;  %v296_v21 = vld [vmem:[#allocation3 + $0x98] sm:$0xff]  ;;  %v4320_v57 = vld [vmem:[#allocation6 + $0x40] ss:$16 sps:$4 sm:$0xff]   ;;  %v4328_v58 = vld [vmem:[#allocation6 + $0x64] ss:$16 sps:$4 sm:$0xff]  }
 0x125   :  { %665 = vmatprep.subr.bf16.mxu1 %v3824_v0  ;;  %781 = vmatprep.subr.bf16.mxu0 %v3868_v28  ;;  %v3842_v0 = vcombine.high %v310_v61, %v314_v62  ;;  %v3838_v28 = vcombine.high %v304_v25, %v308_v26  ;;  %v4371_v25 = vld [vmem:[#allocation6 + $0x148] ss:$16 sps:$4 sm:$0xff]   ;;  %v4376_v26 = vld [vmem:[#allocation6 + $0x164] ss:$16 sps:$4 sm:$0xff]  }
 0x128   :  { %666 = vmatpush1.bf16.msra.mxu1 %v3823_v3  ;;  %782 = vmatpush1.bf16.msra.mxu0 %v3867_v29  ;;  %v3841_v3 = vcombine.low %v310_v61, %v314_v62  ;;  %v312_v29 = vld [vmem:[#allocation3 + $0x118] sm:$0xff]  ;;  %v4334_v62 = vld [vmem:[#allocation6 + $0x84] ss:$16 sps:$4 sm:$0xff]  }
 0x129   :  { %667 = vmatprep.subr.bf16.mxu1 %v3832_v4  ;;  %v3850_v4 = vcombine.high %v318_v1, %v322_v2  ;;  %2786 = vmatprep.subr.bf16.mxu0 %v4310_v47  ;;  %v4329_v61 = vld [vmem:[#allocation6 + $0x68] ss:$16 sps:$4 sm:$0xff]   ;;  %v4406_v47 = vld [vmem:[#allocation6 + $0x204] ss:$16 sps:$4 sm:$0xff]  }
 0x12c   :  { %668 = vmatpush1.bf16.msra.mxu1 %v3831_v7  ;;  %v3849_v7 = vcombine.low %v318_v1, %v322_v2  ;;  %v4335_v1 = vld [vmem:[#allocation6 + $0x88] ss:$16 sps:$4 sm:$0xff]   ;;  %v4340_v2 = vld [vmem:[#allocation6 + $0xa4] ss:$16 sps:$4 sm:$0xff]  }
 0x12d   :  { %669 = vmatprep.subr.bf16.mxu1 %v3840_v8  ;;  %v3858_v8 = vcombine.high %v326_v5, %v330_v6 }
 0x130   :  { %670 = vmatpush1.bf16.msra.mxu1 %v3839_v11  ;;  %v3857_v11 = vcombine.low %v326_v5, %v330_v6  ;;  %v4341_v5 = vld [vmem:[#allocation6 + $0xa8] ss:$16 sps:$4 sm:$0xff]   ;;  %v4346_v6 = vld [vmem:[#allocation6 + $0xc4] ss:$16 sps:$4 sm:$0xff]  }
 0x131   :  { %671 = vmatprep.subr.bf16.mxu1 %v3848_v12  ;;  %v3866_v12 = vcombine.high %v334_v9, %v338_v10  ;;  %v4347_v9 = vld [vmem:[#allocation6 + $0xc8] ss:$16 sps:$4 sm:$0xff]   ;;  %v4352_v10 = vld [vmem:[#allocation6 + $0xe4] ss:$16 sps:$4 sm:$0xff]  }
 0x134   :  { %672 = vmatpush1.bf16.msra.mxu1 %v3847_v13  ;;  %v280_v13 = vld [vmem:[#allocation3 + $0x18] sm:$0xff] }
 0x135   :  { %673 = vmatprep.subr.bf16.mxu1 %v3856_v16  ;;  %v3814_v16 = vcombine.high %v280_v13, %v284_v14 }
 0x138   :  { %674 = vmatpush1.bf16.msra.mxu1 %v3855_v19  ;;  %v3813_v19 = vcombine.low %v280_v13, %v284_v14  ;;  %v4353_v13 = vld [vmem:[#allocation6 + $0xe8] ss:$16 sps:$4 sm:$0xff]   ;;  %v4358_v14 = vld [vmem:[#allocation6 + $0x104] ss:$16 sps:$4 sm:$0xff]  }
 0x139   :  { %675 = vmatprep.subr.bf16.mxu1 %v3864_v24  ;;  %v3830_v24 = vcombine.high %v296_v21, %v300_v22 }
 0x13c   :  { %676 = vmatpush1.bf16.msra.mxu1 %v3863_v27  ;;  %v3829_v27 = vcombine.low %v296_v21, %v300_v22  ;;  %v4365_v21 = vld [vmem:[#allocation6 + $0x128] ss:$16 sps:$4 sm:$0xff]   ;;  %v4370_v22 = vld [vmem:[#allocation6 + $0x144] ss:$16 sps:$4 sm:$0xff]  }
 0x13d   :  { %714 = vmatprep.subr.bf16.mxu1 %v3810_v32  ;;  %v3846_v32 = vcombine.high %v312_v29, %v316_v30 }
 0x1f2   :  { %v4255_v36 = vpop.f32.mrb[4].mxu1 }
 0x1f3   :  { %v265_v37 = vadd.f32 %v4255_v36, %v3800_v35  ;;  %v256_v38 = vpop.f32.mrb[5].mxu1  ;;  %v3845_v36 = vcombine.low %v312_v29, %v316_v30  ;;  %v4377_v29 = vld [vmem:[#allocation6 + $0x168] ss:$16 sps:$4 sm:$0xff]   ;;  %v4382_v30 = vld [vmem:[#allocation6 + $0x184] ss:$16 sps:$4 sm:$0xff]  }
 0x1f4   :  { %v257_v39 = vadd.f32 %v3800_v35, %v256_v38  ;;  %v4256_v40 = vpop.f32.mrb[6].mxu1  ;;  %v328_v38 = vld [vmem:[#allocation3 + $0x198] sm:$0xff] }
 0x1f5   :  { %v268_v41 = vadd.f32 %v4256_v40, %v3800_v35  ;;  %v259_v42 = vpop.f32.mrb[7].mxu1  ;;  %v273_v44 = vmax.f32 %v265_v37, 0.0 }
 0x1f6   :  { %v260_v43 = vadd.f32 %v3800_v35, %v259_v42  ;;  %v271_v48 = vmax.f32 %v257_v39, 0.0  ;;  %v324_v35 = vld [vmem:[#allocation3 + $0x178] sm:$0xff] }
 0x1f7   :  { %v274_v45 = vmax.f32 %v268_v41, 0.0  ;;  %v332_v39 = vld [vmem:[#allocation3 + $0x1b8] sm:$0xff] }
 0x1f8   :  { %v272_v49 = vmax.f32 %v260_v43, 0.0  ;;  %v3862_v41 = vcombine.high %v328_v38, %v332_v39  ;;  %v336_v42 = vld [vmem:[#allocation3 + $0x1d8] sm:$0xff] }
 0x1f9   :  { %v5060_v50 = vpack.c.bf16 %v274_v45, %v273_v44  ;;  %v340_v43 = vld [vmem:[#allocation3 + $0x1f8] sm:$0xff]  ;;  %v3861_v44 = vcombine.low %v328_v38, %v332_v39  ;;  %v4394_v39 = vld [vmem:[#allocation6 + $0x1c4] ss:$16 sps:$4 sm:$0xff]  }
 0x1fa   :  { %v5062_v51 = vpack.c.bf16 %v272_v49, %v271_v48  ;;  %v3870_v45 = vcombine.high %v336_v42, %v340_v43  ;;  %v3869_v46 = vcombine.low %v336_v42, %v340_v43  ;;  %v4313_v48 = vld [vmem:[#allocation6 + $0xc] ss:$16 sps:$4 sm:$0xff]   ;;  %v4308_v49 = vld [vmem:[#allocation6] ss:$16 sps:$4 sm:$0xff]   ;;  %v4389_v38 = vld [vmem:[#allocation6 + $0x1a8] ss:$16 sps:$4 sm:$0xff]  }
 0x1fb   :  { %v4395_v42 = vld [vmem:[#allocation6 + $0x1c8] ss:$16 sps:$4 sm:$0xff]   ;;  %v4400_v43 = vld [vmem:[#allocation6 + $0x1e4] ss:$16 sps:$4 sm:$0xff]  }
 0x1fc   :  { %694 = vmatmul.mubr.bf16.vlgmr.msra.gmra.mrb[8].mxu1 %v5062_v51  ;;  %800 = vmatmul.mubr.bf16.vlgmr.msra.gmra.mrb[0].mxu0 %v5062_v51 }
 0x1fd   :  { %715 = vmatpush1.bf16.msra.mxu1 %v3809_v33  ;;  %703 = vmatprep.mubr.bf16.mxu1 %v4908_v34  ;;  %v320_v33 = vld [vmem:[#allocation3 + $0x158] sm:$0xff] }
 0x1fe   :  { %716 = vmatprep.subr.bf16.mxu1 %v3818_v52  ;;  %809 = vmatprep.mubr.bf16.mxu0 %v4908_v34  ;;  %v3854_v37 = vcombine.high %v320_v33, %v324_v35  ;;  %v3853_v40 = vcombine.low %v320_v33, %v324_v35  ;;  %v4311_v52 = vld [vmem:[#allocation6 + $0x8] ss:$16 sps:$4 sm:$0xff]   ;;  %v4388_v35 = vld [vmem:[#allocation6 + $0x1a4] ss:$16 sps:$4 sm:$0xff]  }
 0x1ff   :  { %2787 = vmatpush1.bf16.msra.mxu0 %v4308_v49  ;;  %v4383_v33 = vld [vmem:[#allocation6 + $0x188] ss:$16 sps:$4 sm:$0xff]  }
 0x200   :  { %2788 = vmatprep.subr.bf16.mxu0 %v4316_v53 }
 0x201   :  { %717 = vmatpush1.bf16.msra.mxu1 %v3817_v55  ;;  %v4314_v55 = vld [vmem:[#allocation6 + $0x20] ss:$16 sps:$4 sm:$0xff]  }
 0x202   :  { %718 = vmatprep.subr.bf16.mxu1 %v3826_v56  ;;  %v4317_v56 = vld [vmem:[#allocation6 + $0x28] ss:$16 sps:$4 sm:$0xff]  }
 0x203   :  { %2789 = vmatpush1.bf16.msra.mxu0 %v4314_v55 }
 0x204   :  { %704 = vmatmul.mubr.bf16.gmra.mrb[12].mxu1 %v5060_v50  ;;  %810 = vmatmul.mubr.bf16.gmra.mrb[4].mxu0 %v5060_v50 }
 0x205   :  { %719 = vmatpush1.bf16.msra.mxu1 %v3825_v59  ;;  %746 = vmatprep.mubr.bf16.mxu1 %v4908_v34  ;;  %v4331_v59 = vld [vmem:[#allocation6 + $0x6c] ss:$16 sps:$4 sm:$0xff]  }
 0x206   :  { %720 = vmatprep.subr.bf16.mxu1 %v3834_v60  ;;  %v4326_v60 = vld [vmem:[#allocation6 + $0x60] ss:$16 sps:$4 sm:$0xff]  }
 0x209   :  { %721 = vmatpush1.bf16.msra.mxu1 %v3833_v63  ;;  %v4337_v63 = vld [vmem:[#allocation6 + $0x8c] ss:$16 sps:$4 sm:$0xff]  }
 0x20a   :  { %722 = vmatprep.subr.bf16.mxu1 %v3842_v0  ;;  %v4332_v0 = vld [vmem:[#allocation6 + $0x80] ss:$16 sps:$4 sm:$0xff]  }
 0x20d   :  { %723 = vmatpush1.bf16.msra.mxu1 %v3841_v3  ;;  %v4343_v3 = vld [vmem:[#allocation6 + $0xac] ss:$16 sps:$4 sm:$0xff]  }
 0x20e   :  { %724 = vmatprep.subr.bf16.mxu1 %v3850_v4  ;;  %v4338_v4 = vld [vmem:[#allocation6 + $0xa0] ss:$16 sps:$4 sm:$0xff]  }
 0x211   :  { %725 = vmatpush1.bf16.msra.mxu1 %v3849_v7  ;;  %v4349_v7 = vld [vmem:[#allocation6 + $0xcc] ss:$16 sps:$4 sm:$0xff]  }
 0x212   :  { %726 = vmatprep.subr.bf16.mxu1 %v3858_v8  ;;  %v4344_v8 = vld [vmem:[#allocation6 + $0xc0] ss:$16 sps:$4 sm:$0xff]  }
 0x215   :  { %727 = vmatpush1.bf16.msra.mxu1 %v3857_v11  ;;  %v4355_v11 = vld [vmem:[#allocation6 + $0xec] ss:$16 sps:$4 sm:$0xff]  }
 0x216   :  { %728 = vmatprep.subr.bf16.mxu1 %v3866_v12  ;;  %v4350_v12 = vld [vmem:[#allocation6 + $0xe0] ss:$16 sps:$4 sm:$0xff]  }
 0x219   :  { %729 = vmatpush1.bf16.msra.mxu1 %v3865_v15  ;;  %v4361_v15 = vld [vmem:[#allocation6 + $0x10c] ss:$16 sps:$4 sm:$0xff]  }
 0x21a   :  { %820 = vmatprep.subr.bf16.mxu1 %v3814_v16  ;;  %v4356_v16 = vld [vmem:[#allocation6 + $0x100] ss:$16 sps:$4 sm:$0xff]  }
 0x21c   :  { %747 = vmatmul.mubr.bf16.vlgmr.msra.gmra.mrb[16].mxu1 %v5062_v51 }
 0x21d   :  { %821 = vmatpush1.bf16.msra.mxu1 %v3813_v19  ;;  %756 = vmatprep.mubr.bf16.mxu1 %v4908_v34  ;;  %v4367_v19 = vld [vmem:[#allocation6 + $0x12c] ss:$16 sps:$4 sm:$0xff]  }
 0x21e   :  { %822 = vmatprep.subr.bf16.mxu1 %v3822_v20  ;;  %v4362_v20 = vld [vmem:[#allocation6 + $0x120] ss:$16 sps:$4 sm:$0xff]  }
 0x221   :  { %823 = vmatpush1.bf16.msra.mxu1 %v3821_v23  ;;  %v4373_v23 = vld [vmem:[#allocation6 + $0x14c] ss:$16 sps:$4 sm:$0xff]  }
 0x222   :  { %824 = vmatprep.subr.bf16.mxu1 %v3830_v24  ;;  %v4368_v24 = vld [vmem:[#allocation6 + $0x140] ss:$16 sps:$4 sm:$0xff]  }
 0x224   :  { %757 = vmatmul.mubr.bf16.gmra.mrb[20].mxu1 %v5060_v50 }
 0x225   :  { %825 = vmatpush1.bf16.msra.mxu1 %v3829_v27  ;;  %852 = vmatprep.mubr.bf16.mxu1 %v4908_v34  ;;  %v4379_v27 = vld [vmem:[#allocation6 + $0x16c] ss:$16 sps:$4 sm:$0xff]  }
 0x226   :  { %826 = vmatprep.subr.bf16.mxu1 %v3838_v28  ;;  %v4374_v28 = vld [vmem:[#allocation6 + $0x160] ss:$16 sps:$4 sm:$0xff]  }
 0x229   :  { %827 = vmatpush1.bf16.msra.mxu1 %v3837_v31  ;;  %v4385_v31 = vld [vmem:[#allocation6 + $0x18c] ss:$16 sps:$4 sm:$0xff]  }
 0x22a   :  { %828 = vmatprep.subr.bf16.mxu1 %v3846_v32  ;;  %v4380_v32 = vld [vmem:[#allocation6 + $0x180] ss:$16 sps:$4 sm:$0xff]  }
 0x22d   :  { %829 = vmatpush1.bf16.msra.mxu1 %v3845_v36  ;;  %v4391_v36 = vld [vmem:[#allocation6 + $0x1ac] ss:$16 sps:$4 sm:$0xff]  }
 0x22e   :  { %830 = vmatprep.subr.bf16.mxu1 %v3854_v37  ;;  %v4386_v37 = vld [vmem:[#allocation6 + $0x1a0] ss:$16 sps:$4 sm:$0xff]  }
 0x231   :  { %831 = vmatpush1.bf16.msra.mxu1 %v3853_v40  ;;  %v4397_v40 = vld [vmem:[#allocation6 + $0x1cc] ss:$16 sps:$4 sm:$0xff]  }
 0x232   :  { %832 = vmatprep.subr.bf16.mxu1 %v3862_v41  ;;  %v4392_v41 = vld [vmem:[#allocation6 + $0x1c0] ss:$16 sps:$4 sm:$0xff]  }
 0x235   :  { %833 = vmatpush1.bf16.msra.mxu1 %v3861_v44  ;;  %v4403_v44 = vld [vmem:[#allocation6 + $0x1ec] ss:$16 sps:$4 sm:$0xff]  }
 0x236   :  { %834 = vmatprep.subr.bf16.mxu1 %v3870_v45  ;;  %v4398_v45 = vld [vmem:[#allocation6 + $0x1e0] ss:$16 sps:$4 sm:$0xff]  }
 0x239   :  { %835 = vmatpush1.bf16.msra.mxu1 %v3869_v46  ;;  %v4401_v46 = vld [vmem:[#allocation6 + $0x1e8] ss:$16 sps:$4 sm:$0xff]  }
 0x23a   :  { %2950 = vmatprep.subr.bf16.mxu1 %v4313_v48  ;;  %v4409_v48 = vld [vmem:[#allocation6 + $0x20c] ss:$16 sps:$4 sm:$0xff]  }
 0x23c   :  { %853 = vmatmul.mubr.bf16.vlgmr.msra.gmra.mrb[24].mxu1 %v5062_v51  ;;  %v4322_v51 = vld [vmem:[#allocation6 + $0x44] ss:$16 sps:$4 sm:$0xff]  }
 0x23d   :  { %862 = vmatprep.mubr.bf16.mxu1 %v4908_v34  ;;  %2951 = vmatpush1.bf16.msra.mxu1 %v4311_v52  ;;  %v4325_v34 = vld [vmem:[#allocation6 + $0x4c] ss:$16 sps:$4 sm:$0xff]  }
 0x23e   :  { %2952 = vmatprep.subr.bf16.mxu1 %v4319_v54  ;;  %2790 = vmatprep.subr.bf16.mxu0 %v4322_v51 }
 0x23f   :  { %2791 = vmatpush1.bf16.msra.mxu0 %v4320_v57 }
 0x240   :  { %2792 = vmatprep.subr.bf16.mxu0 %v4328_v58 }
 0x241   :  { %2953 = vmatpush1.bf16.msra.mxu1 %v4317_v56 }
 0x242   :  { %2954 = vmatprep.subr.bf16.mxu1 %v4325_v34 }
 0x243   :  { %2793 = vmatpush1.bf16.msra.mxu0 %v4326_v60 }
 0x244   :  { %863 = vmatmul.mubr.bf16.gmra.mrb[28].mxu1 %v5060_v50  ;;  %v4323_v50 = vld [vmem:[#allocation6 + $0x48] ss:$16 sps:$4 sm:$0xff]   ;;  %2794 = vmatprep.subr.bf16.mxu0 %v4334_v62 }
 0x245   :  { %2955 = vmatpush1.bf16.msra.mxu1 %v4323_v50 }
 0x246   :  { %2956 = vmatprep.subr.bf16.mxu1 %v4331_v59 }
 0x247   :  { %2795 = vmatpush1.bf16.msra.mxu0 %v4332_v0 }
 0x248   :  { %2796 = vmatprep.subr.bf16.mxu0 %v4340_v2 }
 0x249   :  { %2957 = vmatpush1.bf16.msra.mxu1 %v4329_v61 }
 0x24a   :  { %2958 = vmatprep.subr.bf16.mxu1 %v4337_v63 }
 0x24b   :  { %2797 = vmatpush1.bf16.msra.mxu0 %v4338_v4 }
 0x24c   :  { %2798 = vmatprep.subr.bf16.mxu0 %v4346_v6 }
 0x24d   :  { %2959 = vmatpush1.bf16.msra.mxu1 %v4335_v1 }
 0x24e   :  { %2960 = vmatprep.subr.bf16.mxu1 %v4343_v3 }
 0x24f   :  { %2799 = vmatpush1.bf16.msra.mxu0 %v4344_v8 }
 0x250   :  { %2800 = vmatprep.subr.bf16.mxu0 %v4352_v10 }
 0x251   :  { %2961 = vmatpush1.bf16.msra.mxu1 %v4341_v5 }
 0x252   :  { %2962 = vmatprep.subr.bf16.mxu1 %v4349_v7 }
 0x253   :  { %2801 = vmatpush1.bf16.msra.mxu0 %v4350_v12 }
 0x254   :  { %2802 = vmatprep.subr.bf16.mxu0 %v4358_v14 }
 0x255   :  { %2963 = vmatpush1.bf16.msra.mxu1 %v4347_v9 }
 0x256   :  { %2964 = vmatprep.subr.bf16.mxu1 %v4355_v11 }
 0x257   :  { %2803 = vmatpush1.bf16.msra.mxu0 %v4356_v16 }
 0x258   :  { %2804 = vmatprep.subr.bf16.mxu0 %v4364_v18 }
 0x259   :  { %2965 = vmatpush1.bf16.msra.mxu1 %v4353_v13 }
 0x25a   :  { %2966 = vmatprep.subr.bf16.mxu1 %v4361_v15 }
 0x25b   :  { %2805 = vmatpush1.bf16.msra.mxu0 %v4362_v20 }
 0x25c   :  { %2806 = vmatprep.subr.bf16.mxu0 %v4370_v22 }
 0x25d   :  { %2967 = vmatpush1.bf16.msra.mxu1 %v4359_v17 }
 0x25e   :  { %2968 = vmatprep.subr.bf16.mxu1 %v4367_v19 }
 0x25f   :  { %2807 = vmatpush1.bf16.msra.mxu0 %v4368_v24 }
 0x260   :  { %2808 = vmatprep.subr.bf16.mxu0 %v4376_v26 }
 0x261   :  { %2969 = vmatpush1.bf16.msra.mxu1 %v4365_v21 }
 0x262   :  { %2970 = vmatprep.subr.bf16.mxu1 %v4373_v23 }
 0x263   :  { %2809 = vmatpush1.bf16.msra.mxu0 %v4374_v28 }
 0x264   :  { %2810 = vmatprep.subr.bf16.mxu0 %v4382_v30 }
 0x265   :  { %2971 = vmatpush1.bf16.msra.mxu1 %v4371_v25 }
 0x266   :  { %2972 = vmatprep.subr.bf16.mxu1 %v4379_v27 }
 0x267   :  { %2811 = vmatpush1.bf16.msra.mxu0 %v4380_v32 }
 0x268   :  { %2812 = vmatprep.subr.bf16.mxu0 %v4388_v35 }
 0x269   :  { %2973 = vmatpush1.bf16.msra.mxu1 %v4377_v29 }
 0x26a   :  { %2974 = vmatprep.subr.bf16.mxu1 %v4385_v31 }
 0x26b   :  { %2813 = vmatpush1.bf16.msra.mxu0 %v4386_v37 }
 0x26c   :  { %2814 = vmatprep.subr.bf16.mxu0 %v4394_v39 }
 0x26d   :  { %2975 = vmatpush1.bf16.msra.mxu1 %v4383_v33 }
 0x26e   :  { %2976 = vmatprep.subr.bf16.mxu1 %v4391_v36 }
 0x26f   :  { %2815 = vmatpush1.bf16.msra.mxu0 %v4392_v41 }
 0x270   :  { %2816 = vmatprep.subr.bf16.mxu0 %v4400_v43 }
 0x271   :  { %2977 = vmatpush1.bf16.msra.mxu1 %v4389_v38 }
 0x272   :  { %2978 = vmatprep.subr.bf16.mxu1 %v4397_v40 }
 0x273   :  { %2817 = vmatpush1.bf16.msra.mxu0 %v4398_v45 }
 0x274   :  { %2827 = vmatprep.subr.bf16.mxu0 %v4406_v47 }
 0x275   :  { %2979 = vmatpush1.bf16.msra.mxu1 %v4395_v42 }
 0x276   :  { %2980 = vmatprep.subr.bf16.mxu1 %v4403_v44 }
 0x279   :  { %2981 = vmatpush1.bf16.msra.mxu1 %v4401_v46 }
 0x27a   :  { %2991 = vmatprep.subr.bf16.mxu1 %v4409_v48 }
 0x2cf   :  { %v695_v49 = vpop.f32.mrb[8].mxu1  ;;  %v801_v52 = vpop.f32.mrb[0].mxu0 }
 0x2d0   :  { %v697_v53 = vpop.f32.mrb[9].mxu1  ;;  %v803_v54 = vpop.f32.mrb[1].mxu0 }
 0x2d1   :  { %v699_v55 = vpop.f32.mrb[10].mxu1  ;;  %v805_v56 = vpop.f32.mrb[2].mxu0 }
 0x2d2   :  { %v873_v51 = vmax.f32 %v695_v49, %v699_v55  ;;  %v901_v34 = vmax.f32 %v801_v52, %v805_v56  ;;  %v701_v57 = vpop.f32.mrb[11].mxu1  ;;  %v807_v50 = vpop.f32.mrb[3].mxu0 }
 0x2d3   :  { %v880_v58 = vmax.f32 %v697_v53, %v701_v57  ;;  %v908_v59 = vmax.f32 %v803_v54, %v807_v50 }
 0x2d4   :  { %v874_v60 = vrot.slane %v873_v51, 4  ;;  %v902_v61 = vrot.slane %v901_v34, 4 }
 0x2d5   :  { %v881_v62 = vrot.slane %v880_v58, 4  ;;  %v909_v63 = vrot.slane %v908_v59, 4 }
 0x2d6   :  { %v875_v0 = vmax.f32 %v873_v51, %v874_v60  ;;  %v903_v1 = vmax.f32 %v901_v34, %v902_v61 }
 0x2d7   :  { %v882_v2 = vmax.f32 %v880_v58, %v881_v62  ;;  %v910_v3 = vmax.f32 %v908_v59, %v909_v63  ;;  %v705_v4 = vpop.f32.mrb[12].mxu1  ;;  %v811_v5 = vpop.f32.mrb[4].mxu0 }
 0x2d8   :  { %v876_v6 = vrot.slane %v875_v0, 2  ;;  %v904_v7 = vrot.slane %v903_v1, 2  ;;  %v707_v8 = vpop.f32.mrb[13].mxu1  ;;  %v813_v9 = vpop.f32.mrb[5].mxu0 }
 0x2d9   :  { %v883_v10 = vrot.slane %v882_v2, 2  ;;  %v911_v11 = vrot.slane %v910_v3, 2  ;;  %v709_v12 = vpop.f32.mrb[14].mxu1  ;;  %v815_v13 = vpop.f32.mrb[6].mxu0 }
 0x2da   :  { %v877_v14 = vmax.f32 %v875_v0, %v876_v6  ;;  %v905_v15 = vmax.f32 %v903_v1, %v904_v7  ;;  %v929_v16 = vmax.f32 %v705_v4, %v709_v12  ;;  %v957_v17 = vmax.f32 %v811_v5, %v815_v13  ;;  %v711_v18 = vpop.f32.mrb[15].mxu1  ;;  %v817_v19 = vpop.f32.mrb[7].mxu0 }
 0x2db   :  { %v884_v20 = vmax.f32 %v882_v2, %v883_v10  ;;  %v912_v21 = vmax.f32 %v910_v3, %v911_v11  ;;  %v936_v22 = vmax.f32 %v707_v8, %v711_v18  ;;  %v964_v23 = vmax.f32 %v813_v9, %v817_v19 }
 0x2dc   :  { %v878_v24 = vrot.slane %v877_v14, 1  ;;  %v906_v25 = vrot.slane %v905_v15, 1  ;;  %v930_v26 = vrot.slane %v929_v16, 4  ;;  %v958_v27 = vrot.slane %v957_v17, 4 }
 0x2dd   :  { %v885_v28 = vrot.slane %v884_v20, 1  ;;  %v913_v29 = vrot.slane %v912_v21, 1  ;;  %v937_v30 = vrot.slane %v936_v22, 4  ;;  %v965_v31 = vrot.slane %v964_v23, 4 }
 0x2de   :  { %v5078_v32 = vmax.f32 %v877_v14, %v878_v24  ;;  %v5080_v33 = vmax.f32 %v905_v15, %v906_v25  ;;  %v931_v35 = vmax.f32 %v929_v16, %v930_v26  ;;  %v959_v36 = vmax.f32 %v957_v17, %v958_v27 }
 0x2df   :  { %v5082_v37 = vmax.f32 %v884_v20, %v885_v28  ;;  %v5084_v38 = vmax.f32 %v912_v21, %v913_v29  ;;  %v938_v39 = vmax.f32 %v936_v22, %v937_v30  ;;  %v966_v40 = vmax.f32 %v964_v23, %v965_v31 }
 0x2e0   :  { %v932_v41 = vrot.slane %v931_v35, 2  ;;  %v960_v42 = vrot.slane %v959_v36, 2  ;;  %v4909_v5 = vmov 1983009808   ;;  %v1008_v7 = vlaneseq }
 0x2e1   :  { %v1003_v43 = vcombine.low %v5078_v32, %v5082_v37  ;;  %v1020_v44 = vcombine.low %v5080_v33, %v5084_v38  ;;  %v939_v45 = vrot.slane %v938_v39, 2  ;;  %v967_v46 = vrot.slane %v966_v40, 2  ;;  %v5116_v37 = vld [vmem:[%s5283_s6] sm:$0xff] }
 0x2e2   :  { %v933_v47 = vmax.f32 %v931_v35, %v932_v41  ;;  %v961_v48 = vmax.f32 %v959_v36, %v960_v42  ;;  %v1006_v6 = vunpack.c.l.s4 %v4909_v5  ;;  %v5102_v18 = vshrl.u32 %v1008_v7, 7 }
 0x2e3   :  { %v940_v49 = vmax.f32 %v938_v39, %v939_v45  ;;  %v968_v52 = vmax.f32 %v966_v40, %v967_v46 }
 0x2e4   :  { %v934_v53 = vrot.slane %v933_v47, 1  ;;  %v962_v54 = vrot.slane %v961_v48, 1  ;;  %v1007_v17 = vunpack.c.0.s8 %v1006_v6  ;;  %v5108_v31 = vsub.s32 0, %v5102_v18 }
 0x2e5   :  { %v941_v55 = vrot.slane %v940_v49, 1  ;;  %v969_v56 = vrot.slane %v968_v52, 1  ;;  %v5111_v32 = vsub.s32 1, %v5102_v18  ;;  %v1114_v39 = vsub.s32 2, %v5102_v18 }
 0x2e6   :  { %v5090_v51 = vmax.f32 %v933_v47, %v934_v53  ;;  %v5092_v34 = vmax.f32 %v961_v48, %v962_v54  ;;  %v5105_v27 = vsub.s32 %v1007_v17, %v5102_v18  ;;  %v1118_v40 = vsub.s32 3, %v5102_v18 }
 0x2e7   :  { %v5094_v57 = vmax.f32 %v940_v49, %v941_v55  ;;  %v5096_v50 = vmax.f32 %v968_v52, %v969_v56  ;;  %v1107_v48 = vrot.slane %v5116_v37, %v5108_v31  ;;  %v1111_v49 = vrot.slane %v5116_v37, %v5111_v32 }
 0x2e8   :  { %v1011_v42 = vrot.slane %v1003_v43, %v5105_v27  ;;  %v1115_v54 = vrot.slane %v5116_v37, %v1114_v39  ;;  %v1119_v43 = vrot.slane %v5116_v37, %v1118_v40 }
 0x2e9   :  { %v1037_v58 = vcombine.low %v5090_v51, %v5094_v57  ;;  %v1054_v59 = vcombine.low %v5092_v34, %v5096_v50  ;;  %v1136_v57 = vcombine.low %v1107_v48, %v1111_v49  ;;  %v4434_v34 = vld [vmem:[#allocation6 + $0x2a0] ss:$16 sps:$4 sm:$0xff]   ;;  %v4437_v50 = vld [vmem:[#allocation6 + $0x2a8] ss:$16 sps:$4 sm:$0xff]  }
 0x2ef   :  { %v748_v60 = vpop.f32.mrb[16].mxu1 }
 0x2f0   :  { %v750_v61 = vpop.f32.mrb[17].mxu1 }
 0x2f1   :  { %v752_v62 = vpop.f32.mrb[18].mxu1 }
 0x2f2   :  { %v887_v63 = vmax.f32 %v748_v60, %v752_v62  ;;  %v754_v0 = vpop.f32.mrb[19].mxu1  ;;  %v1137_v60 = vcombine.low %v1115_v54, %v1119_v43 }
 0x2f3   :  { %v894_v1 = vmax.f32 %v750_v61, %v754_v0  ;;  %v1045_v61 = vrot.slane %v1037_v58, %v5105_v27  ;;  %v1144_v0 = vrot.slane %v1136_v57, %v5105_v27 }
 0x2f4   :  { %v888_v2 = vrot.slane %v887_v63, 4 }
 0x2f5   :  { %v895_v3 = vrot.slane %v894_v1, 4 }
 0x2f6   :  { %v889_v4 = vmax.f32 %v887_v63, %v888_v2 }
 0x2f7   :  { %v896_v8 = vmax.f32 %v894_v1, %v895_v3  ;;  %v758_v9 = vpop.f32.mrb[20].mxu1  ;;  %v1151_v1 = vrot.slane %v1137_v60, %v5105_v27  ;;  %v4412_v60 = vld [vmem:[#allocation6 + $0x224] ss:$16 sps:$4 sm:$0xff]  }
 0x2f8   :  { %v890_v10 = vrot.slane %v889_v4, 2  ;;  %v760_v11 = vpop.f32.mrb[21].mxu1 }
 0x2f9   :  { %v897_v12 = vrot.slane %v896_v8, 2  ;;  %v762_v13 = vpop.f32.mrb[22].mxu1  ;;  %v1152_v7 = vcombine.low %v1144_v0, %v1151_v1  ;;  %v4410_v0 = vld [vmem:[#allocation6 + $0x220] ss:$16 sps:$4 sm:$0xff]   ;;  %v1122_v1 = vsub.s32 4, %v5102_v18 }
 0x2fa   :  { %v891_v14 = vmax.f32 %v889_v4, %v890_v10  ;;  %v943_v15 = vmax.f32 %v758_v9, %v762_v13  ;;  %v764_v16 = vpop.f32.mrb[23].mxu1 }
 0x2fb   :  { %v898_v19 = vmax.f32 %v896_v8, %v897_v12  ;;  %v950_v20 = vmax.f32 %v760_v11, %v764_v16 }
 0x2fc   :  { %v892_v21 = vrot.slane %v891_v14, 1  ;;  %v944_v22 = vrot.slane %v943_v15, 4 }
 0x2fd   :  { %v899_v23 = vrot.slane %v898_v19, 1  ;;  %v951_v24 = vrot.slane %v950_v20, 4 }
 0x2fe   :  { %v893_v25 = vmax.f32 %v891_v14, %v892_v21  ;;  %v945_v26 = vmax.f32 %v943_v15, %v944_v22 }
 0x2ff   :  { %v900_v28 = vmax.f32 %v898_v19, %v899_v23  ;;  %v952_v29 = vmax.f32 %v950_v20, %v951_v24 }
 0x300   :  { %v946_v30 = vrot.slane %v945_v26, 2 }
 0x301   :  { %v1004_v35 = vcombine.low %v893_v25, %v900_v28  ;;  %v953_v36 = vrot.slane %v952_v29, 2 }
 0x302   :  { %v947_v41 = vmax.f32 %v945_v26, %v946_v30 }
 0x303   :  { %v1018_v45 = vrot.slane %v1004_v35, %v5105_v27  ;;  %v954_v46 = vmax.f32 %v952_v29, %v953_v36 }
 0x304   :  { %v948_v47 = vrot.slane %v947_v41, 1 }
 0x305   :  { %v1019_v52 = vcombine.low %v1011_v42, %v1018_v45  ;;  %v955_v53 = vrot.slane %v954_v46, 1 }
 0x306   :  { %v949_v55 = vmax.f32 %v947_v41, %v948_v47 }
 0x307   :  { %v956_v56 = vmax.f32 %v954_v46, %v955_v53  ;;  %v4407_v53 = vld [vmem:[#allocation6 + $0x208] ss:$16 sps:$4 sm:$0xff]  }
 0x309   :  { %v1038_v51 = vcombine.low %v949_v55, %v956_v56 }
 0x30b   :  { %v1052_v62 = vrot.slane %v1038_v51, %v5105_v27 }
 0x30d   :  { %v1053_v63 = vcombine.low %v1045_v61, %v1052_v62  ;;  %v4415_v61 = vld [vmem:[#allocation6 + $0x22c] ss:$16 sps:$4 sm:$0xff]  }
 0x30f   :  { %v1075_v2 = vrot.slane %v1053_v63, 7  ;;  %v854_v3 = vpop.f32.mrb[24].mxu1 }
 0x310   :  { %v856_v4 = vpop.f32.mrb[25].mxu1 }
 0x311   :  { %v858_v5 = vpop.f32.mrb[26].mxu1  ;;  %v1077_v6 = vsel %vm1076_vm4, %v1075_v2, %v1019_v52  ;;  %v4404_v52 = vld [vmem:[#allocation6 + $0x200] ss:$16 sps:$4 sm:$0xff]  }
 0x312   :  { %v915_v8 = vmax.f32 %v854_v3, %v858_v5  ;;  %v860_v58 = vpop.f32.mrb[27].mxu1  ;;  %v1079_v9 = vsel %vm1078_vm5, %v1075_v2, %v1077_v6  ;;  %v4413_v5 = vld [vmem:[#allocation6 + $0x228] ss:$16 sps:$4 sm:$0xff]   ;;  %v1130_v6 = vsub.s32 6, %v5102_v18 }
 0x313   :  { %v922_v10 = vmax.f32 %v856_v4, %v860_v58  ;;  %v1081_v11 = vsel %vm1080_vm6, %v1075_v2, %v1079_v9  ;;  %v4418_v58 = vld [vmem:[#allocation6 + $0x244] ss:$16 sps:$4 sm:$0xff]   ;;  %v4421_v9 = vld [vmem:[#allocation6 + $0x24c] ss:$16 sps:$4 sm:$0xff]  }
 0x314   :  { %v916_v12 = vrot.slane %v915_v8, 4  ;;  %v1083_v13 = vsel %vm1082_vm7, %v1075_v2, %v1081_v11  ;;  %v1126_v2 = vsub.s32 5, %v5102_v18 }
 0x315   :  { %v923_v14 = vrot.slane %v922_v10, 4  ;;  %v1172_v15 = vadd.f32 %v1152_v7, %v1083_v13  ;;  %v1134_v7 = vsub.s32 7, %v5102_v18  ;;  %v4800_v18 = vld [vmem:[%s5288_s11 + $0x70] sm:$0xff]  }
 0x316   :  { %v917_v16 = vmax.f32 %v915_v8, %v916_v12 }
 0x317   :  { %v924_v17 = vmax.f32 %v922_v10, %v923_v14  ;;  %v864_v19 = vpop.f32.mrb[28].mxu1  ;;  %v1174_v20 = vmax.f32 %v1172_v15, 0.0  ;;  %v1028_v10 = vrot.slane %v1020_v44, %v5105_v27  ;;  %v1123_v14 = vrot.slane %v5116_v37, %v1122_v1  ;;  %v4424_v44 = vld [vmem:[#allocation6 + $0x264] ss:$16 sps:$4 sm:$0xff]   ;;  %v4446_v1 = vld [vmem:[#allocation6 + $0x2e0] ss:$16 sps:$4 sm:$0xff]  }
 0x318   :  { %v918_v21 = vrot.slane %v917_v16, 2  ;;  %v866_v22 = vpop.f32.mrb[29].mxu1  ;;  %v1127_v15 = vrot.slane %v5116_v37, %v1126_v2  ;;  %v1135_v33 = vrot.slane %v5116_v37, %v1134_v7  ;;  %v4449_v2 = vld [vmem:[#allocation6 + $0x2e8] ss:$16 sps:$4 sm:$0xff]   ;;  %v4460_v7 = vld [vmem:[#allocation6 + $0x324] ss:$16 sps:$4 sm:$0xff]  }
 0x319   :  { %v925_v23 = vrot.slane %v924_v17, 2  ;;  %v868_v24 = vpop.f32.mrb[30].mxu1  ;;  %v1185_v25 = vrot.slane %v1174_v20, %v5105_v27  ;;  %v1178_v26 = vcombine.high %v1174_v20, %v1174_v20  ;;  %v4419_v20 = vld [vmem:[#allocation6 + $0x248] ss:$16 sps:$4 sm:$0xff]  }
 0x31a   :  { %v919_v28 = vmax.f32 %v917_v16, %v918_v21  ;;  %v971_v29 = vmax.f32 %v864_v19, %v868_v24  ;;  %v870_v30 = vpop.f32.mrb[31].mxu1  ;;  %v4416_v19 = vld [vmem:[#allocation6 + $0x240] ss:$16 sps:$4 sm:$0xff]   ;;  %v1131_v21 = vrot.slane %v5116_v37, %v1130_v6  ;;  %v1062_v37 = vrot.slane %v1054_v59, %v5105_v27  ;;  %v4455_v6 = vld [vmem:[#allocation6 + $0x308] ss:$16 sps:$4 sm:$0xff]  }
 0x31b   :  { %v926_v35 = vmax.f32 %v924_v17, %v925_v23  ;;  %v978_v36 = vmax.f32 %v866_v22, %v870_v30  ;;  %v1193_v41 = vcombine.high %v1185_v25, %v1185_v25  ;;  %v5142_v46 = vrot.slane %v1178_v26, %v5105_v27  ;;  %v4427_v22 = vld [vmem:[#allocation6 + $0x26c] ss:$16 sps:$4 sm:$0xff]   ;;  %v4425_v26 = vld [vmem:[#allocation6 + $0x268] ss:$16 sps:$4 sm:$0xff]   ;;  %v4430_v30 = vld [vmem:[#allocation6 + $0x284] ss:$16 sps:$4 sm:$0xff]  }
 0x31c   :  { %v920_v42 = vrot.slane %v919_v28, 1  ;;  %v972_v45 = vrot.slane %v971_v29, 4  ;;  %v1220_v55 = vpack.c.bf16 %v1185_v25, %v1185_v25  ;;  %v4422_v25 = vld [vmem:[#allocation6 + $0x260] ss:$16 sps:$4 sm:$0xff]  }
 0x31d   :  { %v927_v47 = vrot.slane %v926_v35, 1  ;;  %v979_v48 = vrot.slane %v978_v36, 4  ;;  %v1221_v49 = vpack.c.bf16 %v1193_v41, %v1193_v41  ;;  %v1194_v56 = vcombine.high %v5142_v46, %v5142_v46 }
 0x31e   :  { %v921_v54 = vmax.f32 %v919_v28, %v920_v42  ;;  %v973_v43 = vmax.f32 %v971_v29, %v972_v45  ;;  %v1153_v28 = vcombine.low %v1123_v14, %v1127_v15  ;;  %v1154_v29 = vcombine.low %v1131_v21, %v1135_v33  ;;  %v4428_v42 = vld [vmem:[#allocation6 + $0x280] ss:$16 sps:$4 sm:$0xff]   ;;  %v4431_v45 = vld [vmem:[#allocation6 + $0x288] ss:$16 sps:$4 sm:$0xff]   ;;  %v4472_v14 = vld [vmem:[#allocation6 + $0x364] ss:$16 sps:$4 sm:$0xff]  }
 0x31f   :  { %v928_v51 = vmax.f32 %v926_v35, %v927_v47  ;;  %v980_v57 = vmax.f32 %v978_v36, %v979_v48  ;;  %2818 = vmatprep.mubr.bf16.mxu0 %v1221_v49  ;;  %2982 = vmatprep.mubr.bf16.mxu1 %v1221_v49  ;;  %v1223_v63 = vpack.c.bf16 %v1194_v56, %v1194_v56  ;;  %v4433_v35 = vld [vmem:[#allocation6 + $0x28c] ss:$16 sps:$4 sm:$0xff]   ;;  %v4436_v49 = vld [vmem:[#allocation6 + $0x2a4] ss:$16 sps:$4 sm:$0xff]   ;;  %v4476_v21 = vld [vmem:[#allocation6 + $0x380] ss:$16 sps:$4 sm:$0xff]  }
 0x320   :  { %v974_v62 = vrot.slane %v973_v43, 2  ;;  %2819 = vmatmul.mubr.bf16.vlgmr.msra.gmra.mrb[8].mxu0 %v1220_v55  ;;  %2983 = vmatmul.mubr.bf16.vlgmr.msra.gmra.mrb[32].mxu1 %v1220_v55  ;;  %v1161_v47 = vrot.slane %v1153_v28, %v5105_v27  ;;  %v1168_v48 = vrot.slane %v1154_v29, %v5105_v27  ;;  %v4445_v55 = vld [vmem:[#allocation6 + $0x2cc] ss:$16 sps:$4 sm:$0xff]   ;;  %v4479_v33 = vld [vmem:[#allocation6 + $0x388] ss:$16 sps:$4 sm:$0xff]  }
 0x321   :  { %v1021_v3 = vcombine.low %v921_v54, %v928_v51  ;;  %v981_v4 = vrot.slane %v980_v57, 2  ;;  %2828 = vmatpush1.bf16.msra.mxu0 %v4404_v52  ;;  %2992 = vmatpush1.bf16.msra.mxu1 %v4407_v53  ;;  %v4439_v52 = vld [vmem:[#allocation6 + $0x2ac] ss:$16 sps:$4 sm:$0xff]   ;;  %v4488_v28 = vld [vmem:[#allocation6 + $0x3c0] ss:$16 sps:$4 sm:$0xff]  }
 0x322   :  { %v975_v8 = vmax.f32 %v973_v43, %v974_v62  ;;  %2859 = vmatprep.mubr.bf16.mxu0 %v1223_v63  ;;  %3023 = vmatprep.mubr.bf16.mxu1 %v1223_v63  ;;  %v1169_v54 = vcombine.low %v1161_v47, %v1168_v48  ;;  %v4442_v43 = vld [vmem:[#allocation6 + $0x2c4] ss:$16 sps:$4 sm:$0xff]   ;;  %v4475_v15 = vld [vmem:[#allocation6 + $0x36c] ss:$16 sps:$4 sm:$0xff]   ;;  %v4491_v29 = vld [vmem:[#allocation6 + $0x3c8] ss:$16 sps:$4 sm:$0xff]  }
 0x323   :  { %v1035_v11 = vrot.slane %v1021_v3, %v5105_v27  ;;  %v982_v12 = vmax.f32 %v980_v57, %v981_v4  ;;  %2829 = vmatprep.subr.bf16.mxu0 %v4412_v60  ;;  %2993 = vmatprep.subr.bf16.mxu1 %v4415_v61  ;;  %v4440_v60 = vld [vmem:[#allocation6 + $0x2c0] ss:$16 sps:$4 sm:$0xff]   ;;  %v4443_v61 = vld [vmem:[#allocation6 + $0x2c8] ss:$16 sps:$4 sm:$0xff]   ;;  %v4448_v63 = vld [vmem:[#allocation6 + $0x2e4] ss:$16 sps:$4 sm:$0xff]  }
 0x324   :  { %v976_v13 = vrot.slane %v975_v8, 1  ;;  %v4454_v3 = vld [vmem:[#allocation6 + $0x304] ss:$16 sps:$4 sm:$0xff]   ;;  %v4457_v4 = vld [vmem:[#allocation6 + $0x30c] ss:$16 sps:$4 sm:$0xff]  }
 0x325   :  { %v1036_v16 = vcombine.low %v1028_v10, %v1035_v11  ;;  %v983_v17 = vrot.slane %v982_v12, 1  ;;  %2830 = vmatpush1.bf16.msra.mxu0 %v4410_v0  ;;  %2994 = vmatpush1.bf16.msra.mxu1 %v4413_v5  ;;  %v4451_v0 = vld [vmem:[#allocation6 + $0x2ec] ss:$16 sps:$4 sm:$0xff]   ;;  %v4452_v5 = vld [vmem:[#allocation6 + $0x300] ss:$16 sps:$4 sm:$0xff]  }
 0x326   :  { %v977_v38 = vmax.f32 %v975_v8, %v976_v13  ;;  %2831 = vmatprep.subr.bf16.mxu0 %v4418_v58  ;;  %2995 = vmatprep.subr.bf16.mxu1 %v4421_v9  ;;  %v4463_v8 = vld [vmem:[#allocation6 + $0x32c] ss:$16 sps:$4 sm:$0xff]   ;;  %v4458_v58 = vld [vmem:[#allocation6 + $0x320] ss:$16 sps:$4 sm:$0xff]   ;;  %v4461_v9 = vld [vmem:[#allocation6 + $0x328] ss:$16 sps:$4 sm:$0xff]  }
 0x327   :  { %v984_v23 = vmax.f32 %v982_v12, %v983_v17  ;;  %v4466_v10 = vld [vmem:[#allocation6 + $0x344] ss:$16 sps:$4 sm:$0xff]   ;;  %v4469_v11 = vld [vmem:[#allocation6 + $0x34c] ss:$16 sps:$4 sm:$0xff]   ;;  %v4464_v12 = vld [vmem:[#allocation6 + $0x340] ss:$16 sps:$4 sm:$0xff]  }
 0x328   :  { %v4467_v13 = vld [vmem:[#allocation6 + $0x348] ss:$16 sps:$4 sm:$0xff]   ;;  %v4500_v48 = vld [vmem:[#allocation6 + $0x400] ss:$16 sps:$4 sm:$0xff]  }
 0x329   :  { %v1055_v24 = vcombine.low %v977_v38, %v984_v23  ;;  %2832 = vmatpush1.bf16.msra.mxu0 %v4416_v19  ;;  %2996 = vmatpush1.bf16.msra.mxu1 %v4419_v20  ;;  %v4473_v17 = vld [vmem:[#allocation6 + $0x368] ss:$16 sps:$4 sm:$0xff]   ;;  %v4478_v19 = vld [vmem:[#allocation6 + $0x384] ss:$16 sps:$4 sm:$0xff]   ;;  %v4481_v20 = vld [vmem:[#allocation6 + $0x38c] ss:$16 sps:$4 sm:$0xff]  }
 0x32a   :  { %2833 = vmatprep.subr.bf16.mxu0 %v4424_v44  ;;  %2997 = vmatprep.subr.bf16.mxu1 %v4427_v22  ;;  %v4484_v38 = vld [vmem:[#allocation6 + $0x3a4] ss:$16 sps:$4 sm:$0xff]   ;;  %v4487_v44 = vld [vmem:[#allocation6 + $0x3ac] ss:$16 sps:$4 sm:$0xff]   ;;  %v4482_v22 = vld [vmem:[#allocation6 + $0x3a0] ss:$16 sps:$4 sm:$0xff]  }
 0x32b   :  { %v1069_v36 = vrot.slane %v1055_v24, %v5105_v27  ;;  %v4485_v23 = vld [vmem:[#allocation6 + $0x3a8] ss:$16 sps:$4 sm:$0xff]   ;;  %v4490_v24 = vld [vmem:[#allocation6 + $0x3c4] ss:$16 sps:$4 sm:$0xff]  }
 0x32d   :  { %v1070_v41 = vcombine.low %v1062_v37, %v1069_v36  ;;  %2834 = vmatpush1.bf16.msra.mxu0 %v4422_v25  ;;  %2998 = vmatpush1.bf16.msra.mxu1 %v4425_v26  ;;  %v4493_v25 = vld [vmem:[#allocation6 + $0x3cc] ss:$16 sps:$4 sm:$0xff]   ;;  %v4494_v36 = vld [vmem:[#allocation6 + $0x3e0] ss:$16 sps:$4 sm:$0xff]  }
 0x32e   :  { %2835 = vmatprep.subr.bf16.mxu0 %v4430_v30  ;;  %2999 = vmatprep.subr.bf16.mxu1 %v4433_v35  ;;  %v4496_v30 = vld [vmem:[#allocation6 + $0x3e4] ss:$16 sps:$4 sm:$0xff]   ;;  %v4499_v35 = vld [vmem:[#allocation6 + $0x3ec] ss:$16 sps:$4 sm:$0xff]  }
 0x32f   :  { %v1086_v53 = vrot.slane %v1070_v41, 7  ;;  %v4497_v41 = vld [vmem:[#allocation6 + $0x3e8] ss:$16 sps:$4 sm:$0xff]  }
 0x331   :  { %2836 = vmatpush1.bf16.msra.mxu0 %v4428_v42  ;;  %3000 = vmatpush1.bf16.msra.mxu1 %v4431_v45  ;;  %v1087_v59 = vsel %vm1076_vm4, %v1086_v53, %v1036_v16  ;;  %v4470_v16 = vld [vmem:[#allocation6 + $0x360] ss:$16 sps:$4 sm:$0xff]   ;;  %v4502_v42 = vld [vmem:[#allocation6 + $0x404] ss:$16 sps:$4 sm:$0xff]   ;;  %v4505_v45 = vld [vmem:[#allocation6 + $0x40c] ss:$16 sps:$4 sm:$0xff]  }
 0x332   :  { %2837 = vmatprep.subr.bf16.mxu0 %v4436_v49  ;;  %3001 = vmatprep.subr.bf16.mxu1 %v4439_v52  ;;  %v1088_v56 = vsel %vm1078_vm5, %v1086_v53, %v1087_v59  ;;  %v1222_v49 = vpack.c.bf16 %v5142_v46, %v5142_v46  ;;  %v4503_v52 = vld [vmem:[#allocation6 + $0x408] ss:$16 sps:$4 sm:$0xff]   ;;  %v4506_v59 = vld [vmem:[#allocation6 + $0x420] ss:$16 sps:$4 sm:$0xff]  }
 0x333   :  { %v1089_v51 = vsel %vm1080_vm6, %v1086_v53, %v1088_v56  ;;  %v4512_v46 = vld [vmem:[#allocation6 + $0x440] ss:$16 sps:$4 sm:$0xff]   ;;  %v4515_v56 = vld [vmem:[#allocation6 + $0x448] ss:$16 sps:$4 sm:$0xff]  }
 0x334   :  { %v1090_v57 = vsel %vm1082_vm7, %v1086_v53, %v1089_v51  ;;  %v4520_v51 = vld [vmem:[#allocation6 + $0x464] ss:$16 sps:$4 sm:$0xff]  }
 0x335   :  { %2838 = vmatpush1.bf16.msra.mxu0 %v4434_v34  ;;  %3002 = vmatpush1.bf16.msra.mxu1 %v4437_v50  ;;  %v1173_v62 = vadd.f32 %v1169_v54, %v1090_v57  ;;  %v4508_v34 = vld [vmem:[#allocation6 + $0x424] ss:$16 sps:$4 sm:$0xff]   ;;  %v4511_v50 = vld [vmem:[#allocation6 + $0x42c] ss:$16 sps:$4 sm:$0xff]   ;;  %v4509_v54 = vld [vmem:[#allocation6 + $0x428] ss:$16 sps:$4 sm:$0xff]  }
 0x336   :  { %2839 = vmatprep.subr.bf16.mxu0 %v4442_v43  ;;  %3003 = vmatprep.subr.bf16.mxu1 %v4445_v55  ;;  %v4514_v43 = vld [vmem:[#allocation6 + $0x444] ss:$16 sps:$4 sm:$0xff]   ;;  %v4517_v55 = vld [vmem:[#allocation6 + $0x44c] ss:$16 sps:$4 sm:$0xff]  }
 0x337   :  { %v5170_v26 = vmax.f32 %v1173_v62, 0.0  ;;  %v4523_v57 = vld [vmem:[#allocation6 + $0x46c] ss:$16 sps:$4 sm:$0xff]   ;;  %v4526_v62 = vld [vmem:[#allocation6 + $0x484] ss:$16 sps:$4 sm:$0xff]  }
 0x339   :  { %2840 = vmatpush1.bf16.msra.mxu0 %v4440_v60  ;;  %3004 = vmatpush1.bf16.msra.mxu1 %v4443_v61  ;;  %v5174_v37 = vrot.slane %v5170_v26, %v5105_v27  ;;  %v4518_v60 = vld [vmem:[#allocation6 + $0x460] ss:$16 sps:$4 sm:$0xff]   ;;  %v4521_v61 = vld [vmem:[#allocation6 + $0x468] ss:$16 sps:$4 sm:$0xff]  }
 0x33a   :  { %2841 = vmatprep.subr.bf16.mxu0 %v4448_v63  ;;  %3005 = vmatprep.subr.bf16.mxu1 %v4451_v0  ;;  %v4529_v63 = vld [vmem:[#allocation6 + $0x48c] ss:$16 sps:$4 sm:$0xff]   ;;  %v4524_v0 = vld [vmem:[#allocation6 + $0x480] ss:$16 sps:$4 sm:$0xff]  }
 0x33b   :  { %v1210_v47 = vcombine.high %v5174_v37, %v5174_v37 }
 0x33d   :  { %2842 = vmatpush1.bf16.msra.mxu0 %v4446_v1  ;;  %3006 = vmatpush1.bf16.msra.mxu1 %v4449_v2  ;;  %v1225_v53 = vpack.c.bf16 %v1210_v47, %v1210_v47  ;;  %v4527_v1 = vld [vmem:[#allocation6 + $0x488] ss:$16 sps:$4 sm:$0xff]   ;;  %v4532_v2 = vld [vmem:[#allocation6 + $0x4a4] ss:$16 sps:$4 sm:$0xff]  }
 0x33e   :  { %2843 = vmatprep.subr.bf16.mxu0 %v4454_v3  ;;  %3007 = vmatprep.subr.bf16.mxu1 %v4457_v4  ;;  %v4535_v3 = vld [vmem:[#allocation6 + $0x4ac] ss:$16 sps:$4 sm:$0xff]   ;;  %v4530_v4 = vld [vmem:[#allocation6 + $0x4a0] ss:$16 sps:$4 sm:$0xff]   ;;  %v4581_v47 = vld [vmem:[#allocation6 + $0x5a8] ss:$16 sps:$4 sm:$0xff]  }
 0x341   :  { %2844 = vmatpush1.bf16.msra.mxu0 %v4452_v5  ;;  %3008 = vmatpush1.bf16.msra.mxu1 %v4455_v6  ;;  %v4533_v5 = vld [vmem:[#allocation6 + $0x4a8] ss:$16 sps:$4 sm:$0xff]   ;;  %v4538_v6 = vld [vmem:[#allocation6 + $0x4c4] ss:$16 sps:$4 sm:$0xff]  }
 0x342   :  { %2845 = vmatprep.subr.bf16.mxu0 %v4460_v7  ;;  %3009 = vmatprep.subr.bf16.mxu1 %v4463_v8  ;;  %v4541_v7 = vld [vmem:[#allocation6 + $0x4cc] ss:$16 sps:$4 sm:$0xff]   ;;  %v4536_v8 = vld [vmem:[#allocation6 + $0x4c0] ss:$16 sps:$4 sm:$0xff]  }
 0x345   :  { %2846 = vmatpush1.bf16.msra.mxu0 %v4458_v58  ;;  %3010 = vmatpush1.bf16.msra.mxu1 %v4461_v9  ;;  %v4539_v58 = vld [vmem:[#allocation6 + $0x4c8] ss:$16 sps:$4 sm:$0xff]   ;;  %v4544_v9 = vld [vmem:[#allocation6 + $0x4e4] ss:$16 sps:$4 sm:$0xff]  }
 0x346   :  { %2847 = vmatprep.subr.bf16.mxu0 %v4466_v10  ;;  %3011 = vmatprep.subr.bf16.mxu1 %v4469_v11  ;;  %v4547_v10 = vld [vmem:[#allocation6 + $0x4ec] ss:$16 sps:$4 sm:$0xff]   ;;  %v4542_v11 = vld [vmem:[#allocation6 + $0x4e0] ss:$16 sps:$4 sm:$0xff]  }
 0x349   :  { %2848 = vmatpush1.bf16.msra.mxu0 %v4464_v12  ;;  %3012 = vmatpush1.bf16.msra.mxu1 %v4467_v13  ;;  %v4545_v12 = vld [vmem:[#allocation6 + $0x4e8] ss:$16 sps:$4 sm:$0xff]   ;;  %v4550_v13 = vld [vmem:[#allocation6 + $0x504] ss:$16 sps:$4 sm:$0xff]  }
 0x34a   :  { %2849 = vmatprep.subr.bf16.mxu0 %v4472_v14  ;;  %3013 = vmatprep.subr.bf16.mxu1 %v4475_v15  ;;  %v4553_v14 = vld [vmem:[#allocation6 + $0x50c] ss:$16 sps:$4 sm:$0xff]   ;;  %v4548_v15 = vld [vmem:[#allocation6 + $0x500] ss:$16 sps:$4 sm:$0xff]  }
 0x34d   :  { %2850 = vmatpush1.bf16.msra.mxu0 %v4470_v16  ;;  %3014 = vmatpush1.bf16.msra.mxu1 %v4473_v17  ;;  %v4551_v16 = vld [vmem:[#allocation6 + $0x508] ss:$16 sps:$4 sm:$0xff]   ;;  %v4556_v17 = vld [vmem:[#allocation6 + $0x524] ss:$16 sps:$4 sm:$0xff]  }
 0x34e   :  { %2851 = vmatprep.subr.bf16.mxu0 %v4478_v19  ;;  %3015 = vmatprep.subr.bf16.mxu1 %v4481_v20  ;;  %v4559_v19 = vld [vmem:[#allocation6 + $0x52c] ss:$16 sps:$4 sm:$0xff]   ;;  %v4554_v20 = vld [vmem:[#allocation6 + $0x520] ss:$16 sps:$4 sm:$0xff]  }
 0x351   :  { %2852 = vmatpush1.bf16.msra.mxu0 %v4476_v21  ;;  %3016 = vmatpush1.bf16.msra.mxu1 %v4479_v33  ;;  %v4557_v21 = vld [vmem:[#allocation6 + $0x528] ss:$16 sps:$4 sm:$0xff]   ;;  %v4562_v33 = vld [vmem:[#allocation6 + $0x544] ss:$16 sps:$4 sm:$0xff]  }
 0x352   :  { %2853 = vmatprep.subr.bf16.mxu0 %v4484_v38  ;;  %3017 = vmatprep.subr.bf16.mxu1 %v4487_v44  ;;  %v4565_v38 = vld [vmem:[#allocation6 + $0x54c] ss:$16 sps:$4 sm:$0xff]   ;;  %v4560_v44 = vld [vmem:[#allocation6 + $0x540] ss:$16 sps:$4 sm:$0xff]  }
 0x355   :  { %2854 = vmatpush1.bf16.msra.mxu0 %v4482_v22  ;;  %3018 = vmatpush1.bf16.msra.mxu1 %v4485_v23  ;;  %v4563_v22 = vld [vmem:[#allocation6 + $0x548] ss:$16 sps:$4 sm:$0xff]   ;;  %v4568_v23 = vld [vmem:[#allocation6 + $0x564] ss:$16 sps:$4 sm:$0xff]  }
 0x356   :  { %2855 = vmatprep.subr.bf16.mxu0 %v4490_v24  ;;  %3019 = vmatprep.subr.bf16.mxu1 %v4493_v25  ;;  %v4571_v24 = vld [vmem:[#allocation6 + $0x56c] ss:$16 sps:$4 sm:$0xff]   ;;  %v4566_v25 = vld [vmem:[#allocation6 + $0x560] ss:$16 sps:$4 sm:$0xff]  }
 0x359   :  { %2856 = vmatpush1.bf16.msra.mxu0 %v4488_v28  ;;  %3020 = vmatpush1.bf16.msra.mxu1 %v4491_v29  ;;  %v4569_v28 = vld [vmem:[#allocation6 + $0x568] ss:$16 sps:$4 sm:$0xff]   ;;  %v4574_v29 = vld [vmem:[#allocation6 + $0x584] ss:$16 sps:$4 sm:$0xff]  }
 0x35a   :  { %2857 = vmatprep.subr.bf16.mxu0 %v4496_v30  ;;  %3021 = vmatprep.subr.bf16.mxu1 %v4499_v35  ;;  %v4577_v30 = vld [vmem:[#allocation6 + $0x58c] ss:$16 sps:$4 sm:$0xff]   ;;  %v4572_v35 = vld [vmem:[#allocation6 + $0x580] ss:$16 sps:$4 sm:$0xff]  }
 0x35d   :  { %2858 = vmatpush1.bf16.msra.mxu0 %v4494_v36  ;;  %3022 = vmatpush1.bf16.msra.mxu1 %v4497_v41  ;;  %v4575_v36 = vld [vmem:[#allocation6 + $0x588] ss:$16 sps:$4 sm:$0xff]   ;;  %v4580_v41 = vld [vmem:[#allocation6 + $0x5a4] ss:$16 sps:$4 sm:$0xff]  }
 0x35e   :  { %2868 = vmatprep.subr.bf16.mxu0 %v4502_v42  ;;  %3032 = vmatprep.subr.bf16.mxu1 %v4505_v45  ;;  %v4583_v42 = vld [vmem:[#allocation6 + $0x5ac] ss:$16 sps:$4 sm:$0xff]   ;;  %v4578_v45 = vld [vmem:[#allocation6 + $0x5a0] ss:$16 sps:$4 sm:$0xff]  }
 0x360   :  { %2860 = vmatmul.mubr.bf16.vlgmr.msra.gmra.mrb[8].mxu0 %v1222_v49  ;;  %3024 = vmatmul.mubr.bf16.vlgmr.msra.gmra.mrb[32].mxu1 %v1222_v49  ;;  %v4589_v49 = vld [vmem:[#allocation6 + $0x5cc] ss:$16 sps:$4 sm:$0xff]  }
 0x361   :  { %2869 = vmatpush1.bf16.msra.mxu0 %v4500_v48  ;;  %2900 = vmatprep.mubr.bf16.mxu0 %v1225_v53  ;;  %v4586_v48 = vld [vmem:[#allocation6 + $0x5c4] ss:$16 sps:$4 sm:$0xff]  }
 0x362   :  { %3033 = vmatpush1.bf16.msra.mxu1 %v4503_v52  ;;  %3064 = vmatprep.mubr.bf16.mxu1 %v1225_v53  ;;  %v1195_v52 = vcombine.high %v5170_v26, %v5170_v26  ;;  %v4584_v53 = vld [vmem:[#allocation6 + $0x5c0] ss:$16 sps:$4 sm:$0xff]  }
 0x363   :  { %2870 = vmatprep.subr.bf16.mxu0 %v4508_v34  ;;  %3034 = vmatprep.subr.bf16.mxu1 %v4511_v50  ;;  %v4587_v34 = vld [vmem:[#allocation6 + $0x5c8] ss:$16 sps:$4 sm:$0xff]   ;;  %v4592_v50 = vld [vmem:[#allocation6 + $0x5e4] ss:$16 sps:$4 sm:$0xff]  }
 0x365   :  { %2871 = vmatpush1.bf16.msra.mxu0 %v4506_v59  ;;  %v4595_v59 = vld [vmem:[#allocation6 + $0x5ec] ss:$16 sps:$4 sm:$0xff]  }
 0x366   :  { %3035 = vmatpush1.bf16.msra.mxu1 %v4509_v54  ;;  %2872 = vmatprep.subr.bf16.mxu0 %v4514_v43  ;;  %v5183_v54 = vrot.slane %v1195_v52, %v5105_v27  ;;  %v4590_v43 = vld [vmem:[#allocation6 + $0x5e0] ss:$16 sps:$4 sm:$0xff]   ;;  %v4599_v27 = vld [vmem:[#allocation6 + $0x608] ss:$16 sps:$4 sm:$0xff]   ;;  %v4670_v52 = vld [vmem:[#allocation6 + $0x784] ss:$16 sps:$4 sm:$0xff]  }
 0x367   :  { %3036 = vmatprep.subr.bf16.mxu1 %v4517_v55  ;;  %v4593_v55 = vld [vmem:[#allocation6 + $0x5e8] ss:$16 sps:$4 sm:$0xff]  }
 0x368   :  { %v1211_v26 = vcombine.high %v5183_v54, %v5183_v54 }
 0x369   :  { %2873 = vmatpush1.bf16.msra.mxu0 %v4512_v46  ;;  %v4598_v46 = vld [vmem:[#allocation6 + $0x604] ss:$16 sps:$4 sm:$0xff]  }
 0x36a   :  { %3037 = vmatpush1.bf16.msra.mxu1 %v4515_v56  ;;  %2874 = vmatprep.subr.bf16.mxu0 %v4520_v51  ;;  %v4601_v56 = vld [vmem:[#allocation6 + $0x60c] ss:$16 sps:$4 sm:$0xff]   ;;  %v4596_v51 = vld [vmem:[#allocation6 + $0x600] ss:$16 sps:$4 sm:$0xff]  }
 0x36b   :  { %3038 = vmatprep.subr.bf16.mxu1 %v4523_v57  ;;  %v1224_v57 = vpack.c.bf16 %v5174_v37, %v5174_v37  ;;  %v4608_v37 = vld [vmem:[#allocation6 + $0x640] ss:$16 sps:$4 sm:$0xff]  }
 0x36d   :  { %2875 = vmatpush1.bf16.msra.mxu0 %v4518_v60  ;;  %v4604_v60 = vld [vmem:[#allocation6 + $0x624] ss:$16 sps:$4 sm:$0xff]  }
 0x36e   :  { %3039 = vmatpush1.bf16.msra.mxu1 %v4521_v61  ;;  %2876 = vmatprep.subr.bf16.mxu0 %v4526_v62  ;;  %v1227_v61 = vpack.c.bf16 %v1211_v26, %v1211_v26  ;;  %v4607_v62 = vld [vmem:[#allocation6 + $0x62c] ss:$16 sps:$4 sm:$0xff]  }
 0x36f   :  { %3040 = vmatprep.subr.bf16.mxu1 %v4529_v63  ;;  %v4602_v63 = vld [vmem:[#allocation6 + $0x620] ss:$16 sps:$4 sm:$0xff]   ;;  %v4685_v26 = vld [vmem:[#allocation6 + $0x7cc] ss:$16 sps:$4 sm:$0xff]  }
 0x371   :  { %2877 = vmatpush1.bf16.msra.mxu0 %v4524_v0  ;;  %v4605_v0 = vld [vmem:[#allocation6 + $0x628] ss:$16 sps:$4 sm:$0xff]  }
 0x372   :  { %3041 = vmatpush1.bf16.msra.mxu1 %v4527_v1  ;;  %2878 = vmatprep.subr.bf16.mxu0 %v4532_v2  ;;  %v4610_v1 = vld [vmem:[#allocation6 + $0x644] ss:$16 sps:$4 sm:$0xff]   ;;  %v4613_v2 = vld [vmem:[#allocation6 + $0x64c] ss:$16 sps:$4 sm:$0xff]  }
 0x373   :  { %3042 = vmatprep.subr.bf16.mxu1 %v4535_v3  ;;  %v4611_v3 = vld [vmem:[#allocation6 + $0x648] ss:$16 sps:$4 sm:$0xff]  }
 0x375   :  { %2879 = vmatpush1.bf16.msra.mxu0 %v4530_v4  ;;  %v4616_v4 = vld [vmem:[#allocation6 + $0x664] ss:$16 sps:$4 sm:$0xff]  }
 0x376   :  { %3043 = vmatpush1.bf16.msra.mxu1 %v4533_v5  ;;  %2880 = vmatprep.subr.bf16.mxu0 %v4538_v6  ;;  %v4619_v5 = vld [vmem:[#allocation6 + $0x66c] ss:$16 sps:$4 sm:$0xff]   ;;  %v4614_v6 = vld [vmem:[#allocation6 + $0x660] ss:$16 sps:$4 sm:$0xff]  }
 0x377   :  { %3044 = vmatprep.subr.bf16.mxu1 %v4541_v7  ;;  %v4617_v7 = vld [vmem:[#allocation6 + $0x668] ss:$16 sps:$4 sm:$0xff]  }
 0x379   :  { %2881 = vmatpush1.bf16.msra.mxu0 %v4536_v8  ;;  %v4622_v8 = vld [vmem:[#allocation6 + $0x684] ss:$16 sps:$4 sm:$0xff]  }
 0x37a   :  { %3045 = vmatpush1.bf16.msra.mxu1 %v4539_v58  ;;  %2882 = vmatprep.subr.bf16.mxu0 %v4544_v9  ;;  %v4625_v58 = vld [vmem:[#allocation6 + $0x68c] ss:$16 sps:$4 sm:$0xff]   ;;  %v4620_v9 = vld [vmem:[#allocation6 + $0x680] ss:$16 sps:$4 sm:$0xff]  }
 0x37b   :  { %3046 = vmatprep.subr.bf16.mxu1 %v4547_v10  ;;  %v4623_v10 = vld [vmem:[#allocation6 + $0x688] ss:$16 sps:$4 sm:$0xff]  }
 0x37d   :  { %2883 = vmatpush1.bf16.msra.mxu0 %v4542_v11  ;;  %v4628_v11 = vld [vmem:[#allocation6 + $0x6a4] ss:$16 sps:$4 sm:$0xff]  }
 0x37e   :  { %3047 = vmatpush1.bf16.msra.mxu1 %v4545_v12  ;;  %2884 = vmatprep.subr.bf16.mxu0 %v4550_v13  ;;  %v4631_v12 = vld [vmem:[#allocation6 + $0x6ac] ss:$16 sps:$4 sm:$0xff]   ;;  %v4626_v13 = vld [vmem:[#allocation6 + $0x6a0] ss:$16 sps:$4 sm:$0xff]  }
 0x37f   :  { %3048 = vmatprep.subr.bf16.mxu1 %v4553_v14  ;;  %v4629_v14 = vld [vmem:[#allocation6 + $0x6a8] ss:$16 sps:$4 sm:$0xff]  }
 0x381   :  { %2885 = vmatpush1.bf16.msra.mxu0 %v4548_v15  ;;  %v4634_v15 = vld [vmem:[#allocation6 + $0x6c4] ss:$16 sps:$4 sm:$0xff]  }
 0x382   :  { %3049 = vmatpush1.bf16.msra.mxu1 %v4551_v16  ;;  %2886 = vmatprep.subr.bf16.mxu0 %v4556_v17  ;;  %v4637_v16 = vld [vmem:[#allocation6 + $0x6cc] ss:$16 sps:$4 sm:$0xff]   ;;  %v4632_v17 = vld [vmem:[#allocation6 + $0x6c0] ss:$16 sps:$4 sm:$0xff]  }
 0x383   :  { %3050 = vmatprep.subr.bf16.mxu1 %v4559_v19  ;;  %v4635_v19 = vld [vmem:[#allocation6 + $0x6c8] ss:$16 sps:$4 sm:$0xff]  }
 0x385   :  { %2887 = vmatpush1.bf16.msra.mxu0 %v4554_v20  ;;  %v4640_v20 = vld [vmem:[#allocation6 + $0x6e4] ss:$16 sps:$4 sm:$0xff]  }
 0x386   :  { %3051 = vmatpush1.bf16.msra.mxu1 %v4557_v21  ;;  %2888 = vmatprep.subr.bf16.mxu0 %v4562_v33  ;;  %v4643_v21 = vld [vmem:[#allocation6 + $0x6ec] ss:$16 sps:$4 sm:$0xff]   ;;  %v4638_v33 = vld [vmem:[#allocation6 + $0x6e0] ss:$16 sps:$4 sm:$0xff]  }
 0x387   :  { %3052 = vmatprep.subr.bf16.mxu1 %v4565_v38  ;;  %v4641_v38 = vld [vmem:[#allocation6 + $0x6e8] ss:$16 sps:$4 sm:$0xff]  }
 0x389   :  { %2889 = vmatpush1.bf16.msra.mxu0 %v4560_v44  ;;  %v4646_v44 = vld [vmem:[#allocation6 + $0x704] ss:$16 sps:$4 sm:$0xff]  }
 0x38a   :  { %3053 = vmatpush1.bf16.msra.mxu1 %v4563_v22  ;;  %2890 = vmatprep.subr.bf16.mxu0 %v4568_v23  ;;  %v4649_v22 = vld [vmem:[#allocation6 + $0x70c] ss:$16 sps:$4 sm:$0xff]   ;;  %v4644_v23 = vld [vmem:[#allocation6 + $0x700] ss:$16 sps:$4 sm:$0xff]  }
 0x38b   :  { %3054 = vmatprep.subr.bf16.mxu1 %v4571_v24  ;;  %v4647_v24 = vld [vmem:[#allocation6 + $0x708] ss:$16 sps:$4 sm:$0xff]  }
 0x38d   :  { %2891 = vmatpush1.bf16.msra.mxu0 %v4566_v25  ;;  %v4652_v25 = vld [vmem:[#allocation6 + $0x724] ss:$16 sps:$4 sm:$0xff]  }
 0x38e   :  { %3055 = vmatpush1.bf16.msra.mxu1 %v4569_v28  ;;  %2892 = vmatprep.subr.bf16.mxu0 %v4574_v29  ;;  %v4655_v28 = vld [vmem:[#allocation6 + $0x72c] ss:$16 sps:$4 sm:$0xff]   ;;  %v4650_v29 = vld [vmem:[#allocation6 + $0x720] ss:$16 sps:$4 sm:$0xff]  }
 0x38f   :  { %3056 = vmatprep.subr.bf16.mxu1 %v4577_v30  ;;  %v4653_v30 = vld [vmem:[#allocation6 + $0x728] ss:$16 sps:$4 sm:$0xff]  }
 0x391   :  { %2893 = vmatpush1.bf16.msra.mxu0 %v4572_v35  ;;  %v4658_v35 = vld [vmem:[#allocation6 + $0x744] ss:$16 sps:$4 sm:$0xff]  }
 0x392   :  { %3057 = vmatpush1.bf16.msra.mxu1 %v4575_v36  ;;  %2894 = vmatprep.subr.bf16.mxu0 %v4580_v41  ;;  %v4661_v36 = vld [vmem:[#allocation6 + $0x74c] ss:$16 sps:$4 sm:$0xff]   ;;  %v4656_v41 = vld [vmem:[#allocation6 + $0x740] ss:$16 sps:$4 sm:$0xff]  }
 0x393   :  { %3058 = vmatprep.subr.bf16.mxu1 %v4583_v42  ;;  %v4659_v42 = vld [vmem:[#allocation6 + $0x748] ss:$16 sps:$4 sm:$0xff]  }
 0x395   :  { %2895 = vmatpush1.bf16.msra.mxu0 %v4578_v45  ;;  %v4664_v45 = vld [vmem:[#allocation6 + $0x764] ss:$16 sps:$4 sm:$0xff]  }
 0x396   :  { %3059 = vmatpush1.bf16.msra.mxu1 %v4581_v47  ;;  %2896 = vmatprep.subr.bf16.mxu0 %v4586_v48  ;;  %v4667_v47 = vld [vmem:[#allocation6 + $0x76c] ss:$16 sps:$4 sm:$0xff]   ;;  %v4662_v48 = vld [vmem:[#allocation6 + $0x760] ss:$16 sps:$4 sm:$0xff]  }
 0x397   :  { %3060 = vmatprep.subr.bf16.mxu1 %v4589_v49  ;;  %v4665_v49 = vld [vmem:[#allocation6 + $0x768] ss:$16 sps:$4 sm:$0xff]  }
 0x399   :  { %2897 = vmatpush1.bf16.msra.mxu0 %v4584_v53  ;;  %v4673_v53 = vld [vmem:[#allocation6 + $0x78c] ss:$16 sps:$4 sm:$0xff]  }
 0x39a   :  { %3061 = vmatpush1.bf16.msra.mxu1 %v4587_v34  ;;  %2898 = vmatprep.subr.bf16.mxu0 %v4592_v50  ;;  %v4668_v34 = vld [vmem:[#allocation6 + $0x780] ss:$16 sps:$4 sm:$0xff]   ;;  %v4671_v50 = vld [vmem:[#allocation6 + $0x788] ss:$16 sps:$4 sm:$0xff]  }
 0x39b   :  { %3062 = vmatprep.subr.bf16.mxu1 %v4595_v59  ;;  %v4676_v59 = vld [vmem:[#allocation6 + $0x7a4] ss:$16 sps:$4 sm:$0xff]  }
 0x39d   :  { %2899 = vmatpush1.bf16.msra.mxu0 %v4590_v43  ;;  %v4679_v43 = vld [vmem:[#allocation6 + $0x7ac] ss:$16 sps:$4 sm:$0xff]  }
 0x39e   :  { %3063 = vmatpush1.bf16.msra.mxu1 %v4593_v55  ;;  %2909 = vmatprep.subr.bf16.mxu0 %v4598_v46  ;;  %v4674_v55 = vld [vmem:[#allocation6 + $0x7a0] ss:$16 sps:$4 sm:$0xff]   ;;  %v4677_v46 = vld [vmem:[#allocation6 + $0x7a8] ss:$16 sps:$4 sm:$0xff]  }
 0x39f   :  { %3073 = vmatprep.subr.bf16.mxu1 %v4601_v56  ;;  %v4682_v56 = vld [vmem:[#allocation6 + $0x7c4] ss:$16 sps:$4 sm:$0xff]  }
 0x3a0   :  { %2901 = vmatmul.mubr.bf16.vlgmr.msra.gmra.mrb[8].mxu0 %v1224_v57 }
 0x3a1   :  { %3065 = vmatmul.mubr.bf16.vlgmr.msra.gmra.mrb[32].mxu1 %v1224_v57  ;;  %2910 = vmatpush1.bf16.msra.mxu0 %v4596_v51  ;;  %v4680_v51 = vld [vmem:[#allocation6 + $0x7c0] ss:$16 sps:$4 sm:$0xff]   ;;  %v4683_v57 = vld [vmem:[#allocation6 + $0x7c8] ss:$16 sps:$4 sm:$0xff]  }
 0x3a2   :  { %2941 = vmatprep.mubr.bf16.mxu0 %v1227_v61  ;;  %3074 = vmatpush1.bf16.msra.mxu1 %v4599_v27  ;;  %v4688_v27 = vld [vmem:[#allocation6 + $0x7e4] ss:$16 sps:$4 sm:$0xff]  }
 0x3a3   :  { %3105 = vmatprep.mubr.bf16.mxu1 %v1227_v61  ;;  %2911 = vmatprep.subr.bf16.mxu0 %v4604_v60  ;;  %v4691_v60 = vld [vmem:[#allocation6 + $0x7ec] ss:$16 sps:$4 sm:$0xff]   ;;  %v4686_v61 = vld [vmem:[#allocation6 + $0x7e0] ss:$16 sps:$4 sm:$0xff]  }
 0x3a4   :  { %3075 = vmatprep.subr.bf16.mxu1 %v4607_v62  ;;  %v4689_v62 = vld [vmem:[#allocation6 + $0x7e8] ss:$16 sps:$4 sm:$0xff]  }
 0x3a5   :  { %2912 = vmatpush1.bf16.msra.mxu0 %v4602_v63  ;;  %v4694_v63 = vld [vmem:[#allocation8 + $0x4] ss:$8 sps:$4 sm:$0xff]  }
 0x3a6   :  { %3076 = vmatpush1.bf16.msra.mxu1 %v4605_v0  ;;  %2913 = vmatprep.subr.bf16.mxu0 %v4610_v1  ;;  %v4692_v0 = vld [vmem:[#allocation8] ss:$8 sps:$4 sm:$0xff]   ;;  %v1226_v1 = vpack.c.bf16 %v5183_v54, %v5183_v54  ;;  %v4709_v54 = vld [vmem:[#allocation8 + $0x54] ss:$8 sps:$4 sm:$0xff]  }
 0x3a7   :  { %3077 = vmatprep.subr.bf16.mxu1 %v4613_v2  ;;  %v4697_v2 = vld [vmem:[#allocation8 + $0x14] ss:$8 sps:$4 sm:$0xff]  }
 0x3a9   :  { %2914 = vmatpush1.bf16.msra.mxu0 %v4608_v37  ;;  %v4695_v37 = vld [vmem:[#allocation8 + $0x10] ss:$8 sps:$4 sm:$0xff]  }
 0x3aa   :  { %3078 = vmatpush1.bf16.msra.mxu1 %v4611_v3  ;;  %2915 = vmatprep.subr.bf16.mxu0 %v4616_v4  ;;  %v4700_v3 = vld [vmem:[#allocation8 + $0x24] ss:$8 sps:$4 sm:$0xff]   ;;  %v4698_v4 = vld [vmem:[#allocation8 + $0x20] ss:$8 sps:$4 sm:$0xff]  }
 0x3ab   :  { %3079 = vmatprep.subr.bf16.mxu1 %v4619_v5  ;;  %v4703_v5 = vld [vmem:[#allocation8 + $0x34] ss:$8 sps:$4 sm:$0xff]  }
 0x3ad   :  { %2916 = vmatpush1.bf16.msra.mxu0 %v4614_v6  ;;  %v4701_v6 = vld [vmem:[#allocation8 + $0x30] ss:$8 sps:$4 sm:$0xff]  }
 0x3ae   :  { %3080 = vmatpush1.bf16.msra.mxu1 %v4617_v7  ;;  %2917 = vmatprep.subr.bf16.mxu0 %v4622_v8  ;;  %v4706_v7 = vld [vmem:[#allocation8 + $0x44] ss:$8 sps:$4 sm:$0xff]   ;;  %v4704_v8 = vld [vmem:[#allocation8 + $0x40] ss:$8 sps:$4 sm:$0xff]  }
 0x3af   :  { %3081 = vmatprep.subr.bf16.mxu1 %v4625_v58  ;;  %v4707_v58 = vld [vmem:[#allocation8 + $0x50] ss:$8 sps:$4 sm:$0xff]  }
 0x3b1   :  { %2918 = vmatpush1.bf16.msra.mxu0 %v4620_v9  ;;  %v4712_v9 = vld [vmem:[#allocation8 + $0x64] ss:$8 sps:$4 sm:$0xff]  }
 0x3b2   :  { %3082 = vmatpush1.bf16.msra.mxu1 %v4623_v10  ;;  %2919 = vmatprep.subr.bf16.mxu0 %v4628_v11  ;;  %v4710_v10 = vld [vmem:[#allocation8 + $0x60] ss:$8 sps:$4 sm:$0xff]   ;;  %v4715_v11 = vld [vmem:[#allocation8 + $0x74] ss:$8 sps:$4 sm:$0xff]  }
 0x3b3   :  { %3083 = vmatprep.subr.bf16.mxu1 %v4631_v12  ;;  %v4713_v12 = vld [vmem:[#allocation8 + $0x70] ss:$8 sps:$4 sm:$0xff]  }
 0x3b5   :  { %2920 = vmatpush1.bf16.msra.mxu0 %v4626_v13  ;;  %v4718_v13 = vld [vmem:[#allocation8 + $0x84] ss:$8 sps:$4 sm:$0xff]  }
 0x3b6   :  { %3084 = vmatpush1.bf16.msra.mxu1 %v4629_v14  ;;  %2921 = vmatprep.subr.bf16.mxu0 %v4634_v15  ;;  %v4716_v14 = vld [vmem:[#allocation8 + $0x80] ss:$8 sps:$4 sm:$0xff]   ;;  %v4721_v15 = vld [vmem:[#allocation8 + $0x94] ss:$8 sps:$4 sm:$0xff]  }
 0x3b7   :  { %3085 = vmatprep.subr.bf16.mxu1 %v4637_v16  ;;  %v4719_v16 = vld [vmem:[#allocation8 + $0x90] ss:$8 sps:$4 sm:$0xff]  }
 0x3b9   :  { %2922 = vmatpush1.bf16.msra.mxu0 %v4632_v17  ;;  %v4724_v17 = vld [vmem:[#allocation8 + $0xa4] ss:$8 sps:$4 sm:$0xff]  }
 0x3ba   :  { %3086 = vmatpush1.bf16.msra.mxu1 %v4635_v19  ;;  %2923 = vmatprep.subr.bf16.mxu0 %v4640_v20  ;;  %v4722_v19 = vld [vmem:[#allocation8 + $0xa0] ss:$8 sps:$4 sm:$0xff]   ;;  %v4727_v20 = vld [vmem:[#allocation8 + $0xb4] ss:$8 sps:$4 sm:$0xff]  }
 0x3bb   :  { %3087 = vmatprep.subr.bf16.mxu1 %v4643_v21  ;;  %v4725_v21 = vld [vmem:[#allocation8 + $0xb0] ss:$8 sps:$4 sm:$0xff]  }
 0x3bd   :  { %2924 = vmatpush1.bf16.msra.mxu0 %v4638_v33  ;;  %v4730_v33 = vld [vmem:[#allocation8 + $0xc4] ss:$8 sps:$4 sm:$0xff]  }
 0x3be   :  { %3088 = vmatpush1.bf16.msra.mxu1 %v4641_v38  ;;  %2925 = vmatprep.subr.bf16.mxu0 %v4646_v44  ;;  %v4728_v38 = vld [vmem:[#allocation8 + $0xc0] ss:$8 sps:$4 sm:$0xff]   ;;  %v4733_v44 = vld [vmem:[#allocation8 + $0xd4] ss:$8 sps:$4 sm:$0xff]  }
 0x3bf   :  { %3089 = vmatprep.subr.bf16.mxu1 %v4649_v22  ;;  %v4731_v22 = vld [vmem:[#allocation8 + $0xd0] ss:$8 sps:$4 sm:$0xff]  }
 0x3c1   :  { %2926 = vmatpush1.bf16.msra.mxu0 %v4644_v23  ;;  %v4736_v23 = vld [vmem:[#allocation8 + $0xe4] ss:$8 sps:$4 sm:$0xff]  }
 0x3c2   :  { %3090 = vmatpush1.bf16.msra.mxu1 %v4647_v24  ;;  %2927 = vmatprep.subr.bf16.mxu0 %v4652_v25  ;;  %v4734_v24 = vld [vmem:[#allocation8 + $0xe0] ss:$8 sps:$4 sm:$0xff]   ;;  %v4739_v25 = vld [vmem:[#allocation8 + $0xf4] ss:$8 sps:$4 sm:$0xff]  }
 0x3c3   :  { %3091 = vmatprep.subr.bf16.mxu1 %v4655_v28  ;;  %v4737_v28 = vld [vmem:[#allocation8 + $0xf0] ss:$8 sps:$4 sm:$0xff]  }
 0x3c5   :  { %2928 = vmatpush1.bf16.msra.mxu0 %v4650_v29  ;;  %v4742_v29 = vld [vmem:[#allocation8 + $0x104] ss:$8 sps:$4 sm:$0xff]  }
 0x3c6   :  { %3092 = vmatpush1.bf16.msra.mxu1 %v4653_v30  ;;  %2929 = vmatprep.subr.bf16.mxu0 %v4658_v35  ;;  %v4788_v30 = vld [vmem:[%s5288_s11 + $0x40] sm:$0xff]  }
 0x3c7   :  { %3093 = vmatprep.subr.bf16.mxu1 %v4661_v36  ;;  %v4789_v35 = vld [vmem:[%s5288_s11] sm:$0xff]   ;;  %v4790_v36 = vld [vmem:[%s5288_s11 + $0x48] sm:$0xff]  }
 0x3c9   :  { %2930 = vmatpush1.bf16.msra.mxu0 %v4656_v41  ;;  %v4791_v41 = vld [vmem:[%s5288_s11 + $0x8] sm:$0xff]  }
 0x3ca   :  { %3094 = vmatpush1.bf16.msra.mxu1 %v4659_v42  ;;  %2931 = vmatprep.subr.bf16.mxu0 %v4664_v45  ;;  %v4792_v42 = vld [vmem:[%s5288_s11 + $0x50] sm:$0xff]  }
 0x3cb   :  { %3095 = vmatprep.subr.bf16.mxu1 %v4667_v47  ;;  %v4793_v45 = vld [vmem:[%s5288_s11 + $0x10] sm:$0xff]   ;;  %v4794_v47 = vld [vmem:[%s5288_s11 + $0x58] sm:$0xff]  }
 0x3cd   :  { %2932 = vmatpush1.bf16.msra.mxu0 %v4662_v48  ;;  %v4795_v48 = vld [vmem:[%s5288_s11 + $0x18] sm:$0xff]  }
 0x3ce   :  { %3096 = vmatpush1.bf16.msra.mxu1 %v4665_v49  ;;  %2933 = vmatprep.subr.bf16.mxu0 %v4670_v52  ;;  %v4796_v49 = vld [vmem:[%s5288_s11 + $0x60] sm:$0xff]  }
 0x3cf   :  { %3097 = vmatprep.subr.bf16.mxu1 %v4673_v53  ;;  %v4797_v52 = vld [vmem:[%s5288_s11 + $0x20] sm:$0xff]   ;;  %v4798_v53 = vld [vmem:[%s5288_s11 + $0x68] sm:$0xff]  }
 0x3d1   :  { %2934 = vmatpush1.bf16.msra.mxu0 %v4668_v34  ;;  %v4799_v34 = vld [vmem:[%s5288_s11 + $0x28] sm:$0xff]  }
 0x3d2   :  { %3098 = vmatpush1.bf16.msra.mxu1 %v4671_v50  ;;  %2935 = vmatprep.subr.bf16.mxu0 %v4676_v59  ;;  %v5230_v50 = vld [vmem:[%s5285_s8] sm:$0xf] }
 0x3d3   :  { %3099 = vmatprep.subr.bf16.mxu1 %v4679_v43  ;;  %v1489_v59 = vrot.slane %v5230_v50, %v5108_v31  ;;  %v1493_v43 = vrot.slane %v5230_v50, %v5111_v32 }
 0x3d5   :  { %2936 = vmatpush1.bf16.msra.mxu0 %v4674_v55  ;;  %v1501_v55 = vrot.slane %v5230_v50, %v1118_v40 }
 0x3d6   :  { %3100 = vmatpush1.bf16.msra.mxu1 %v4677_v46  ;;  %2937 = vmatprep.subr.bf16.mxu0 %v4682_v56 }
 0x3d7   :  { %3101 = vmatprep.subr.bf16.mxu1 %v4685_v26 }
 0x3d9   :  { %2938 = vmatpush1.bf16.msra.mxu0 %v4680_v51 }
 0x3da   :  { %3102 = vmatpush1.bf16.msra.mxu1 %v4683_v57  ;;  %2939 = vmatprep.subr.bf16.mxu0 %v4688_v27 }
 0x3db   :  { %3103 = vmatprep.subr.bf16.mxu1 %v4691_v60 }
 0x3dd   :  { %2940 = vmatpush1.bf16.msra.mxu0 %v4686_v61 }
 0x3de   :  { %3104 = vmatpush1.bf16.msra.mxu1 %v4689_v62  ;;  %3518 = vmatprep.subr.bf16.mxu0 %v4694_v63 }
 0x3df   :  { %4217 = vmatprep.subr.bf16.mxu1 %v4788_v30  ;;  %v1497_v30 = vrot.slane %v5230_v50, %v1114_v39  ;;  %v4801_v39 = vld [vmem:[%s5288_s11 + $0x30] sm:$0xff]  }
 0x3e0   :  { %2942 = vmatmul.mubr.bf16.vlgmr.msra.gmra.mrb[8].mxu0 %v1226_v1 }
 0x3e1   :  { %3106 = vmatmul.mubr.bf16.vlgmr.msra.gmra.mrb[32].mxu1 %v1226_v1  ;;  %3519 = vmatpush1.bf16.msra.mxu0 %v4692_v0 }
 0x3e2   :  { %3520 = vmatprep.subr.bf16.mxu0 %v4697_v2  ;;  %4218 = vmatpush3.bf16.msra.mxu1 %v4789_v35  ;;  %v4784_v35 = vld [vmem:[#allocation8 + $0x1e4] ss:$8 sps:$4 sm:$0xff]  }
 0x3e3   :  { %4219 = vmatprep.subr.bf16.mxu1 %v4790_v36  ;;  %v4782_v36 = vld [vmem:[#allocation8 + $0x1e0] ss:$8 sps:$4 sm:$0xff]  }
 0x3e5   :  { %3521 = vmatpush1.bf16.msra.mxu0 %v4695_v37 }
 0x3e6   :  { %3522 = vmatprep.subr.bf16.mxu0 %v4700_v3  ;;  %4220 = vmatpush3.bf16.msra.mxu1 %v4791_v41 }
 0x3e7   :  { %4221 = vmatprep.subr.bf16.mxu1 %v4792_v42  ;;  %v4787_v42 = vld [vmem:[#allocation8 + $0x1f4] ss:$8 sps:$4 sm:$0xff]  }
 0x3e9   :  { %3523 = vmatpush1.bf16.msra.mxu0 %v4698_v4  ;;  %v4740_v4 = vld [vmem:[#allocation8 + $0x100] ss:$8 sps:$4 sm:$0xff]  }
 0x3ea   :  { %3524 = vmatprep.subr.bf16.mxu0 %v4703_v5  ;;  %4222 = vmatpush3.bf16.msra.mxu1 %v4793_v45  ;;  %v4785_v45 = vld [vmem:[#allocation8 + $0x1f0] ss:$8 sps:$4 sm:$0xff]  }
 0x3eb   :  { %4223 = vmatprep.subr.bf16.mxu1 %v4794_v47 }
 0x3ed   :  { %3525 = vmatpush1.bf16.msra.mxu0 %v4701_v6  ;;  %v4745_v6 = vld [vmem:[#allocation8 + $0x114] ss:$8 sps:$4 sm:$0xff]  }
 0x3ee   :  { %3526 = vmatprep.subr.bf16.mxu0 %v4706_v7  ;;  %4224 = vmatpush3.bf16.msra.mxu1 %v4795_v48  ;;  %v4743_v7 = vld [vmem:[#allocation8 + $0x110] ss:$8 sps:$4 sm:$0xff]  }
 0x3ef   :  { %4225 = vmatprep.subr.bf16.mxu1 %v4796_v49  ;;  %v4802_v49 = vld [vmem:[%s5288_s11 + $0x78] sm:$0xff]  }
 0x3f1   :  { %3527 = vmatpush1.bf16.msra.mxu0 %v4704_v8  ;;  %v4748_v8 = vld [vmem:[#allocation8 + $0x124] ss:$8 sps:$4 sm:$0xff]  }
 0x3f2   :  { %3528 = vmatprep.subr.bf16.mxu0 %v4709_v54  ;;  %4226 = vmatpush3.bf16.msra.mxu1 %v4797_v52  ;;  %v4746_v54 = vld [vmem:[#allocation8 + $0x120] ss:$8 sps:$4 sm:$0xff]   ;;  %v4803_v52 = vld [vmem:[%s5288_s11 + $0x38] sm:$0xff]  }
 0x3f3   :  { %4227 = vmatprep.subr.bf16.mxu1 %v4798_v53  ;;  %v3186_v53 = vld [vmem:[%s5287_s10] sm:$0x3]  ;;  %s4910_s10 = smov [#allocation9]  }
 0x3f4   :  { %v3195_v50 = vrot.slane %v3186_v53, %v5111_v32  ;;  %s3787_s20 = sshll.u32 %s4910_s10, 4  ;;  %s3788_s20 = int_to_ptr.vmem [resolvable:$true] %s3787_s20 }
 0x3f5   :  { %3529 = vmatpush1.bf16.msra.mxu0 %v4707_v58  ;;  %v4751_v58 = vld [vmem:[#allocation8 + $0x134] ss:$8 sps:$4 sm:$0xff]   ;;  %s4870_s21 = scalar_lea.vmem %s3788_s20, 32  ;;  %p4875_p11 = scmp.lt.s32.totalorder %s3788_s20, %s3788_s20 }
 0x3f6   :  { %3530 = vmatprep.subr.bf16.mxu0 %v4712_v9  ;;  %4228 = vmatpush3.bf16.msra.mxu1 %v4799_v34  ;;  %v4749_v9 = vld [vmem:[#allocation8 + $0x130] ss:$8 sps:$4 sm:$0xff]   ;;  %v3191_v34 = vrot.slane %v3186_v53, %v5108_v31  ;;  %p4871_p10 = scmp.ne.s32.totalorder %s3788_s20, %s4870_s21  ;;  %p4876_p12 = scmp.lt.s32.totalorder %s4870_s21, %s4870_s21 }
 0x3f7   :  { %4229 = vmatprep.subr.bf16.mxu1 %v4800_v18 }
 0x3f8   :  { %p4877_p13 = por %p4876_p12, %p4875_p11 }
 0x3f9   :  { %3531 = vmatpush1.bf16.msra.mxu0 %v4710_v10  ;;  %v4754_v10 = vld [vmem:[#allocation8 + $0x144] ss:$8 sps:$4 sm:$0xff]  }
 0x3fa   :  { %3532 = vmatprep.subr.bf16.mxu0 %v4715_v11  ;;  %v4752_v11 = vld [vmem:[#allocation8 + $0x140] ss:$8 sps:$4 sm:$0xff]   ;;  %4230 = vmatpush3.bf16.msra.mxu1 %v4801_v39  ;;  %p4878_p0 = pnand %p4877_p13, %p4871_p10 }
 0x3fb   :  { %4231 = vmatprep.subr.bf16.mxu1 %v4802_v49 }
 0x3fd   :  { %3533 = vmatpush1.bf16.msra.mxu0 %v4713_v12  ;;  %v4757_v12 = vld [vmem:[#allocation8 + $0x154] ss:$8 sps:$4 sm:$0xff]  }
 0x3fe   :  { %3534 = vmatprep.subr.bf16.mxu0 %v4718_v13  ;;  %v4755_v13 = vld [vmem:[#allocation8 + $0x150] ss:$8 sps:$4 sm:$0xff]   ;;  %4232 = vmatpush3.bf16.msra.mxu1 %v4803_v52 }
 0x401   :  { %3535 = vmatpush1.bf16.msra.mxu0 %v4716_v14  ;;  %v4760_v14 = vld [vmem:[#allocation8 + $0x164] ss:$8 sps:$4 sm:$0xff]  }
 0x402   :  { %3536 = vmatprep.subr.bf16.mxu0 %v4721_v15  ;;  %v4758_v15 = vld [vmem:[#allocation8 + $0x160] ss:$8 sps:$4 sm:$0xff]  }
 0x405   :  { %3537 = vmatpush1.bf16.msra.mxu0 %v4719_v16  ;;  %v4763_v16 = vld [vmem:[#allocation8 + $0x174] ss:$8 sps:$4 sm:$0xff]  }
 0x406   :  { %3538 = vmatprep.subr.bf16.mxu0 %v4724_v17  ;;  %v4761_v17 = vld [vmem:[#allocation8 + $0x170] ss:$8 sps:$4 sm:$0xff]  }
 0x409   :  { %3539 = vmatpush1.bf16.msra.mxu0 %v4722_v19  ;;  %v4766_v19 = vld [vmem:[#allocation8 + $0x184] ss:$8 sps:$4 sm:$0xff]  }
 0x40a   :  { %3540 = vmatprep.subr.bf16.mxu0 %v4727_v20  ;;  %v4764_v20 = vld [vmem:[#allocation8 + $0x180] ss:$8 sps:$4 sm:$0xff]  }
 0x40d   :  { %3541 = vmatpush1.bf16.msra.mxu0 %v4725_v21  ;;  %v4769_v21 = vld [vmem:[#allocation8 + $0x194] ss:$8 sps:$4 sm:$0xff]  }
 0x40e   :  { %3542 = vmatprep.subr.bf16.mxu0 %v4730_v33  ;;  %v4767_v33 = vld [vmem:[#allocation8 + $0x190] ss:$8 sps:$4 sm:$0xff]  }
 0x411   :  { %3543 = vmatpush1.bf16.msra.mxu0 %v4728_v38  ;;  %v4772_v38 = vld [vmem:[#allocation8 + $0x1a4] ss:$8 sps:$4 sm:$0xff]  }
 0x412   :  { %3544 = vmatprep.subr.bf16.mxu0 %v4733_v44  ;;  %v4770_v44 = vld [vmem:[#allocation8 + $0x1a0] ss:$8 sps:$4 sm:$0xff]  }
 0x415   :  { %3545 = vmatpush1.bf16.msra.mxu0 %v4731_v22  ;;  %v4775_v22 = vld [vmem:[#allocation8 + $0x1b4] ss:$8 sps:$4 sm:$0xff]  }
 0x416   :  { %3546 = vmatprep.subr.bf16.mxu0 %v4736_v23  ;;  %v4773_v23 = vld [vmem:[#allocation8 + $0x1b0] ss:$8 sps:$4 sm:$0xff]  }
 0x419   :  { %3547 = vmatpush1.bf16.msra.mxu0 %v4734_v24  ;;  %v4778_v24 = vld [vmem:[#allocation8 + $0x1c4] ss:$8 sps:$4 sm:$0xff]  }
 0x41a   :  { %3548 = vmatprep.subr.bf16.mxu0 %v4739_v25  ;;  %v4776_v25 = vld [vmem:[#allocation8 + $0x1c0] ss:$8 sps:$4 sm:$0xff]  }
 0x41d   :  { %3549 = vmatpush1.bf16.msra.mxu0 %v4737_v28  ;;  %v4781_v28 = vld [vmem:[#allocation8 + $0x1d4] ss:$8 sps:$4 sm:$0xff]  }
 0x41e   :  { %3559 = vmatprep.subr.bf16.mxu0 %v4742_v29  ;;  %v4779_v29 = vld [vmem:[#allocation8 + $0x1d0] ss:$8 sps:$4 sm:$0xff]  }
 0x4b3   :  { %v2943_v46 = vpop.f32.mrb[8].mxu0 }
 0x4b4   :  { %v4257_v56 = vadd.f32 %v2943_v46, %v1489_v59  ;;  %v5239_v26 = vpop.f32.mrb[32].mxu1  ;;  %v2945_v51 = vpop.f32.mrb[9].mxu0 }
 0x4b5   :  { %v4258_v57 = vadd.f32 %v2945_v51, %v1493_v43  ;;  %v3109_v27 = vpop.f32.mrb[33].mxu1  ;;  %v2947_v60 = vpop.f32.mrb[10].mxu0  ;;  %v4259_v41 = vadd.f32 %v5239_v26, %v1497_v30 }
 0x4b6   :  { %v3114_v61 = vmax.f32 %v4257_v56, 0.0  ;;  %v4260_v62 = vadd.f32 %v3109_v27, %v1501_v55  ;;  %v3111_v63 = vpop.f32.mrb[34].mxu1  ;;  %v2948_v0 = vpop.f32.mrb[11].mxu0 }
 0x4b7   :  { %v3115_v1 = vmax.f32 %v4258_v57, 0.0  ;;  %v3112_v2 = vpop.f32.mrb[35].mxu1  ;;  %v3116_v47 = vmax.f32 %v4259_v41, 0.0 }
 0x4b8   :  { %v3117_v37 = vmax.f32 %v4260_v62, 0.0  ;;  %v3118_v5 = vpack.c.bf16 %v3114_v61, %v3114_v61  ;;  %v4191_v62 = vld [vmem:[%s5289_s12] ss:$0 sm:$0xff] }
 0x4b9   :  { %v3119_v3 = vpack.c.bf16 %v3115_v1, %v3115_v1  ;;  %v3120_v48 = vpack.c.bf16 %v3116_v47, %v3116_v47 }
 0x4ba   :  { %v3121_v40 = vpack.c.bf16 %v3117_v37, %v3117_v37 }
 0x4bb   :  { %3550 = vmatprep.mubr.bf16.mxu0 %v3119_v3 }
 0x4bc   :  { %3551 = vmatmul.mubr.bf16.vlgmr.msra.gmra.mrb[12].mxu0 %v3118_v5 }
 0x4bd   :  { %3560 = vmatpush1.bf16.msra.mxu0 %v4740_v4  ;;  %3591 = vmatprep.mubr.bf16.mxu0 %v3121_v40 }
 0x4be   :  { %3561 = vmatprep.subr.bf16.mxu0 %v4745_v6 }
 0x4c1   :  { %3562 = vmatpush1.bf16.msra.mxu0 %v4743_v7 }
 0x4c2   :  { %3563 = vmatprep.subr.bf16.mxu0 %v4748_v8 }
 0x4c5   :  { %3564 = vmatpush1.bf16.msra.mxu0 %v4746_v54 }
 0x4c6   :  { %3565 = vmatprep.subr.bf16.mxu0 %v4751_v58 }
 0x4c9   :  { %3566 = vmatpush1.bf16.msra.mxu0 %v4749_v9 }
 0x4ca   :  { %3567 = vmatprep.subr.bf16.mxu0 %v4754_v10 }
 0x4cd   :  { %3568 = vmatpush1.bf16.msra.mxu0 %v4752_v11 }
 0x4ce   :  { %3569 = vmatprep.subr.bf16.mxu0 %v4757_v12 }
 0x4d1   :  { %3570 = vmatpush1.bf16.msra.mxu0 %v4755_v13 }
 0x4d2   :  { %3571 = vmatprep.subr.bf16.mxu0 %v4760_v14 }
 0x4d5   :  { %3572 = vmatpush1.bf16.msra.mxu0 %v4758_v15 }
 0x4d6   :  { %3573 = vmatprep.subr.bf16.mxu0 %v4763_v16 }
 0x4d9   :  { %3574 = vmatpush1.bf16.msra.mxu0 %v4761_v17 }
 0x4da   :  { %3575 = vmatprep.subr.bf16.mxu0 %v4766_v19 }
 0x4dd   :  { %3576 = vmatpush1.bf16.msra.mxu0 %v4764_v20 }
 0x4de   :  { %3577 = vmatprep.subr.bf16.mxu0 %v4769_v21 }
 0x4e1   :  { %3578 = vmatpush1.bf16.msra.mxu0 %v4767_v33 }
 0x4e2   :  { %3579 = vmatprep.subr.bf16.mxu0 %v4772_v38 }
 0x4e5   :  { %3580 = vmatpush1.bf16.msra.mxu0 %v4770_v44 }
 0x4e6   :  { %3581 = vmatprep.subr.bf16.mxu0 %v4775_v22 }
 0x4e9   :  { %3582 = vmatpush1.bf16.msra.mxu0 %v4773_v23 }
 0x4ea   :  { %3583 = vmatprep.subr.bf16.mxu0 %v4778_v24 }
 0x4ed   :  { %3584 = vmatpush1.bf16.msra.mxu0 %v4776_v25 }
 0x4ee   :  { %3585 = vmatprep.subr.bf16.mxu0 %v4781_v28 }
 0x4f1   :  { %3586 = vmatpush1.bf16.msra.mxu0 %v4779_v29 }
 0x4f2   :  { %3587 = vmatprep.subr.bf16.mxu0 %v4784_v35 }
 0x4f5   :  { %3588 = vmatpush1.bf16.msra.mxu0 %v4782_v36 }
 0x4f6   :  { %3589 = vmatprep.subr.bf16.mxu0 %v4787_v42 }
 0x4f9   :  { %3590 = vmatpush1.bf16.msra.mxu0 %v4785_v45 }
 0x4fc   :  { %3592 = vmatmul.mubr.bf16.vlgmr.msra.gmra.mrb[12].mxu0 %v3120_v48 }
 0x5cf   :  { %v3593_v59 = vpop.f32.mrb[12].mxu0 }
 0x5d0   :  { %v4261_v43 = vadd.f32 %v3593_v59, %v3191_v34  ;;  %v3595_v55 = vpop.f32.mrb[13].mxu0 }
 0x5d1   :  { %v4262_v46 = vadd.f32 %v3595_v55, %v3195_v50  ;;  %v3597_v56 = vpop.f32.mrb[14].mxu0 }
 0x5d2   :  { %v3600_v26 = vmax.f32 %v4261_v43, 0.0  ;;  %v3598_v51 = vpop.f32.mrb[15].mxu0 }
 0x5d3   :  { %v3601_v57 = vmax.f32 %v4262_v46, 0.0 }
 0x5d4   :  { %v3602_v60 = vpack.c.bf16 %v3600_v26, %v3600_v26 }
 0x5d5   :  { %v3603_v27 = vpack.c.bf16 %v3601_v57, %v3601_v57 }
 0x5d7   :  { %3771 = vmatprep.mubr.bf16.mxu1 %v3603_v27 }
 0x5d8   :  { %3772 = vmatmul.mubr.bf16.vlgmr.msra.gmra.mrb[36].mxu1 %v3602_v60 }
 0x6ab   :  { %v4233_v61 = vpop.f32.mrb[36].mxu1 }
 0x6ac   :  { %v4234_v31 = vpop.f32.mrb[37].mxu1 }
 0x6ad   :  { %v4235_v32 = vadd.f32 %v4234_v31, %v4233_v61  ;;  %v4236_v63 = vpop.f32.mrb[38].mxu1 }
 0x6ae   :  { %v4237_v0 = vpop.f32.mrb[39].mxu1 }
 0x6af   :  { %v3774_v1 = vadd.f32 %v4235_v32, %v4191_v62 }
 0x6b1   :  { %3780 = vst.msk [vmem:[#allocation9] sm:$0x3] %vm3779_vm8, %v3774_v1 }
 0x6b2   :  { %4881 = shalt.err (!%p4878_p0)
}
 0x6b3   :  { %s4882_s12 = scalar_lea.hbm %s5290_s13, 32 }
 0x6b4   :  { %p4883_p1 = scmp.ne.s32.totalorder %s5290_s13, %s4882_s12  ;;  %p4886_p2 = scmp.lt.u32.totalorder %s4882_s12, %s5290_s13 }
 0x6b6   :  { %p4888_p3 = pnand %p4886_p2, %p4883_p1 }
 0x6b8   :  { %4891 = shalt.err (!%p4888_p3)
}
 0x6b9   :  { %3790 = dma.vmem_to_hbm [thread:$0]  %s3788_s20, 32, %s5290_s13, [#allocation5]  }
 0x6ba   :  { %4896 = dma.done.wait [#allocation5], 32  }
 0x6bb   :  { %4897 = vsyncadd [#allocation5], 4294967264 }
 0x6bc   :  { %3794 = vsyncpa [#allocation4], 1 }
 0x6bd   :  { %3795 = vsyncpa [#allocation7], 1 }
 0x6be   :  { %3796 = vsyncpa [#allocation5], 1 }

// kernel: tpu_custom_call.1
= control target key start
LH: loop header
LB: loop body
LE: loop exit
PB: predicated region body
PF: predicated region fallthrough
CT: control target
= control target key end

     0   :  { %18 = vsyncpa [#allocation4], 0  ;;  %s5277_s0 = inlined_call_operand.vmem [shape: f32[2,16,3], index: 0, kind: input, shape index: {}]   ;;  %s5278_s1 = inlined_call_operand.vmem [shape: bf16[3,64], index: 1, kind: input, shape index: {}]   ;;  %s5279_s2 = inlined_call_operand.vmem [shape: f32[1,64], index: 2, kind: input, shape index: {}]   ;;  %s5280_s3 = inlined_call_operand.vmem [shape: bf16[64,128], index: 3, kind: input, shape index: {}]   ;;  %s5281_s4 = inlined_call_operand.vmem [shape: f32[1,128], index: 4, kind: input, shape index: {}]   ;;  %s5282_s5 = inlined_call_operand.hbm [shape: bf16[128,1024], index: 5, kind: input, shape index: {}]   ;;  %s5283_s6 = inlined_call_operand.vmem [shape: f32[1,1024], index: 6, kind: input, shape index: {}]   ;;  %s5284_s7 = inlined_call_operand.hbm [shape: bf16[1024,512], index: 7, kind: input, shape index: {}]   ;;  %s5285_s8 = inlined_call_operand.vmem [shape: f32[1,512], index: 8, kind: input, shape index: {}]   ;;  %s5286_s9 = inlined_call_operand.hbm [shape: bf16[512,256], index: 9, kind: input, shape index: {}]   ;;  %s5287_s10 = inlined_call_operand.vmem [shape: f32[1,256], index: 10, kind: input, shape index: {}]   ;;  %s5288_s11 = inlined_call_operand.vmem [shape: bf16[256,9], index: 11, kind: input, shape index: {}]   ;;  %s5289_s12 = inlined_call_operand.vmem [shape: f32[1,9], index: 12, kind: input, shape index: {}]   ;;  %s5290_s13 = inlined_call_operand.hbm [shape: f32[1,2,9], index: 13, kind: output, shape index: {}]  }
   0x1   :  { %19 = vsyncpa [#allocation7], 0 }
   0x2   :  { %20 = vsyncpa [#allocation5], 0  ;;  %s4898_s25 = smov [#allocation6]   ;;  %s4804_s29 = scalar_lea.hbm %s5284_s7, 32768 }
   0x3   :  { %s50_s26 = sshll.u32 %s4898_s25, 4  ;;  %p4805_p0 = scmp.ne.s32.totalorder %s5284_s7, %s4804_s29  ;;  %s51_s26 = int_to_ptr.vmem [resolvable:$true] %s50_s26 }
   0x4   :  { %p4808_p1 = scmp.lt.u32.totalorder %s4804_s29, %s5284_s7 }
   0x6   :  { %p4810_p2 = pnand %p4808_p1, %p4805_p0 }
   0x8   :  { %4813 = shalt.err (!%p4810_p2)
}
   0x9   :  { %s4814_s17 = scalar_lea.vmem %s51_s26, 32768  ;;  %p4819_p4 = scmp.lt.s32.totalorder %s51_s26, %s51_s26 }
   0xa   :  { %p4815_p3 = scmp.ne.s32.totalorder %s51_s26, %s4814_s17  ;;  %p4820_p5 = scmp.lt.s32.totalorder %s4814_s17, %s4814_s17 }
   0xc   :  { %p4821_p6 = por %p4820_p5, %p4819_p4 }
   0xe   :  { %p4822_p7 = pnand %p4821_p6, %p4815_p3 }
  0x10   :  { %4825 = shalt.err (!%p4822_p7)
}
  0x11   :  { %s4899_s18 = smov 256   ;;  %s4900_s19 = smov 16  }
  0x12   :  { %56 = dma.hbm_to_vmem [thread:$0]  %s5284_s7, 32768, %s51_s26, [#allocation7], %s4899_s18, %s4899_s18, %s4900_s19  }
  0x13   :  { %s4901_s22 = smov [#allocation3]   ;;  %s4826_s27 = scalar_lea.hbm %s5282_s5, 8192 }
  0x14   :  { %s36_s23 = sshll.u32 %s4901_s22, 4  ;;  %p4827_p8 = scmp.ne.s32.totalorder %s5282_s5, %s4826_s27  ;;  %s37_s23 = int_to_ptr.vmem [resolvable:$true] %s36_s23 }
  0x15   :  { %p4830_p9 = scmp.lt.u32.totalorder %s4826_s27, %s5282_s5 }
  0x17   :  { %p4832_p10 = pnand %p4830_p9, %p4827_p8 }
  0x19   :  { %4835 = shalt.err (!%p4832_p10)
}
  0x1a   :  { %s4836_s15 = scalar_lea.vmem %s37_s23, 8192  ;;  %p4841_p12 = scmp.lt.s32.totalorder %s37_s23, %s37_s23 }
  0x1b   :  { %p4837_p11 = scmp.ne.s32.totalorder %s37_s23, %s4836_s15  ;;  %p4842_p13 = scmp.lt.s32.totalorder %s4836_s15, %s4836_s15 }
  0x1d   :  { %p4843_p0 = por %p4842_p13, %p4841_p12 }
  0x1f   :  { %p4844_p1 = pnand %p4843_p0, %p4837_p11 }
  0x21   :  { %4847 = shalt.err (!%p4844_p1)
}
  0x22   :  { %s4902_s7 = smov 512   ;;  %s4903_s26 = smov 32  }
  0x23   :  { %42 = dma.hbm_to_vmem [thread:$0]  %s5282_s5, 8192, %s37_s23, [#allocation4], %s4902_s7, %s4902_s7, %s4903_s26  }
  0x24   :  { %s4904_s18 = smov [#allocation8]   ;;  %s4848_s22 = scalar_lea.hbm %s5286_s9, 8192 }
  0x25   :  { %s64_s19 = sshll.u32 %s4904_s18, 4  ;;  %p4849_p2 = scmp.ne.s32.totalorder %s5286_s9, %s4848_s22  ;;  %s65_s19 = int_to_ptr.vmem [resolvable:$true] %s64_s19 }
  0x26   :  { %p4852_p3 = scmp.lt.u32.totalorder %s4848_s22, %s5286_s9 }
  0x28   :  { %p4854_p4 = pnand %p4852_p3, %p4849_p2 }
  0x2a   :  { %4857 = shalt.err (!%p4854_p4)
}
  0x2b   :  { %s4858_s29 = scalar_lea.vmem %s65_s19, 8192  ;;  %p4863_p6 = scmp.lt.s32.totalorder %s65_s19, %s65_s19 }
  0x2c   :  { %p4859_p5 = scmp.ne.s32.totalorder %s65_s19, %s4858_s29  ;;  %p4864_p7 = scmp.lt.s32.totalorder %s4858_s29, %s4858_s29 }
  0x2e   :  { %p4865_p8 = por %p4864_p7, %p4863_p6 }
  0x30   :  { %p4866_p9 = pnand %p4865_p8, %p4859_p5 }
  0x32   :  { %4869 = shalt.err (!%p4866_p9)
}
  0x33   :  { %s4905_s5 = smov 128   ;;  %s4906_s23 = smov 8  }
  0x34   :  { %70 = dma.hbm_to_vmem [thread:$0]  %s5286_s9, 8192, %s65_s19, [#allocation7], %s4905_s5, %s4905_s5, %s4906_s23  }
  0x35   :  { %4892 = dma.done.wait [#allocation4], 8192  }
  0x36   :  { %4893 = vsyncadd [#allocation4], 4294959104 }
  0x37   :  { %4894 = dma.done.wait [#allocation7], 40960  }
  0x38   :  { %4895 = vsyncadd [#allocation7], 4294926336  ;;  %vm114_vm0 = vcmask 1040384   ;;  %vm115_vm1 = vcmask 1041408   ;;  %v4907_v0 = vmov 65535   ;;  %v93_v4 = vld [vmem:[%s5277_s0] sm:$0xff] }
  0x39   :  { %v116_v1 = vsel %vm114_vm0, 4294967295, %v4907_v0  ;;  %v99_v3 = vld [vmem:[%s5278_s1] sm:$0x3]  ;;  %v94_v5 = vld [vmem:[%s5277_s0 + $0x8] sm:$0xff]  ;;  %vm107_vm2 = vcmask 23552   ;;  %v95_v8 = vld [vmem:[%s5277_s0 + $0x10] sm:$0xff] }
  0x3a   :  { %v117_v2 = vsel %vm115_vm1, %v116_v1, 0  ;;  %v97_v7 = vpack.c.bf16 %v94_v5, %v93_v4  ;;  %v96_v9 = vld [vmem:[%s5277_s0 + $0x18] sm:$0xff]  ;;  %v4304_v10 = vld [vmem:[%s5280_s3] sm:$0xff]   ;;  %v4305_v12 = vld [vmem:[%s5280_s3 + $0x8] sm:$0xff]   ;;  %vm215_vm3 = vcmask 523264   ;;  %vm1076_vm4 = vcmask 1041409  }
  0x3b   :  { %v119_v6 = vand.u32 %v117_v2, %v99_v3  ;;  %v98_v11 = vpack.c.bf16 %v96_v9, %v95_v8  ;;  %v4306_v13 = vld [vmem:[%s5280_s3 + $0x10] sm:$0xff]   ;;  %v4307_v14 = vld [vmem:[%s5280_s3 + $0x18] sm:$0xff]   ;;  %v5044_v15 = vld [vmem:[#allocation3] sm:$0xff]  ;;  %vm1078_vm5 = vcmask 1043459   ;;  %vm1080_vm6 = vcmask 1045509  }
  0x3c   :  { %4241 = vmatprep.mubr.msk.bf16.mxu1 %vm107_vm2, %v97_v7  ;;  %v5046_v16 = vld [vmem:[#allocation3 + $0x20] sm:$0xff]  ;;  %v279_v19 = vld [vmem:[#allocation3 + $0x10] sm:$0xff]  ;;  %vm1082_vm7 = vcmask 1047559   ;;  %vm3779_vm8 = vcmask 66560  }
  0x3d   :  { %4239 = vmatprep.subr.bf16.mxu1 %v119_v6  ;;  %v3807_v17 = vcombine.low %v5044_v15, %v5046_v16  ;;  %v3808_v18 = vcombine.high %v5044_v15, %v5046_v16  ;;  %v283_v20 = vld [vmem:[#allocation3 + $0x30] sm:$0xff]  ;;  %v3797_v43 = vld [vmem:[%s5279_s2] ss:$0 sm:$0xff] }
  0x3e   :  { %4240 = vmatpush3.bf16.msra.mxu1 %v119_v6  ;;  %v3812_v21 = vcombine.high %v279_v19, %v283_v20  ;;  %v3811_v22 = vcombine.low %v279_v19, %v283_v20  ;;  %v287_v23 = vld [vmem:[#allocation3 + $0x50] sm:$0xff]  ;;  %v285_v56 = vld [vmem:[#allocation3 + $0x40] sm:$0xff] }
  0x3f   :  { %4245 = vmatprep.subr.bf16.mxu1 %v4304_v10  ;;  %v291_v24 = vld [vmem:[#allocation3 + $0x70] sm:$0xff]  ;;  %v289_v57 = vld [vmem:[#allocation3 + $0x60] sm:$0xff] }
  0x40   :  { %767 = vmatprep.subr.bf16.mxu0 %v3812_v21  ;;  %v3820_v25 = vcombine.high %v287_v23, %v291_v24  ;;  %v3819_v26 = vcombine.low %v287_v23, %v291_v24  ;;  %v295_v27 = vld [vmem:[#allocation3 + $0x90] sm:$0xff]  ;;  %v3816_v60 = vcombine.high %v285_v56, %v289_v57  ;;  %v293_v61 = vld [vmem:[#allocation3 + $0x80] sm:$0xff]  ;;  %v3815_v63 = vcombine.low %v285_v56, %v289_v57  ;;  %v302_v57 = vld [vmem:[#allocation3 + $0xc8] sm:$0xff] }
  0x41   :  { %4242 = vmatmul.mubr.msk.bf16.vlgmr.msra.gmra.mrb[0].mxu1 %vm107_vm2, %v98_v11  ;;  %768 = vmatpush1.bf16.msra.mxu0 %v3811_v22  ;;  %v299_v28 = vld [vmem:[#allocation3 + $0xb0] sm:$0xff]  ;;  %v297_v62 = vld [vmem:[#allocation3 + $0xa0] sm:$0xff] }
  0x42   :  { %4246 = vmatpush3.bf16.msra.mxu1 %v4304_v10  ;;  %769 = vmatprep.subr.bf16.mxu0 %v3820_v25  ;;  %v3828_v29 = vcombine.high %v295_v27, %v299_v28  ;;  %v3827_v30 = vcombine.low %v295_v27, %v299_v28  ;;  %v303_v31 = vld [vmem:[#allocation3 + $0xd0] sm:$0xff]  ;;  %v3824_v0 = vcombine.high %v293_v61, %v297_v62  ;;  %v301_v1 = vld [vmem:[#allocation3 + $0xc0] sm:$0xff] }
  0x43   :  { %4247 = vmatprep.subr.bf16.mxu1 %v4305_v12  ;;  %v307_v32 = vld [vmem:[#allocation3 + $0xf0] sm:$0xff]  ;;  %v305_v2 = vld [vmem:[#allocation3 + $0xe0] sm:$0xff]  ;;  %v3823_v3 = vcombine.low %v293_v61, %v297_v62  ;;  %v310_v61 = vld [vmem:[#allocation3 + $0x108] sm:$0xff] }
  0x44   :  { %v3836_v33 = vcombine.high %v303_v31, %v307_v32  ;;  %v3835_v34 = vcombine.low %v303_v31, %v307_v32  ;;  %v311_v35 = vld [vmem:[#allocation3 + $0x110] sm:$0xff]  ;;  %v3832_v4 = vcombine.high %v301_v1, %v305_v2  ;;  %v309_v5 = vld [vmem:[#allocation3 + $0x100] sm:$0xff]  ;;  %v3831_v7 = vcombine.low %v301_v1, %v305_v2  ;;  %v282_v31 = vld [vmem:[#allocation3 + $0x28] sm:$0xff] }
  0x45   :  { %770 = vmatpush1.bf16.msra.mxu0 %v3819_v26  ;;  %v315_v36 = vld [vmem:[#allocation3 + $0x130] sm:$0xff]  ;;  %v313_v6 = vld [vmem:[#allocation3 + $0x120] sm:$0xff]  ;;  %v314_v62 = vld [vmem:[#allocation3 + $0x128] sm:$0xff] }
  0x46   :  { %4248 = vmatpush3.bf16.msra.mxu1 %v4305_v12  ;;  %771 = vmatprep.subr.bf16.mxu0 %v3828_v29  ;;  %v3844_v37 = vcombine.high %v311_v35, %v315_v36  ;;  %v3843_v38 = vcombine.low %v311_v35, %v315_v36  ;;  %v319_v39 = vld [vmem:[#allocation3 + $0x150] sm:$0xff]  ;;  %v3840_v8 = vcombine.high %v309_v5, %v313_v6  ;;  %v317_v9 = vld [vmem:[#allocation3 + $0x140] sm:$0xff]  ;;  %v318_v1 = vld [vmem:[#allocation3 + $0x148] sm:$0xff] }
  0x47   :  { %4249 = vmatprep.subr.bf16.mxu1 %v4306_v13  ;;  %v323_v40 = vld [vmem:[#allocation3 + $0x170] sm:$0xff]  ;;  %v321_v10 = vld [vmem:[#allocation3 + $0x160] sm:$0xff]  ;;  %v3839_v11 = vcombine.low %v309_v5, %v313_v6  ;;  %v322_v2 = vld [vmem:[#allocation3 + $0x168] sm:$0xff] }
  0x48   :  { %v3852_v41 = vcombine.high %v319_v39, %v323_v40  ;;  %v3851_v42 = vcombine.low %v319_v39, %v323_v40  ;;  %v3848_v12 = vcombine.high %v317_v9, %v321_v10  ;;  %v329_v15 = vld [vmem:[#allocation3 + $0x1a0] sm:$0xff]  ;;  %v335_v25 = vld [vmem:[#allocation3 + $0x1d0] sm:$0xff]  ;;  %v326_v5 = vld [vmem:[#allocation3 + $0x188] sm:$0xff] }
  0x49   :  { %772 = vmatpush1.bf16.msra.mxu0 %v3827_v30  ;;  %v333_v22 = vld [vmem:[#allocation3 + $0x1c0] sm:$0xff]  ;;  %v339_v26 = vld [vmem:[#allocation3 + $0x1f0] sm:$0xff]  ;;  %v278_v30 = vld [vmem:[#allocation3 + $0x8] sm:$0xff] }
  0x4a   :  { %4250 = vmatpush3.bf16.msra.mxu1 %v4306_v13  ;;  %773 = vmatprep.subr.bf16.mxu0 %v3836_v33  ;;  %v3847_v13 = vcombine.low %v317_v9, %v321_v10  ;;  %v337_v23 = vld [vmem:[#allocation3 + $0x1e0] sm:$0xff]  ;;  %v3868_v28 = vcombine.high %v335_v25, %v339_v26  ;;  %v3867_v29 = vcombine.low %v335_v25, %v339_v26  ;;  %v330_v6 = vld [vmem:[#allocation3 + $0x1a8] sm:$0xff]  ;;  %v304_v25 = vld [vmem:[#allocation3 + $0xd8] sm:$0xff] }
  0x4b   :  { %4251 = vmatprep.subr.bf16.mxu1 %v4307_v14  ;;  %v3864_v24 = vcombine.high %v333_v22, %v337_v23  ;;  %v3863_v27 = vcombine.low %v333_v22, %v337_v23  ;;  %v3810_v32 = vcombine.high %v278_v30, %v282_v31  ;;  %v3809_v33 = vcombine.low %v278_v30, %v282_v31  ;;  %v3800_v35 = vld [vmem:[%s5281_s4] ss:$0 sm:$0xff]  ;;  %v334_v9 = vld [vmem:[#allocation3 + $0x1c8] sm:$0xff]  ;;  %v300_v22 = vld [vmem:[#allocation3 + $0xb8] sm:$0xff] }
  0x4c   :  { %v338_v10 = vld [vmem:[#allocation3 + $0x1e8] sm:$0xff]  ;;  %v308_v26 = vld [vmem:[#allocation3 + $0xf8] sm:$0xff] }
  0x4d   :  { %774 = vmatpush1.bf16.msra.mxu0 %v3835_v34  ;;  %v4908_v34 = vmov 0   ;;  %v316_v30 = vld [vmem:[#allocation3 + $0x138] sm:$0xff]  ;;  %v3837_v31 = vcombine.low %v304_v25, %v308_v26 }
  0x4e   :  { %4252 = vmatpush3.bf16.msra.mxu1 %v4307_v14  ;;  %775 = vmatprep.subr.bf16.mxu0 %v3844_v37  ;;  %v325_v14 = vld [vmem:[#allocation3 + $0x180] sm:$0xff] }
  0x4f   :  { %661 = vmatprep.subr.bf16.mxu1 %v3808_v18  ;;  %v3856_v16 = vcombine.high %v325_v14, %v329_v15  ;;  %v331_v18 = vld [vmem:[#allocation3 + $0x1b0] sm:$0xff]  ;;  %v3855_v19 = vcombine.low %v325_v14, %v329_v15  ;;  %799 = vmatprep.mubr.bf16.mxu0 %v4908_v34  ;;  %v284_v14 = vld [vmem:[#allocation3 + $0x38] sm:$0xff]  ;;  %v3865_v15 = vcombine.low %v334_v9, %v338_v10 }
  0x51   :  { %776 = vmatpush1.bf16.msra.mxu0 %v3843_v38 }
  0x52   :  { %777 = vmatprep.subr.bf16.mxu0 %v3852_v41 }
  0x55   :  { %778 = vmatpush1.bf16.msra.mxu0 %v3851_v42 }
 0x114   :  { %v4243_v44 = vpop.f32.mrb[0].mxu1 }
 0x115   :  { %v164_v45 = vadd.f32 %v4243_v44, %v3797_v43  ;;  %v155_v46 = vpop.f32.mrb[1].mxu1 }
 0x116   :  { %v156_v47 = vadd.f32 %v3797_v43, %v155_v46  ;;  %v4244_v48 = vpop.f32.mrb[2].mxu1  ;;  %v286_v46 = vld [vmem:[#allocation3 + $0x48] sm:$0xff] }
 0x117   :  { %v167_v49 = vadd.f32 %v4244_v48, %v3797_v43  ;;  %v158_v50 = vpop.f32.mrb[3].mxu1  ;;  %v172_v52 = vmax.f32 %v164_v45, 0.0 }
 0x118   :  { %v159_v51 = vadd.f32 %v3797_v43, %v158_v50  ;;  %v170_v54 = vmax.f32 %v156_v47, 0.0  ;;  %v290_v47 = vld [vmem:[#allocation3 + $0x68] sm:$0xff] }
 0x119   :  { %v173_v53 = vmax.f32 %v167_v49, 0.0 }
 0x11a   :  { %v171_v55 = vmax.f32 %v159_v51, 0.0 }
 0x11b   :  { %v175_v58 = vpack.c.bf16 %v173_v53, %v172_v52  ;;  %v3818_v52 = vcombine.high %v286_v46, %v290_v47  ;;  %v294_v53 = vld [vmem:[#allocation3 + $0x88] sm:$0xff] }
 0x11c   :  { %v174_v59 = vpack.c.bf16 %v171_v55, %v170_v54  ;;  %v298_v54 = vld [vmem:[#allocation3 + $0xa8] sm:$0xff]  ;;  %v3817_v55 = vcombine.low %v286_v46, %v290_v47  ;;  %v4310_v47 = vld [vmem:[#allocation6 + $0x4] ss:$16 sps:$4 sm:$0xff]  }
 0x11d   :  { %v3826_v56 = vcombine.high %v294_v53, %v298_v54 }
 0x11e   :  { %4253 = vmatprep.mubr.msk.bf16.mxu1 %vm215_vm3, %v174_v59  ;;  %v3825_v59 = vcombine.low %v294_v53, %v298_v54  ;;  %v4316_v53 = vld [vmem:[#allocation6 + $0x24] ss:$16 sps:$4 sm:$0xff]   ;;  %v4319_v54 = vld [vmem:[#allocation6 + $0x2c] ss:$16 sps:$4 sm:$0xff]  }
 0x11f   :  { %4254 = vmatmul.mubr.msk.bf16.vlgmr.msra.gmra.mrb[4].mxu1 %vm215_vm3, %v175_v58  ;;  %v306_v58 = vld [vmem:[#allocation3 + $0xe8] sm:$0xff] }
 0x120   :  { %662 = vmatpush1.bf16.msra.mxu1 %v3807_v17  ;;  %v327_v17 = vld [vmem:[#allocation3 + $0x190] sm:$0xff]  ;;  %693 = vmatprep.mubr.bf16.mxu1 %v4908_v34 }
 0x121   :  { %663 = vmatprep.subr.bf16.mxu1 %v3816_v60  ;;  %v3860_v20 = vcombine.high %v327_v17, %v331_v18  ;;  %v3859_v21 = vcombine.low %v327_v17, %v331_v18  ;;  %v3834_v60 = vcombine.high %v302_v57, %v306_v58  ;;  %v288_v17 = vld [vmem:[#allocation3 + $0x58] sm:$0xff] }
 0x122   :  { %v292_v18 = vld [vmem:[#allocation3 + $0x78] sm:$0xff] }
 0x123   :  { %779 = vmatprep.subr.bf16.mxu0 %v3860_v20  ;;  %v3822_v20 = vcombine.high %v288_v17, %v292_v18  ;;  %v3821_v23 = vcombine.low %v288_v17, %v292_v18  ;;  %v4359_v17 = vld [vmem:[#allocation6 + $0x108] ss:$16 sps:$4 sm:$0xff]   ;;  %v4364_v18 = vld [vmem:[#allocation6 + $0x124] ss:$16 sps:$4 sm:$0xff]  }
 0x124   :  { %664 = vmatpush1.bf16.msra.mxu1 %v3815_v63  ;;  %780 = vmatpush1.bf16.msra.mxu0 %v3859_v21  ;;  %v3833_v63 = vcombine.low %v302_v57, %v306_v58  ;;  %v296_v21 = vld [vmem:[#allocation3 + $0x98] sm:$0xff]  ;;  %v4320_v57 = vld [vmem:[#allocation6 + $0x40] ss:$16 sps:$4 sm:$0xff]   ;;  %v4328_v58 = vld [vmem:[#allocation6 + $0x64] ss:$16 sps:$4 sm:$0xff]  }
 0x125   :  { %665 = vmatprep.subr.bf16.mxu1 %v3824_v0  ;;  %781 = vmatprep.subr.bf16.mxu0 %v3868_v28  ;;  %v3842_v0 = vcombine.high %v310_v61, %v314_v62  ;;  %v3838_v28 = vcombine.high %v304_v25, %v308_v26  ;;  %v4371_v25 = vld [vmem:[#allocation6 + $0x148] ss:$16 sps:$4 sm:$0xff]   ;;  %v4376_v26 = vld [vmem:[#allocation6 + $0x164] ss:$16 sps:$4 sm:$0xff]  }
 0x128   :  { %666 = vmatpush1.bf16.msra.mxu1 %v3823_v3  ;;  %782 = vmatpush1.bf16.msra.mxu0 %v3867_v29  ;;  %v3841_v3 = vcombine.low %v310_v61, %v314_v62  ;;  %v312_v29 = vld [vmem:[#allocation3 + $0x118] sm:$0xff]  ;;  %v4334_v62 = vld [vmem:[#allocation6 + $0x84] ss:$16 sps:$4 sm:$0xff]  }
 0x129   :  { %667 = vmatprep.subr.bf16.mxu1 %v3832_v4  ;;  %v3850_v4 = vcombine.high %v318_v1, %v322_v2  ;;  %2786 = vmatprep.subr.bf16.mxu0 %v4310_v47  ;;  %v4329_v61 = vld [vmem:[#allocation6 + $0x68] ss:$16 sps:$4 sm:$0xff]   ;;  %v4406_v47 = vld [vmem:[#allocation6 + $0x204] ss:$16 sps:$4 sm:$0xff]  }
 0x12c   :  { %668 = vmatpush1.bf16.msra.mxu1 %v3831_v7  ;;  %v3849_v7 = vcombine.low %v318_v1, %v322_v2  ;;  %v4335_v1 = vld [vmem:[#allocation6 + $0x88] ss:$16 sps:$4 sm:$0xff]   ;;  %v4340_v2 = vld [vmem:[#allocation6 + $0xa4] ss:$16 sps:$4 sm:$0xff]  }
 0x12d   :  { %669 = vmatprep.subr.bf16.mxu1 %v3840_v8  ;;  %v3858_v8 = vcombine.high %v326_v5, %v330_v6 }
 0x130   :  { %670 = vmatpush1.bf16.msra.mxu1 %v3839_v11  ;;  %v3857_v11 = vcombine.low %v326_v5, %v330_v6  ;;  %v4341_v5 = vld [vmem:[#allocation6 + $0xa8] ss:$16 sps:$4 sm:$0xff]   ;;  %v4346_v6 = vld [vmem:[#allocation6 + $0xc4] ss:$16 sps:$4 sm:$0xff]  }
 0x131   :  { %671 = vmatprep.subr.bf16.mxu1 %v3848_v12  ;;  %v3866_v12 = vcombine.high %v334_v9, %v338_v10  ;;  %v4347_v9 = vld [vmem:[#allocation6 + $0xc8] ss:$16 sps:$4 sm:$0xff]   ;;  %v4352_v10 = vld [vmem:[#allocation6 + $0xe4] ss:$16 sps:$4 sm:$0xff]  }
 0x134   :  { %672 = vmatpush1.bf16.msra.mxu1 %v3847_v13  ;;  %v280_v13 = vld [vmem:[#allocation3 + $0x18] sm:$0xff] }
 0x135   :  { %673 = vmatprep.subr.bf16.mxu1 %v3856_v16  ;;  %v3814_v16 = vcombine.high %v280_v13, %v284_v14 }
 0x138   :  { %674 = vmatpush1.bf16.msra.mxu1 %v3855_v19  ;;  %v3813_v19 = vcombine.low %v280_v13, %v284_v14  ;;  %v4353_v13 = vld [vmem:[#allocation6 + $0xe8] ss:$16 sps:$4 sm:$0xff]   ;;  %v4358_v14 = vld [vmem:[#allocation6 + $0x104] ss:$16 sps:$4 sm:$0xff]  }
 0x139   :  { %675 = vmatprep.subr.bf16.mxu1 %v3864_v24  ;;  %v3830_v24 = vcombine.high %v296_v21, %v300_v22 }
 0x13c   :  { %676 = vmatpush1.bf16.msra.mxu1 %v3863_v27  ;;  %v3829_v27 = vcombine.low %v296_v21, %v300_v22  ;;  %v4365_v21 = vld [vmem:[#allocation6 + $0x128] ss:$16 sps:$4 sm:$0xff]   ;;  %v4370_v22 = vld [vmem:[#allocation6 + $0x144] ss:$16 sps:$4 sm:$0xff]  }
 0x13d   :  { %714 = vmatprep.subr.bf16.mxu1 %v3810_v32  ;;  %v3846_v32 = vcombine.high %v312_v29, %v316_v30 }
 0x1f2   :  { %v4255_v36 = vpop.f32.mrb[4].mxu1 }
 0x1f3   :  { %v265_v37 = vadd.f32 %v4255_v36, %v3800_v35  ;;  %v256_v38 = vpop.f32.mrb[5].mxu1  ;;  %v3845_v36 = vcombine.low %v312_v29, %v316_v30  ;;  %v4377_v29 = vld [vmem:[#allocation6 + $0x168] ss:$16 sps:$4 sm:$0xff]   ;;  %v4382_v30 = vld [vmem:[#allocation6 + $0x184] ss:$16 sps:$4 sm:$0xff]  }
 0x1f4   :  { %v257_v39 = vadd.f32 %v3800_v35, %v256_v38  ;;  %v4256_v40 = vpop.f32.mrb[6].mxu1  ;;  %v328_v38 = vld [vmem:[#allocation3 + $0x198] sm:$0xff] }
 0x1f5   :  { %v268_v41 = vadd.f32 %v4256_v40, %v3800_v35  ;;  %v259_v42 = vpop.f32.mrb[7].mxu1  ;;  %v273_v44 = vmax.f32 %v265_v37, 0.0 }
 0x1f6   :  { %v260_v43 = vadd.f32 %v3800_v35, %v259_v42  ;;  %v271_v48 = vmax.f32 %v257_v39, 0.0  ;;  %v324_v35 = vld [vmem:[#allocation3 + $0x178] sm:$0xff] }
 0x1f7   :  { %v274_v45 = vmax.f32 %v268_v41, 0.0  ;;  %v332_v39 = vld [vmem:[#allocation3 + $0x1b8] sm:$0xff] }
 0x1f8   :  { %v272_v49 = vmax.f32 %v260_v43, 0.0  ;;  %v3862_v41 = vcombine.high %v328_v38, %v332_v39  ;;  %v336_v42 = vld [vmem:[#allocation3 + $0x1d8] sm:$0xff] }
 0x1f9   :  { %v5060_v50 = vpack.c.bf16 %v274_v45, %v273_v44  ;;  %v340_v43 = vld [vmem:[#allocation3 + $0x1f8] sm:$0xff]  ;;  %v3861_v44 = vcombine.low %v328_v38, %v332_v39  ;;  %v4394_v39 = vld [vmem:[#allocation6 + $0x1c4] ss:$16 sps:$4 sm:$0xff]  }
 0x1fa   :  { %v5062_v51 = vpack.c.bf16 %v272_v49, %v271_v48  ;;  %v3870_v45 = vcombine.high %v336_v42, %v340_v43  ;;  %v3869_v46 = vcombine.low %v336_v42, %v340_v43  ;;  %v4313_v48 = vld [vmem:[#allocation6 + $0xc] ss:$16 sps:$4 sm:$0xff]   ;;  %v4308_v49 = vld [vmem:[#allocation6] ss:$16 sps:$4 sm:$0xff]   ;;  %v4389_v38 = vld [vmem:[#allocation6 + $0x1a8] ss:$16 sps:$4 sm:$0xff]  }
 0x1fb   :  { %v4395_v42 = vld [vmem:[#allocation6 + $0x1c8] ss:$16 sps:$4 sm:$0xff]   ;;  %v4400_v43 = vld [vmem:[#allocation6 + $0x1e4] ss:$16 sps:$4 sm:$0xff]  }
 0x1fc   :  { %694 = vmatmul.mubr.bf16.vlgmr.msra.gmra.mrb[8].mxu1 %v5062_v51  ;;  %800 = vmatmul.mubr.bf16.vlgmr.msra.gmra.mrb[0].mxu0 %v5062_v51 }
 0x1fd   :  { %715 = vmatpush1.bf16.msra.mxu1 %v3809_v33  ;;  %703 = vmatprep.mubr.bf16.mxu1 %v4908_v34  ;;  %v320_v33 = vld [vmem:[#allocation3 + $0x158] sm:$0xff] }
 0x1fe   :  { %716 = vmatprep.subr.bf16.mxu1 %v3818_v52  ;;  %809 = vmatprep.mubr.bf16.mxu0 %v4908_v34  ;;  %v3854_v37 = vcombine.high %v320_v33, %v324_v35  ;;  %v3853_v40 = vcombine.low %v320_v33, %v324_v35  ;;  %v4311_v52 = vld [vmem:[#allocation6 + $0x8] ss:$16 sps:$4 sm:$0xff]   ;;  %v4388_v35 = vld [vmem:[#allocation6 + $0x1a4] ss:$16 sps:$4 sm:$0xff]  }
 0x1ff   :  { %2787 = vmatpush1.bf16.msra.mxu0 %v4308_v49  ;;  %v4383_v33 = vld [vmem:[#allocation6 + $0x188] ss:$16 sps:$4 sm:$0xff]  }
 0x200   :  { %2788 = vmatprep.subr.bf16.mxu0 %v4316_v53 }
 0x201   :  { %717 = vmatpush1.bf16.msra.mxu1 %v3817_v55  ;;  %v4314_v55 = vld [vmem:[#allocation6 + $0x20] ss:$16 sps:$4 sm:$0xff]  }
 0x202   :  { %718 = vmatprep.subr.bf16.mxu1 %v3826_v56  ;;  %v4317_v56 = vld [vmem:[#allocation6 + $0x28] ss:$16 sps:$4 sm:$0xff]  }
 0x203   :  { %2789 = vmatpush1.bf16.msra.mxu0 %v4314_v55 }
 0x204   :  { %704 = vmatmul.mubr.bf16.gmra.mrb[12].mxu1 %v5060_v50  ;;  %810 = vmatmul.mubr.bf16.gmra.mrb[4].mxu0 %v5060_v50 }
 0x205   :  { %719 = vmatpush1.bf16.msra.mxu1 %v3825_v59  ;;  %746 = vmatprep.mubr.bf16.mxu1 %v4908_v34  ;;  %v4331_v59 = vld [vmem:[#allocation6 + $0x6c] ss:$16 sps:$4 sm:$0xff]  }
 0x206   :  { %720 = vmatprep.subr.bf16.mxu1 %v3834_v60  ;;  %v4326_v60 = vld [vmem:[#allocation6 + $0x60] ss:$16 sps:$4 sm:$0xff]  }
 0x209   :  { %721 = vmatpush1.bf16.msra.mxu1 %v3833_v63  ;;  %v4337_v63 = vld [vmem:[#allocation6 + $0x8c] ss:$16 sps:$4 sm:$0xff]  }
 0x20a   :  { %722 = vmatprep.subr.bf16.mxu1 %v3842_v0  ;;  %v4332_v0 = vld [vmem:[#allocation6 + $0x80] ss:$16 sps:$4 sm:$0xff]  }
 0x20d   :  { %723 = vmatpush1.bf16.msra.mxu1 %v3841_v3  ;;  %v4343_v3 = vld [vmem:[#allocation6 + $0xac] ss:$16 sps:$4 sm:$0xff]  }
 0x20e   :  { %724 = vmatprep.subr.bf16.mxu1 %v3850_v4  ;;  %v4338_v4 = vld [vmem:[#allocation6 + $0xa0] ss:$16 sps:$4 sm:$0xff]  }
 0x211   :  { %725 = vmatpush1.bf16.msra.mxu1 %v3849_v7  ;;  %v4349_v7 = vld [vmem:[#allocation6 + $0xcc] ss:$16 sps:$4 sm:$0xff]  }
 0x212   :  { %726 = vmatprep.subr.bf16.mxu1 %v3858_v8  ;;  %v4344_v8 = vld [vmem:[#allocation6 + $0xc0] ss:$16 sps:$4 sm:$0xff]  }
 0x215   :  { %727 = vmatpush1.bf16.msra.mxu1 %v3857_v11  ;;  %v4355_v11 = vld [vmem:[#allocation6 + $0xec] ss:$16 sps:$4 sm:$0xff]  }
 0x216   :  { %728 = vmatprep.subr.bf16.mxu1 %v3866_v12  ;;  %v4350_v12 = vld [vmem:[#allocation6 + $0xe0] ss:$16 sps:$4 sm:$0xff]  }
 0x219   :  { %729 = vmatpush1.bf16.msra.mxu1 %v3865_v15  ;;  %v4361_v15 = vld [vmem:[#allocation6 + $0x10c] ss:$16 sps:$4 sm:$0xff]  }
 0x21a   :  { %820 = vmatprep.subr.bf16.mxu1 %v3814_v16  ;;  %v4356_v16 = vld [vmem:[#allocation6 + $0x100] ss:$16 sps:$4 sm:$0xff]  }
 0x21c   :  { %747 = vmatmul.mubr.bf16.vlgmr.msra.gmra.mrb[16].mxu1 %v5062_v51 }
 0x21d   :  { %821 = vmatpush1.bf16.msra.mxu1 %v3813_v19  ;;  %756 = vmatprep.mubr.bf16.mxu1 %v4908_v34  ;;  %v4367_v19 = vld [vmem:[#allocation6 + $0x12c] ss:$16 sps:$4 sm:$0xff]  }
 0x21e   :  { %822 = vmatprep.subr.bf16.mxu1 %v3822_v20  ;;  %v4362_v20 = vld [vmem:[#allocation6 + $0x120] ss:$16 sps:$4 sm:$0xff]  }
 0x221   :  { %823 = vmatpush1.bf16.msra.mxu1 %v3821_v23  ;;  %v4373_v23 = vld [vmem:[#allocation6 + $0x14c] ss:$16 sps:$4 sm:$0xff]  }
 0x222   :  { %824 = vmatprep.subr.bf16.mxu1 %v3830_v24  ;;  %v4368_v24 = vld [vmem:[#allocation6 + $0x140] ss:$16 sps:$4 sm:$0xff]  }
 0x224   :  { %757 = vmatmul.mubr.bf16.gmra.mrb[20].mxu1 %v5060_v50 }
 0x225   :  { %825 = vmatpush1.bf16.msra.mxu1 %v3829_v27  ;;  %852 = vmatprep.mubr.bf16.mxu1 %v4908_v34  ;;  %v4379_v27 = vld [vmem:[#allocation6 + $0x16c] ss:$16 sps:$4 sm:$0xff]  }
 0x226   :  { %826 = vmatprep.subr.bf16.mxu1 %v3838_v28  ;;  %v4374_v28 = vld [vmem:[#allocation6 + $0x160] ss:$16 sps:$4 sm:$0xff]  }
 0x229   :  { %827 = vmatpush1.bf16.msra.mxu1 %v3837_v31  ;;  %v4385_v31 = vld [vmem:[#allocation6 + $0x18c] ss:$16 sps:$4 sm:$0xff]  }
 0x22a   :  { %828 = vmatprep.subr.bf16.mxu1 %v3846_v32  ;;  %v4380_v32 = vld [vmem:[#allocation6 + $0x180] ss:$16 sps:$4 sm:$0xff]  }
 0x22d   :  { %829 = vmatpush1.bf16.msra.mxu1 %v3845_v36  ;;  %v4391_v36 = vld [vmem:[#allocation6 + $0x1ac] ss:$16 sps:$4 sm:$0xff]  }
 0x22e   :  { %830 = vmatprep.subr.bf16.mxu1 %v3854_v37  ;;  %v4386_v37 = vld [vmem:[#allocation6 + $0x1a0] ss:$16 sps:$4 sm:$0xff]  }
 0x231   :  { %831 = vmatpush1.bf16.msra.mxu1 %v3853_v40  ;;  %v4397_v40 = vld [vmem:[#allocation6 + $0x1cc] ss:$16 sps:$4 sm:$0xff]  }
 0x232   :  { %832 = vmatprep.subr.bf16.mxu1 %v3862_v41  ;;  %v4392_v41 = vld [vmem:[#allocation6 + $0x1c0] ss:$16 sps:$4 sm:$0xff]  }
 0x235   :  { %833 = vmatpush1.bf16.msra.mxu1 %v3861_v44  ;;  %v4403_v44 = vld [vmem:[#allocation6 + $0x1ec] ss:$16 sps:$4 sm:$0xff]  }
 0x236   :  { %834 = vmatprep.subr.bf16.mxu1 %v3870_v45  ;;  %v4398_v45 = vld [vmem:[#allocation6 + $0x1e0] ss:$16 sps:$4 sm:$0xff]  }
 0x239   :  { %835 = vmatpush1.bf16.msra.mxu1 %v3869_v46  ;;  %v4401_v46 = vld [vmem:[#allocation6 + $0x1e8] ss:$16 sps:$4 sm:$0xff]  }
 0x23a   :  { %2950 = vmatprep.subr.bf16.mxu1 %v4313_v48  ;;  %v4409_v48 = vld [vmem:[#allocation6 + $0x20c] ss:$16 sps:$4 sm:$0xff]  }
 0x23c   :  { %853 = vmatmul.mubr.bf16.vlgmr.msra.gmra.mrb[24].mxu1 %v5062_v51  ;;  %v4322_v51 = vld [vmem:[#allocation6 + $0x44] ss:$16 sps:$4 sm:$0xff]  }
 0x23d   :  { %862 = vmatprep.mubr.bf16.mxu1 %v4908_v34  ;;  %2951 = vmatpush1.bf16.msra.mxu1 %v4311_v52  ;;  %v4325_v34 = vld [vmem:[#allocation6 + $0x4c] ss:$16 sps:$4 sm:$0xff]  }
 0x23e   :  { %2952 = vmatprep.subr.bf16.mxu1 %v4319_v54  ;;  %2790 = vmatprep.subr.bf16.mxu0 %v4322_v51 }
 0x23f   :  { %2791 = vmatpush1.bf16.msra.mxu0 %v4320_v57 }
 0x240   :  { %2792 = vmatprep.subr.bf16.mxu0 %v4328_v58 }
 0x241   :  { %2953 = vmatpush1.bf16.msra.mxu1 %v4317_v56 }
 0x242   :  { %2954 = vmatprep.subr.bf16.mxu1 %v4325_v34 }
 0x243   :  { %2793 = vmatpush1.bf16.msra.mxu0 %v4326_v60 }
 0x244   :  { %863 = vmatmul.mubr.bf16.gmra.mrb[28].mxu1 %v5060_v50  ;;  %v4323_v50 = vld [vmem:[#allocation6 + $0x48] ss:$16 sps:$4 sm:$0xff]   ;;  %2794 = vmatprep.subr.bf16.mxu0 %v4334_v62 }
 0x245   :  { %2955 = vmatpush1.bf16.msra.mxu1 %v4323_v50 }
 0x246   :  { %2956 = vmatprep.subr.bf16.mxu1 %v4331_v59 }
 0x247   :  { %2795 = vmatpush1.bf16.msra.mxu0 %v4332_v0 }
 0x248   :  { %2796 = vmatprep.subr.bf16.mxu0 %v4340_v2 }
 0x249   :  { %2957 = vmatpush1.bf16.msra.mxu1 %v4329_v61 }
 0x24a   :  { %2958 = vmatprep.subr.bf16.mxu1 %v4337_v63 }
 0x24b   :  { %2797 = vmatpush1.bf16.msra.mxu0 %v4338_v4 }
 0x24c   :  { %2798 = vmatprep.subr.bf16.mxu0 %v4346_v6 }
 0x24d   :  { %2959 = vmatpush1.bf16.msra.mxu1 %v4335_v1 }
 0x24e   :  { %2960 = vmatprep.subr.bf16.mxu1 %v4343_v3 }
 0x24f   :  { %2799 = vmatpush1.bf16.msra.mxu0 %v4344_v8 }
 0x250   :  { %2800 = vmatprep.subr.bf16.mxu0 %v4352_v10 }
 0x251   :  { %2961 = vmatpush1.bf16.msra.mxu1 %v4341_v5 }
 0x252   :  { %2962 = vmatprep.subr.bf16.mxu1 %v4349_v7 }
 0x253   :  { %2801 = vmatpush1.bf16.msra.mxu0 %v4350_v12 }
 0x254   :  { %2802 = vmatprep.subr.bf16.mxu0 %v4358_v14 }
 0x255   :  { %2963 = vmatpush1.bf16.msra.mxu1 %v4347_v9 }
 0x256   :  { %2964 = vmatprep.subr.bf16.mxu1 %v4355_v11 }
 0x257   :  { %2803 = vmatpush1.bf16.msra.mxu0 %v4356_v16 }
 0x258   :  { %2804 = vmatprep.subr.bf16.mxu0 %v4364_v18 }
 0x259   :  { %2965 = vmatpush1.bf16.msra.mxu1 %v4353_v13 }
 0x25a   :  { %2966 = vmatprep.subr.bf16.mxu1 %v4361_v15 }
 0x25b   :  { %2805 = vmatpush1.bf16.msra.mxu0 %v4362_v20 }
 0x25c   :  { %2806 = vmatprep.subr.bf16.mxu0 %v4370_v22 }
 0x25d   :  { %2967 = vmatpush1.bf16.msra.mxu1 %v4359_v17 }
 0x25e   :  { %2968 = vmatprep.subr.bf16.mxu1 %v4367_v19 }
 0x25f   :  { %2807 = vmatpush1.bf16.msra.mxu0 %v4368_v24 }
 0x260   :  { %2808 = vmatprep.subr.bf16.mxu0 %v4376_v26 }
 0x261   :  { %2969 = vmatpush1.bf16.msra.mxu1 %v4365_v21 }
 0x262   :  { %2970 = vmatprep.subr.bf16.mxu1 %v4373_v23 }
 0x263   :  { %2809 = vmatpush1.bf16.msra.mxu0 %v4374_v28 }
 0x264   :  { %2810 = vmatprep.subr.bf16.mxu0 %v4382_v30 }
 0x265   :  { %2971 = vmatpush1.bf16.msra.mxu1 %v4371_v25 }
 0x266   :  { %2972 = vmatprep.subr.bf16.mxu1 %v4379_v27 }
 0x267   :  { %2811 = vmatpush1.bf16.msra.mxu0 %v4380_v32 }
 0x268   :  { %2812 = vmatprep.subr.bf16.mxu0 %v4388_v35 }
 0x269   :  { %2973 = vmatpush1.bf16.msra.mxu1 %v4377_v29 }
 0x26a   :  { %2974 = vmatprep.subr.bf16.mxu1 %v4385_v31 }
 0x26b   :  { %2813 = vmatpush1.bf16.msra.mxu0 %v4386_v37 }
 0x26c   :  { %2814 = vmatprep.subr.bf16.mxu0 %v4394_v39 }
 0x26d   :  { %2975 = vmatpush1.bf16.msra.mxu1 %v4383_v33 }
 0x26e   :  { %2976 = vmatprep.subr.bf16.mxu1 %v4391_v36 }
 0x26f   :  { %2815 = vmatpush1.bf16.msra.mxu0 %v4392_v41 }
 0x270   :  { %2816 = vmatprep.subr.bf16.mxu0 %v4400_v43 }
 0x271   :  { %2977 = vmatpush1.bf16.msra.mxu1 %v4389_v38 }
 0x272   :  { %2978 = vmatprep.subr.bf16.mxu1 %v4397_v40 }
 0x273   :  { %2817 = vmatpush1.bf16.msra.mxu0 %v4398_v45 }
 0x274   :  { %2827 = vmatprep.subr.bf16.mxu0 %v4406_v47 }
 0x275   :  { %2979 = vmatpush1.bf16.msra.mxu1 %v4395_v42 }
 0x276   :  { %2980 = vmatprep.subr.bf16.mxu1 %v4403_v44 }
 0x279   :  { %2981 = vmatpush1.bf16.msra.mxu1 %v4401_v46 }
 0x27a   :  { %2991 = vmatprep.subr.bf16.mxu1 %v4409_v48 }
 0x2cf   :  { %v695_v49 = vpop.f32.mrb[8].mxu1  ;;  %v801_v52 = vpop.f32.mrb[0].mxu0 }
 0x2d0   :  { %v697_v53 = vpop.f32.mrb[9].mxu1  ;;  %v803_v54 = vpop.f32.mrb[1].mxu0 }
 0x2d1   :  { %v699_v55 = vpop.f32.mrb[10].mxu1  ;;  %v805_v56 = vpop.f32.mrb[2].mxu0 }
 0x2d2   :  { %v873_v51 = vmax.f32 %v695_v49, %v699_v55  ;;  %v901_v34 = vmax.f32 %v801_v52, %v805_v56  ;;  %v701_v57 = vpop.f32.mrb[11].mxu1  ;;  %v807_v50 = vpop.f32.mrb[3].mxu0 }
 0x2d3   :  { %v880_v58 = vmax.f32 %v697_v53, %v701_v57  ;;  %v908_v59 = vmax.f32 %v803_v54, %v807_v50 }
 0x2d4   :  { %v874_v60 = vrot.slane %v873_v51, 4  ;;  %v902_v61 = vrot.slane %v901_v34, 4 }
 0x2d5   :  { %v881_v62 = vrot.slane %v880_v58, 4  ;;  %v909_v63 = vrot.slane %v908_v59, 4 }
 0x2d6   :  { %v875_v0 = vmax.f32 %v873_v51, %v874_v60  ;;  %v903_v1 = vmax.f32 %v901_v34, %v902_v61 }
 0x2d7   :  { %v882_v2 = vmax.f32 %v880_v58, %v881_v62  ;;  %v910_v3 = vmax.f32 %v908_v59, %v909_v63  ;;  %v705_v4 = vpop.f32.mrb[12].mxu1  ;;  %v811_v5 = vpop.f32.mrb[4].mxu0 }
 0x2d8   :  { %v876_v6 = vrot.slane %v875_v0, 2  ;;  %v904_v7 = vrot.slane %v903_v1, 2  ;;  %v707_v8 = vpop.f32.mrb[13].mxu1  ;;  %v813_v9 = vpop.f32.mrb[5].mxu0 }
 0x2d9   :  { %v883_v10 = vrot.slane %v882_v2, 2  ;;  %v911_v11 = vrot.slane %v910_v3, 2  ;;  %v709_v12 = vpop.f32.mrb[14].mxu1  ;;  %v815_v13 = vpop.f32.mrb[6].mxu0 }
 0x2da   :  { %v877_v14 = vmax.f32 %v875_v0, %v876_v6  ;;  %v905_v15 = vmax.f32 %v903_v1, %v904_v7  ;;  %v929_v16 = vmax.f32 %v705_v4, %v709_v12  ;;  %v957_v17 = vmax.f32 %v811_v5, %v815_v13  ;;  %v711_v18 = vpop.f32.mrb[15].mxu1  ;;  %v817_v19 = vpop.f32.mrb[7].mxu0 }
 0x2db   :  { %v884_v20 = vmax.f32 %v882_v2, %v883_v10  ;;  %v912_v21 = vmax.f32 %v910_v3, %v911_v11  ;;  %v936_v22 = vmax.f32 %v707_v8, %v711_v18  ;;  %v964_v23 = vmax.f32 %v813_v9, %v817_v19 }
 0x2dc   :  { %v878_v24 = vrot.slane %v877_v14, 1  ;;  %v906_v25 = vrot.slane %v905_v15, 1  ;;  %v930_v26 = vrot.slane %v929_v16, 4  ;;  %v958_v27 = vrot.slane %v957_v17, 4 }
 0x2dd   :  { %v885_v28 = vrot.slane %v884_v20, 1  ;;  %v913_v29 = vrot.slane %v912_v21, 1  ;;  %v937_v30 = vrot.slane %v936_v22, 4  ;;  %v965_v31 = vrot.slane %v964_v23, 4 }
 0x2de   :  { %v5078_v32 = vmax.f32 %v877_v14, %v878_v24  ;;  %v5080_v33 = vmax.f32 %v905_v15, %v906_v25  ;;  %v931_v35 = vmax.f32 %v929_v16, %v930_v26  ;;  %v959_v36 = vmax.f32 %v957_v17, %v958_v27 }
 0x2df   :  { %v5082_v37 = vmax.f32 %v884_v20, %v885_v28  ;;  %v5084_v38 = vmax.f32 %v912_v21, %v913_v29  ;;  %v938_v39 = vmax.f32 %v936_v22, %v937_v30  ;;  %v966_v40 = vmax.f32 %v964_v23, %v965_v31 }
 0x2e0   :  { %v932_v41 = vrot.slane %v931_v35, 2  ;;  %v960_v42 = vrot.slane %v959_v36, 2  ;;  %v4909_v5 = vmov 1983009808   ;;  %v1008_v7 = vlaneseq }
 0x2e1   :  { %v1003_v43 = vcombine.low %v5078_v32, %v5082_v37  ;;  %v1020_v44 = vcombine.low %v5080_v33, %v5084_v38  ;;  %v939_v45 = vrot.slane %v938_v39, 2  ;;  %v967_v46 = vrot.slane %v966_v40, 2  ;;  %v5116_v37 = vld [vmem:[%s5283_s6] sm:$0xff] }
 0x2e2   :  { %v933_v47 = vmax.f32 %v931_v35, %v932_v41  ;;  %v961_v48 = vmax.f32 %v959_v36, %v960_v42  ;;  %v1006_v6 = vunpack.c.l.s4 %v4909_v5  ;;  %v5102_v18 = vshrl.u32 %v1008_v7, 7 }
 0x2e3   :  { %v940_v49 = vmax.f32 %v938_v39, %v939_v45  ;;  %v968_v52 = vmax.f32 %v966_v40, %v967_v46 }
 0x2e4   :  { %v934_v53 = vrot.slane %v933_v47, 1  ;;  %v962_v54 = vrot.slane %v961_v48, 1  ;;  %v1007_v17 = vunpack.c.0.s8 %v1006_v6  ;;  %v5108_v31 = vsub.s32 0, %v5102_v18 }
 0x2e5   :  { %v941_v55 = vrot.slane %v940_v49, 1  ;;  %v969_v56 = vrot.slane %v968_v52, 1  ;;  %v5111_v32 = vsub.s32 1, %v5102_v18  ;;  %v1114_v39 = vsub.s32 2, %v5102_v18 }
 0x2e6   :  { %v5090_v51 = vmax.f32 %v933_v47, %v934_v53  ;;  %v5092_v34 = vmax.f32 %v961_v48, %v962_v54  ;;  %v5105_v27 = vsub.s32 %v1007_v17, %v5102_v18  ;;  %v1118_v40 = vsub.s32 3, %v5102_v18 }
 0x2e7   :  { %v5094_v57 = vmax.f32 %v940_v49, %v941_v55  ;;  %v5096_v50 = vmax.f32 %v968_v52, %v969_v56  ;;  %v1107_v48 = vrot.slane %v5116_v37, %v5108_v31  ;;  %v1111_v49 = vrot.slane %v5116_v37, %v5111_v32 }
 0x2e8   :  { %v1011_v42 = vrot.slane %v1003_v43, %v5105_v27  ;;  %v1115_v54 = vrot.slane %v5116_v37, %v1114_v39  ;;  %v1119_v43 = vrot.slane %v5116_v37, %v1118_v40 }
 0x2e9   :  { %v1037_v58 = vcombine.low %v5090_v51, %v5094_v57  ;;  %v1054_v59 = vcombine.low %v5092_v34, %v5096_v50  ;;  %v1136_v57 = vcombine.low %v1107_v48, %v1111_v49  ;;  %v4434_v34 = vld [vmem:[#allocation6 + $0x2a0] ss:$16 sps:$4 sm:$0xff]   ;;  %v4437_v50 = vld [vmem:[#allocation6 + $0x2a8] ss:$16 sps:$4 sm:$0xff]  }
 0x2ef   :  { %v748_v60 = vpop.f32.mrb[16].mxu1 }
 0x2f0   :  { %v750_v61 = vpop.f32.mrb[17].mxu1 }
 0x2f1   :  { %v752_v62 = vpop.f32.mrb[18].mxu1 }
 0x2f2   :  { %v887_v63 = vmax.f32 %v748_v60, %v752_v62  ;;  %v754_v0 = vpop.f32.mrb[19].mxu1  ;;  %v1137_v60 = vcombine.low %v1115_v54, %v1119_v43 }
 0x2f3   :  { %v894_v1 = vmax.f32 %v750_v61, %v754_v0  ;;  %v1045_v61 = vrot.slane %v1037_v58, %v5105_v27  ;;  %v1144_v0 = vrot.slane %v1136_v57, %v5105_v27 }
 0x2f4   :  { %v888_v2 = vrot.slane %v887_v63, 4 }
 0x2f5   :  { %v895_v3 = vrot.slane %v894_v1, 4 }
 0x2f6   :  { %v889_v4 = vmax.f32 %v887_v63, %v888_v2 }
 0x2f7   :  { %v896_v8 = vmax.f32 %v894_v1, %v895_v3  ;;  %v758_v9 = vpop.f32.mrb[20].mxu1  ;;  %v1151_v1 = vrot.slane %v1137_v60, %v5105_v27  ;;  %v4412_v60 = vld [vmem:[#allocation6 + $0x224] ss:$16 sps:$4 sm:$0xff]  }
 0x2f8   :  { %v890_v10 = vrot.slane %v889_v4, 2  ;;  %v760_v11 = vpop.f32.mrb[21].mxu1 }
 0x2f9   :  { %v897_v12 = vrot.slane %v896_v8, 2  ;;  %v762_v13 = vpop.f32.mrb[22].mxu1  ;;  %v1152_v7 = vcombine.low %v1144_v0, %v1151_v1  ;;  %v4410_v0 = vld [vmem:[#allocation6 + $0x220] ss:$16 sps:$4 sm:$0xff]   ;;  %v1122_v1 = vsub.s32 4, %v5102_v18 }
 0x2fa   :  { %v891_v14 = vmax.f32 %v889_v4, %v890_v10  ;;  %v943_v15 = vmax.f32 %v758_v9, %v762_v13  ;;  %v764_v16 = vpop.f32.mrb[23].mxu1 }
 0x2fb   :  { %v898_v19 = vmax.f32 %v896_v8, %v897_v12  ;;  %v950_v20 = vmax.f32 %v760_v11, %v764_v16 }
 0x2fc   :  { %v892_v21 = vrot.slane %v891_v14, 1  ;;  %v944_v22 = vrot.slane %v943_v15, 4 }
 0x2fd   :  { %v899_v23 = vrot.slane %v898_v19, 1  ;;  %v951_v24 = vrot.slane %v950_v20, 4 }
 0x2fe   :  { %v893_v25 = vmax.f32 %v891_v14, %v892_v21  ;;  %v945_v26 = vmax.f32 %v943_v15, %v944_v22 }
 0x2ff   :  { %v900_v28 = vmax.f32 %v898_v19, %v899_v23  ;;  %v952_v29 = vmax.f32 %v950_v20, %v951_v24 }
 0x300   :  { %v946_v30 = vrot.slane %v945_v26, 2 }
 0x301   :  { %v1004_v35 = vcombine.low %v893_v25, %v900_v28  ;;  %v953_v36 = vrot.slane %v952_v29, 2 }
 0x302   :  { %v947_v41 = vmax.f32 %v945_v26, %v946_v30 }
 0x303   :  { %v1018_v45 = vrot.slane %v1004_v35, %v5105_v27  ;;  %v954_v46 = vmax.f32 %v952_v29, %v953_v36 }
 0x304   :  { %v948_v47 = vrot.slane %v947_v41, 1 }
 0x305   :  { %v1019_v52 = vcombine.low %v1011_v42, %v1018_v45  ;;  %v955_v53 = vrot.slane %v954_v46, 1 }
 0x306   :  { %v949_v55 = vmax.f32 %v947_v41, %v948_v47 }
 0x307   :  { %v956_v56 = vmax.f32 %v954_v46, %v955_v53  ;;  %v4407_v53 = vld [vmem:[#allocation6 + $0x208] ss:$16 sps:$4 sm:$0xff]  }
 0x309   :  { %v1038_v51 = vcombine.low %v949_v55, %v956_v56 }
 0x30b   :  { %v1052_v62 = vrot.slane %v1038_v51, %v5105_v27 }
 0x30d   :  { %v1053_v63 = vcombine.low %v1045_v61, %v1052_v62  ;;  %v4415_v61 = vld [vmem:[#allocation6 + $0x22c] ss:$16 sps:$4 sm:$0xff]  }
 0x30f   :  { %v1075_v2 = vrot.slane %v1053_v63, 7  ;;  %v854_v3 = vpop.f32.mrb[24].mxu1 }
 0x310   :  { %v856_v4 = vpop.f32.mrb[25].mxu1 }
 0x311   :  { %v858_v5 = vpop.f32.mrb[26].mxu1  ;;  %v1077_v6 = vsel %vm1076_vm4, %v1075_v2, %v1019_v52  ;;  %v4404_v52 = vld [vmem:[#allocation6 + $0x200] ss:$16 sps:$4 sm:$0xff]  }
 0x312   :  { %v915_v8 = vmax.f32 %v854_v3, %v858_v5  ;;  %v860_v58 = vpop.f32.mrb[27].mxu1  ;;  %v1079_v9 = vsel %vm1078_vm5, %v1075_v2, %v1077_v6  ;;  %v4413_v5 = vld [vmem:[#allocation6 + $0x228] ss:$16 sps:$4 sm:$0xff]   ;;  %v1130_v6 = vsub.s32 6, %v5102_v18 }
 0x313   :  { %v922_v10 = vmax.f32 %v856_v4, %v860_v58  ;;  %v1081_v11 = vsel %vm1080_vm6, %v1075_v2, %v1079_v9  ;;  %v4418_v58 = vld [vmem:[#allocation6 + $0x244] ss:$16 sps:$4 sm:$0xff]   ;;  %v4421_v9 = vld [vmem:[#allocation6 + $0x24c] ss:$16 sps:$4 sm:$0xff]  }
 0x314   :  { %v916_v12 = vrot.slane %v915_v8, 4  ;;  %v1083_v13 = vsel %vm1082_vm7, %v1075_v2, %v1081_v11  ;;  %v1126_v2 = vsub.s32 5, %v5102_v18 }
 0x315   :  { %v923_v14 = vrot.slane %v922_v10, 4  ;;  %v1172_v15 = vadd.f32 %v1152_v7, %v1083_v13  ;;  %v1134_v7 = vsub.s32 7, %v5102_v18  ;;  %v4800_v18 = vld [vmem:[%s5288_s11 + $0x70] sm:$0xff]  }
 0x316   :  { %v917_v16 = vmax.f32 %v915_v8, %v916_v12 }
 0x317   :  { %v924_v17 = vmax.f32 %v922_v10, %v923_v14  ;;  %v864_v19 = vpop.f32.mrb[28].mxu1  ;;  %v1174_v20 = vmax.f32 %v1172_v15, 0.0  ;;  %v1028_v10 = vrot.slane %v1020_v44, %v5105_v27  ;;  %v1123_v14 = vrot.slane %v5116_v37, %v1122_v1  ;;  %v4424_v44 = vld [vmem:[#allocation6 + $0x264] ss:$16 sps:$4 sm:$0xff]   ;;  %v4446_v1 = vld [vmem:[#allocation6 + $0x2e0] ss:$16 sps:$4 sm:$0xff]  }
 0x318   :  { %v918_v21 = vrot.slane %v917_v16, 2  ;;  %v866_v22 = vpop.f32.mrb[29].mxu1  ;;  %v1127_v15 = vrot.slane %v5116_v37, %v1126_v2  ;;  %v1135_v33 = vrot.slane %v5116_v37, %v1134_v7  ;;  %v4449_v2 = vld [vmem:[#allocation6 + $0x2e8] ss:$16 sps:$4 sm:$0xff]   ;;  %v4460_v7 = vld [vmem:[#allocation6 + $0x324] ss:$16 sps:$4 sm:$0xff]  }
 0x319   :  { %v925_v23 = vrot.slane %v924_v17, 2  ;;  %v868_v24 = vpop.f32.mrb[30].mxu1  ;;  %v1185_v25 = vrot.slane %v1174_v20, %v5105_v27  ;;  %v1178_v26 = vcombine.high %v1174_v20, %v1174_v20  ;;  %v4419_v20 = vld [vmem:[#allocation6 + $0x248] ss:$16 sps:$4 sm:$0xff]  }
 0x31a   :  { %v919_v28 = vmax.f32 %v917_v16, %v918_v21  ;;  %v971_v29 = vmax.f32 %v864_v19, %v868_v24  ;;  %v870_v30 = vpop.f32.mrb[31].mxu1  ;;  %v4416_v19 = vld [vmem:[#allocation6 + $0x240] ss:$16 sps:$4 sm:$0xff]   ;;  %v1131_v21 = vrot.slane %v5116_v37, %v1130_v6  ;;  %v1062_v37 = vrot.slane %v1054_v59, %v5105_v27  ;;  %v4455_v6 = vld [vmem:[#allocation6 + $0x308] ss:$16 sps:$4 sm:$0xff]  }
 0x31b   :  { %v926_v35 = vmax.f32 %v924_v17, %v925_v23  ;;  %v978_v36 = vmax.f32 %v866_v22, %v870_v30  ;;  %v1193_v41 = vcombine.high %v1185_v25, %v1185_v25  ;;  %v5142_v46 = vrot.slane %v1178_v26, %v5105_v27  ;;  %v4427_v22 = vld [vmem:[#allocation6 + $0x26c] ss:$16 sps:$4 sm:$0xff]   ;;  %v4425_v26 = vld [vmem:[#allocation6 + $0x268] ss:$16 sps:$4 sm:$0xff]   ;;  %v4430_v30 = vld [vmem:[#allocation6 + $0x284] ss:$16 sps:$4 sm:$0xff]  }
 0x31c   :  { %v920_v42 = vrot.slane %v919_v28, 1  ;;  %v972_v45 = vrot.slane %v971_v29, 4  ;;  %v1220_v55 = vpack.c.bf16 %v1185_v25, %v1185_v25  ;;  %v4422_v25 = vld [vmem:[#allocation6 + $0x260] ss:$16 sps:$4 sm:$0xff]  }
 0x31d   :  { %v927_v47 = vrot.slane %v926_v35, 1  ;;  %v979_v48 = vrot.slane %v978_v36, 4  ;;  %v1221_v49 = vpack.c.bf16 %v1193_v41, %v1193_v41  ;;  %v1194_v56 = vcombine.high %v5142_v46, %v5142_v46 }
 0x31e   :  { %v921_v54 = vmax.f32 %v919_v28, %v920_v42  ;;  %v973_v43 = vmax.f32 %v971_v29, %v972_v45  ;;  %v1153_v28 = vcombine.low %v1123_v14, %v1127_v15  ;;  %v1154_v29 = vcombine.low %v1131_v21, %v1135_v33  ;;  %v4428_v42 = vld [vmem:[#allocation6 + $0x280] ss:$16 sps:$4 sm:$0xff]   ;;  %v4431_v45 = vld [vmem:[#allocation6 + $0x288] ss:$16 sps:$4 sm:$0xff]   ;;  %v4472_v14 = vld [vmem:[#allocation6 + $0x364] ss:$16 sps:$4 sm:$0xff]  }
 0x31f   :  { %v928_v51 = vmax.f32 %v926_v35, %v927_v47  ;;  %v980_v57 = vmax.f32 %v978_v36, %v979_v48  ;;  %2818 = vmatprep.mubr.bf16.mxu0 %v1221_v49  ;;  %2982 = vmatprep.mubr.bf16.mxu1 %v1221_v49  ;;  %v1223_v63 = vpack.c.bf16 %v1194_v56, %v1194_v56  ;;  %v4433_v35 = vld [vmem:[#allocation6 + $0x28c] ss:$16 sps:$4 sm:$0xff]   ;;  %v4436_v49 = vld [vmem:[#allocation6 + $0x2a4] ss:$16 sps:$4 sm:$0xff]   ;;  %v4476_v21 = vld [vmem:[#allocation6 + $0x380] ss:$16 sps:$4 sm:$0xff]  }
 0x320   :  { %v974_v62 = vrot.slane %v973_v43, 2  ;;  %2819 = vmatmul.mubr.bf16.vlgmr.msra.gmra.mrb[8].mxu0 %v1220_v55  ;;  %2983 = vmatmul.mubr.bf16.vlgmr.msra.gmra.mrb[32].mxu1 %v1220_v55  ;;  %v1161_v47 = vrot.slane %v1153_v28, %v5105_v27  ;;  %v1168_v48 = vrot.slane %v1154_v29, %v5105_v27  ;;  %v4445_v55 = vld [vmem:[#allocation6 + $0x2cc] ss:$16 sps:$4 sm:$0xff]   ;;  %v4479_v33 = vld [vmem:[#allocation6 + $0x388] ss:$16 sps:$4 sm:$0xff]  }
 0x321   :  { %v1021_v3 = vcombine.low %v921_v54, %v928_v51  ;;  %v981_v4 = vrot.slane %v980_v57, 2  ;;  %2828 = vmatpush1.bf16.msra.mxu0 %v4404_v52  ;;  %2992 = vmatpush1.bf16.msra.mxu1 %v4407_v53  ;;  %v4439_v52 = vld [vmem:[#allocation6 + $0x2ac] ss:$16 sps:$4 sm:$0xff]   ;;  %v4488_v28 = vld [vmem:[#allocation6 + $0x3c0] ss:$16 sps:$4 sm:$0xff]  }
 0x322   :  { %v975_v8 = vmax.f32 %v973_v43, %v974_v62  ;;  %2859 = vmatprep.mubr.bf16.mxu0 %v1223_v63  ;;  %3023 = vmatprep.mubr.bf16.mxu1 %v1223_v63  ;;  %v1169_v54 = vcombine.low %v1161_v47, %v1168_v48  ;;  %v4442_v43 = vld [vmem:[#allocation6 + $0x2c4] ss:$16 sps:$4 sm:$0xff]   ;;  %v4475_v15 = vld [vmem:[#allocation6 + $0x36c] ss:$16 sps:$4 sm:$0xff]   ;;  %v4491_v29 = vld [vmem:[#allocation6 + $0x3c8] ss:$16 sps:$4 sm:$0xff]  }
 0x323   :  { %v1035_v11 = vrot.slane %v1021_v3, %v5105_v27  ;;  %v982_v12 = vmax.f32 %v980_v57, %v981_v4  ;;  %2829 = vmatprep.subr.bf16.mxu0 %v4412_v60  ;;  %2993 = vmatprep.subr.bf16.mxu1 %v4415_v61  ;;  %v4440_v60 = vld [vmem:[#allocation6 + $0x2c0] ss:$16 sps:$4 sm:$0xff]   ;;  %v4443_v61 = vld [vmem:[#allocation6 + $0x2c8] ss:$16 sps:$4 sm:$0xff]   ;;  %v4448_v63 = vld [vmem:[#allocation6 + $0x2e4] ss:$16 sps:$4 sm:$0xff]  }
 0x324   :  { %v976_v13 = vrot.slane %v975_v8, 1  ;;  %v4454_v3 = vld [vmem:[#allocation6 + $0x304] ss:$16 sps:$4 sm:$0xff]   ;;  %v4457_v4 = vld [vmem:[#allocation6 + $0x30c] ss:$16 sps:$4 sm:$0xff]  }
 0x325   :  { %v1036_v16 = vcombine.low %v1028_v10, %v1035_v11  ;;  %v983_v17 = vrot.slane %v982_v12, 1  ;;  %2830 = vmatpush1.bf16.msra.mxu0 %v4410_v0  ;;  %2994 = vmatpush1.bf16.msra.mxu1 %v4413_v5  ;;  %v4451_v0 = vld [vmem:[#allocation6 + $0x2ec] ss:$16 sps:$4 sm:$0xff]   ;;  %v4452_v5 = vld [vmem:[#allocation6 + $0x300] ss:$16 sps:$4 sm:$0xff]  }
 0x326   :  { %v977_v38 = vmax.f32 %v975_v8, %v976_v13  ;;  %2831 = vmatprep.subr.bf16.mxu0 %v4418_v58  ;;  %2995 = vmatprep.subr.bf16.mxu1 %v4421_v9  ;;  %v4463_v8 = vld [vmem:[#allocation6 + $0x32c] ss:$16 sps:$4 sm:$0xff]   ;;  %v4458_v58 = vld [vmem:[#allocation6 + $0x320] ss:$16 sps:$4 sm:$0xff]   ;;  %v4461_v9 = vld [vmem:[#allocation6 + $0x328] ss:$16 sps:$4 sm:$0xff]  }
 0x327   :  { %v984_v23 = vmax.f32 %v982_v12, %v983_v17  ;;  %v4466_v10 = vld [vmem:[#allocation6 + $0x344] ss:$16 sps:$4 sm:$0xff]   ;;  %v4469_v11 = vld [vmem:[#allocation6 + $0x34c] ss:$16 sps:$4 sm:$0xff]   ;;  %v4464_v12 = vld [vmem:[#allocation6 + $0x340] ss:$16 sps:$4 sm:$0xff]  }
 0x328   :  { %v4467_v13 = vld [vmem:[#allocation6 + $0x348] ss:$16 sps:$4 sm:$0xff]   ;;  %v4500_v48 = vld [vmem:[#allocation6 + $0x400] ss:$16 sps:$4 sm:$0xff]  }
 0x329   :  { %v1055_v24 = vcombine.low %v977_v38, %v984_v23  ;;  %2832 = vmatpush1.bf16.msra.mxu0 %v4416_v19  ;;  %2996 = vmatpush1.bf16.msra.mxu1 %v4419_v20  ;;  %v4473_v17 = vld [vmem:[#allocation6 + $0x368] ss:$16 sps:$4 sm:$0xff]   ;;  %v4478_v19 = vld [vmem:[#allocation6 + $0x384] ss:$16 sps:$4 sm:$0xff]   ;;  %v4481_v20 = vld [vmem:[#allocation6 + $0x38c] ss:$16 sps:$4 sm:$0xff]  }
 0x32a   :  { %2833 = vmatprep.subr.bf16.mxu0 %v4424_v44  ;;  %2997 = vmatprep.subr.bf16.mxu1 %v4427_v22  ;;  %v4484_v38 = vld [vmem:[#allocation6 + $0x3a4] ss:$16 sps:$4 sm:$0xff]   ;;  %v4487_v44 = vld [vmem:[#allocation6 + $0x3ac] ss:$16 sps:$4 sm:$0xff]   ;;  %v4482_v22 = vld [vmem:[#allocation6 + $0x3a0] ss:$16 sps:$4 sm:$0xff]  }
 0x32b   :  { %v1069_v36 = vrot.slane %v1055_v24, %v5105_v27  ;;  %v4485_v23 = vld [vmem:[#allocation6 + $0x3a8] ss:$16 sps:$4 sm:$0xff]   ;;  %v4490_v24 = vld [vmem:[#allocation6 + $0x3c4] ss:$16 sps:$4 sm:$0xff]  }
 0x32d   :  { %v1070_v41 = vcombine.low %v1062_v37, %v1069_v36  ;;  %2834 = vmatpush1.bf16.msra.mxu0 %v4422_v25  ;;  %2998 = vmatpush1.bf16.msra.mxu1 %v4425_v26  ;;  %v4493_v25 = vld [vmem:[#allocation6 + $0x3cc] ss:$16 sps:$4 sm:$0xff]   ;;  %v4494_v36 = vld [vmem:[#allocation6 + $0x3e0] ss:$16 sps:$4 sm:$0xff]  }
 0x32e   :  { %2835 = vmatprep.subr.bf16.mxu0 %v4430_v30  ;;  %2999 = vmatprep.subr.bf16.mxu1 %v4433_v35  ;;  %v4496_v30 = vld [vmem:[#allocation6 + $0x3e4] ss:$16 sps:$4 sm:$0xff]   ;;  %v4499_v35 = vld [vmem:[#allocation6 + $0x3ec] ss:$16 sps:$4 sm:$0xff]  }
 0x32f   :  { %v1086_v53 = vrot.slane %v1070_v41, 7  ;;  %v4497_v41 = vld [vmem:[#allocation6 + $0x3e8] ss:$16 sps:$4 sm:$0xff]  }
 0x331   :  { %2836 = vmatpush1.bf16.msra.mxu0 %v4428_v42  ;;  %3000 = vmatpush1.bf16.msra.mxu1 %v4431_v45  ;;  %v1087_v59 = vsel %vm1076_vm4, %v1086_v53, %v1036_v16  ;;  %v4470_v16 = vld [vmem:[#allocation6 + $0x360] ss:$16 sps:$4 sm:$0xff]   ;;  %v4502_v42 = vld [vmem:[#allocation6 + $0x404] ss:$16 sps:$4 sm:$0xff]   ;;  %v4505_v45 = vld [vmem:[#allocation6 + $0x40c] ss:$16 sps:$4 sm:$0xff]  }
 0x332   :  { %2837 = vmatprep.subr.bf16.mxu0 %v4436_v49  ;;  %3001 = vmatprep.subr.bf16.mxu1 %v4439_v52  ;;  %v1088_v56 = vsel %vm1078_vm5, %v1086_v53, %v1087_v59  ;;  %v1222_v49 = vpack.c.bf16 %v5142_v46, %v5142_v46  ;;  %v4503_v52 = vld [vmem:[#allocation6 + $0x408] ss:$16 sps:$4 sm:$0xff]   ;;  %v4506_v59 = vld [vmem:[#allocation6 + $0x420] ss:$16 sps:$4 sm:$0xff]  }
 0x333   :  { %v1089_v51 = vsel %vm1080_vm6, %v1086_v53, %v1088_v56  ;;  %v4512_v46 = vld [vmem:[#allocation6 + $0x440] ss:$16 sps:$4 sm:$0xff]   ;;  %v4515_v56 = vld [vmem:[#allocation6 + $0x448] ss:$16 sps:$4 sm:$0xff]  }
 0x334   :  { %v1090_v57 = vsel %vm1082_vm7, %v1086_v53, %v1089_v51  ;;  %v4520_v51 = vld [vmem:[#allocation6 + $0x464] ss:$16 sps:$4 sm:$0xff]  }
 0x335   :  { %2838 = vmatpush1.bf16.msra.mxu0 %v4434_v34  ;;  %3002 = vmatpush1.bf16.msra.mxu1 %v4437_v50  ;;  %v1173_v62 = vadd.f32 %v1169_v54, %v1090_v57  ;;  %v4508_v34 = vld [vmem:[#allocation6 + $0x424] ss:$16 sps:$4 sm:$0xff]   ;;  %v4511_v50 = vld [vmem:[#allocation6 + $0x42c] ss:$16 sps:$4 sm:$0xff]   ;;  %v4509_v54 = vld [vmem:[#allocation6 + $0x428] ss:$16 sps:$4 sm:$0xff]  }
 0x336   :  { %2839 = vmatprep.subr.bf16.mxu0 %v4442_v43  ;;  %3003 = vmatprep.subr.bf16.mxu1 %v4445_v55  ;;  %v4514_v43 = vld [vmem:[#allocation6 + $0x444] ss:$16 sps:$4 sm:$0xff]   ;;  %v4517_v55 = vld [vmem:[#allocation6 + $0x44c] ss:$16 sps:$4 sm:$0xff]  }
 0x337   :  { %v5170_v26 = vmax.f32 %v1173_v62, 0.0  ;;  %v4523_v57 = vld [vmem:[#allocation6 + $0x46c] ss:$16 sps:$4 sm:$0xff]   ;;  %v4526_v62 = vld [vmem:[#allocation6 + $0x484] ss:$16 sps:$4 sm:$0xff]  }
 0x339   :  { %2840 = vmatpush1.bf16.msra.mxu0 %v4440_v60  ;;  %3004 = vmatpush1.bf16.msra.mxu1 %v4443_v61  ;;  %v5174_v37 = vrot.slane %v5170_v26, %v5105_v27  ;;  %v4518_v60 = vld [vmem:[#allocation6 + $0x460] ss:$16 sps:$4 sm:$0xff]   ;;  %v4521_v61 = vld [vmem:[#allocation6 + $0x468] ss:$16 sps:$4 sm:$0xff]  }
 0x33a   :  { %2841 = vmatprep.subr.bf16.mxu0 %v4448_v63  ;;  %3005 = vmatprep.subr.bf16.mxu1 %v4451_v0  ;;  %v4529_v63 = vld [vmem:[#allocation6 + $0x48c] ss:$16 sps:$4 sm:$0xff]   ;;  %v4524_v0 = vld [vmem:[#allocation6 + $0x480] ss:$16 sps:$4 sm:$0xff]  }
 0x33b   :  { %v1210_v47 = vcombine.high %v5174_v37, %v5174_v37 }
 0x33d   :  { %2842 = vmatpush1.bf16.msra.mxu0 %v4446_v1  ;;  %3006 = vmatpush1.bf16.msra.mxu1 %v4449_v2  ;;  %v1225_v53 = vpack.c.bf16 %v1210_v47, %v1210_v47  ;;  %v4527_v1 = vld [vmem:[#allocation6 + $0x488] ss:$16 sps:$4 sm:$0xff]   ;;  %v4532_v2 = vld [vmem:[#allocation6 + $0x4a4] ss:$16 sps:$4 sm:$0xff]  }
 0x33e   :  { %2843 = vmatprep.subr.bf16.mxu0 %v4454_v3  ;;  %3007 = vmatprep.subr.bf16.mxu1 %v4457_v4  ;;  %v4535_v3 = vld [vmem:[#allocation6 + $0x4ac] ss:$16 sps:$4 sm:$0xff]   ;;  %v4530_v4 = vld [vmem:[#allocation6 + $0x4a0] ss:$16 sps:$4 sm:$0xff]   ;;  %v4581_v47 = vld [vmem:[#allocation6 + $0x5a8] ss:$16 sps:$4 sm:$0xff]  }
 0x341   :  { %2844 = vmatpush1.bf16.msra.mxu0 %v4452_v5  ;;  %3008 = vmatpush1.bf16.msra.mxu1 %v4455_v6  ;;  %v4533_v5 = vld [vmem:[#allocation6 + $0x4a8] ss:$16 sps:$4 sm:$0xff]   ;;  %v4538_v6 = vld [vmem:[#allocation6 + $0x4c4] ss:$16 sps:$4 sm:$0xff]  }
 0x342   :  { %2845 = vmatprep.subr.bf16.mxu0 %v4460_v7  ;;  %3009 = vmatprep.subr.bf16.mxu1 %v4463_v8  ;;  %v4541_v7 = vld [vmem:[#allocation6 + $0x4cc] ss:$16 sps:$4 sm:$0xff]   ;;  %v4536_v8 = vld [vmem:[#allocation6 + $0x4c0] ss:$16 sps:$4 sm:$0xff]  }
 0x345   :  { %2846 = vmatpush1.bf16.msra.mxu0 %v4458_v58  ;;  %3010 = vmatpush1.bf16.msra.mxu1 %v4461_v9  ;;  %v4539_v58 = vld [vmem:[#allocation6 + $0x4c8] ss:$16 sps:$4 sm:$0xff]   ;;  %v4544_v9 = vld [vmem:[#allocation6 + $0x4e4] ss:$16 sps:$4 sm:$0xff]  }
 0x346   :  { %2847 = vmatprep.subr.bf16.mxu0 %v4466_v10  ;;  %3011 = vmatprep.subr.bf16.mxu1 %v4469_v11  ;;  %v4547_v10 = vld [vmem:[#allocation6 + $0x4ec] ss:$16 sps:$4 sm:$0xff]   ;;  %v4542_v11 = vld [vmem:[#allocation6 + $0x4e0] ss:$16 sps:$4 sm:$0xff]  }
 0x349   :  { %2848 = vmatpush1.bf16.msra.mxu0 %v4464_v12  ;;  %3012 = vmatpush1.bf16.msra.mxu1 %v4467_v13  ;;  %v4545_v12 = vld [vmem:[#allocation6 + $0x4e8] ss:$16 sps:$4 sm:$0xff]   ;;  %v4550_v13 = vld [vmem:[#allocation6 + $0x504] ss:$16 sps:$4 sm:$0xff]  }
 0x34a   :  { %2849 = vmatprep.subr.bf16.mxu0 %v4472_v14  ;;  %3013 = vmatprep.subr.bf16.mxu1 %v4475_v15  ;;  %v4553_v14 = vld [vmem:[#allocation6 + $0x50c] ss:$16 sps:$4 sm:$0xff]   ;;  %v4548_v15 = vld [vmem:[#allocation6 + $0x500] ss:$16 sps:$4 sm:$0xff]  }
 0x34d   :  { %2850 = vmatpush1.bf16.msra.mxu0 %v4470_v16  ;;  %3014 = vmatpush1.bf16.msra.mxu1 %v4473_v17  ;;  %v4551_v16 = vld [vmem:[#allocation6 + $0x508] ss:$16 sps:$4 sm:$0xff]   ;;  %v4556_v17 = vld [vmem:[#allocation6 + $0x524] ss:$16 sps:$4 sm:$0xff]  }
 0x34e   :  { %2851 = vmatprep.subr.bf16.mxu0 %v4478_v19  ;;  %3015 = vmatprep.subr.bf16.mxu1 %v4481_v20  ;;  %v4559_v19 = vld [vmem:[#allocation6 + $0x52c] ss:$16 sps:$4 sm:$0xff]   ;;  %v4554_v20 = vld [vmem:[#allocation6 + $0x520] ss:$16 sps:$4 sm:$0xff]  }
 0x351   :  { %2852 = vmatpush1.bf16.msra.mxu0 %v4476_v21  ;;  %3016 = vmatpush1.bf16.msra.mxu1 %v4479_v33  ;;  %v4557_v21 = vld [vmem:[#allocation6 + $0x528] ss:$16 sps:$4 sm:$0xff]   ;;  %v4562_v33 = vld [vmem:[#allocation6 + $0x544] ss:$16 sps:$4 sm:$0xff]  }
 0x352   :  { %2853 = vmatprep.subr.bf16.mxu0 %v4484_v38  ;;  %3017 = vmatprep.subr.bf16.mxu1 %v4487_v44  ;;  %v4565_v38 = vld [vmem:[#allocation6 + $0x54c] ss:$16 sps:$4 sm:$0xff]   ;;  %v4560_v44 = vld [vmem:[#allocation6 + $0x540] ss:$16 sps:$4 sm:$0xff]  }
 0x355   :  { %2854 = vmatpush1.bf16.msra.mxu0 %v4482_v22  ;;  %3018 = vmatpush1.bf16.msra.mxu1 %v4485_v23  ;;  %v4563_v22 = vld [vmem:[#allocation6 + $0x548] ss:$16 sps:$4 sm:$0xff]   ;;  %v4568_v23 = vld [vmem:[#allocation6 + $0x564] ss:$16 sps:$4 sm:$0xff]  }
 0x356   :  { %2855 = vmatprep.subr.bf16.mxu0 %v4490_v24  ;;  %3019 = vmatprep.subr.bf16.mxu1 %v4493_v25  ;;  %v4571_v24 = vld [vmem:[#allocation6 + $0x56c] ss:$16 sps:$4 sm:$0xff]   ;;  %v4566_v25 = vld [vmem:[#allocation6 + $0x560] ss:$16 sps:$4 sm:$0xff]  }
 0x359   :  { %2856 = vmatpush1.bf16.msra.mxu0 %v4488_v28  ;;  %3020 = vmatpush1.bf16.msra.mxu1 %v4491_v29  ;;  %v4569_v28 = vld [vmem:[#allocation6 + $0x568] ss:$16 sps:$4 sm:$0xff]   ;;  %v4574_v29 = vld [vmem:[#allocation6 + $0x584] ss:$16 sps:$4 sm:$0xff]  }
 0x35a   :  { %2857 = vmatprep.subr.bf16.mxu0 %v4496_v30  ;;  %3021 = vmatprep.subr.bf16.mxu1 %v4499_v35  ;;  %v4577_v30 = vld [vmem:[#allocation6 + $0x58c] ss:$16 sps:$4 sm:$0xff]   ;;  %v4572_v35 = vld [vmem:[#allocation6 + $0x580] ss:$16 sps:$4 sm:$0xff]  }
 0x35d   :  { %2858 = vmatpush1.bf16.msra.mxu0 %v4494_v36  ;;  %3022 = vmatpush1.bf16.msra.mxu1 %v4497_v41  ;;  %v4575_v36 = vld [vmem:[#allocation6 + $0x588] ss:$16 sps:$4 sm:$0xff]   ;;  %v4580_v41 = vld [vmem:[#allocation6 + $0x5a4] ss:$16 sps:$4 sm:$0xff]  }
 0x35e   :  { %2868 = vmatprep.subr.bf16.mxu0 %v4502_v42  ;;  %3032 = vmatprep.subr.bf16.mxu1 %v4505_v45  ;;  %v4583_v42 = vld [vmem:[#allocation6 + $0x5ac] ss:$16 sps:$4 sm:$0xff]   ;;  %v4578_v45 = vld [vmem:[#allocation6 + $0x5a0] ss:$16 sps:$4 sm:$0xff]  }
 0x360   :  { %2860 = vmatmul.mubr.bf16.vlgmr.msra.gmra.mrb[8].mxu0 %v1222_v49  ;;  %3024 = vmatmul.mubr.bf16.vlgmr.msra.gmra.mrb[32].mxu1 %v1222_v49  ;;  %v4589_v49 = vld [vmem:[#allocation6 + $0x5cc] ss:$16 sps:$4 sm:$0xff]  }
 0x361   :  { %2869 = vmatpush1.bf16.msra.mxu0 %v4500_v48  ;;  %2900 = vmatprep.mubr.bf16.mxu0 %v1225_v53  ;;  %v4586_v48 = vld [vmem:[#allocation6 + $0x5c4] ss:$16 sps:$4 sm:$0xff]  }
 0x362   :  { %3033 = vmatpush1.bf16.msra.mxu1 %v4503_v52  ;;  %3064 = vmatprep.mubr.bf16.mxu1 %v1225_v53  ;;  %v1195_v52 = vcombine.high %v5170_v26, %v5170_v26  ;;  %v4584_v53 = vld [vmem:[#allocation6 + $0x5c0] ss:$16 sps:$4 sm:$0xff]  }
 0x363   :  { %2870 = vmatprep.subr.bf16.mxu0 %v4508_v34  ;;  %3034 = vmatprep.subr.bf16.mxu1 %v4511_v50  ;;  %v4587_v34 = vld [vmem:[#allocation6 + $0x5c8] ss:$16 sps:$4 sm:$0xff]   ;;  %v4592_v50 = vld [vmem:[#allocation6 + $0x5e4] ss:$16 sps:$4 sm:$0xff]  }
 0x365   :  { %2871 = vmatpush1.bf16.msra.mxu0 %v4506_v59  ;;  %v4595_v59 = vld [vmem:[#allocation6 + $0x5ec] ss:$16 sps:$4 sm:$0xff]  }
 0x366   :  { %3035 = vmatpush1.bf16.msra.mxu1 %v4509_v54  ;;  %2872 = vmatprep.subr.bf16.mxu0 %v4514_v43  ;;  %v5183_v54 = vrot.slane %v1195_v52, %v5105_v27  ;;  %v4590_v43 = vld [vmem:[#allocation6 + $0x5e0] ss:$16 sps:$4 sm:$0xff]   ;;  %v4599_v27 = vld [vmem:[#allocation6 + $0x608] ss:$16 sps:$4 sm:$0xff]   ;;  %v4670_v52 = vld [vmem:[#allocation6 + $0x784] ss:$16 sps:$4 sm:$0xff]  }
 0x367   :  { %3036 = vmatprep.subr.bf16.mxu1 %v4517_v55  ;;  %v4593_v55 = vld [vmem:[#allocation6 + $0x5e8] ss:$16 sps:$4 sm:$0xff]  }
 0x368   :  { %v1211_v26 = vcombine.high %v5183_v54, %v5183_v54 }
 0x369   :  { %2873 = vmatpush1.bf16.msra.mxu0 %v4512_v46  ;;  %v4598_v46 = vld [vmem:[#allocation6 + $0x604] ss:$16 sps:$4 sm:$0xff]  }
 0x36a   :  { %3037 = vmatpush1.bf16.msra.mxu1 %v4515_v56  ;;  %2874 = vmatprep.subr.bf16.mxu0 %v4520_v51  ;;  %v4601_v56 = vld [vmem:[#allocation6 + $0x60c] ss:$16 sps:$4 sm:$0xff]   ;;  %v4596_v51 = vld [vmem:[#allocation6 + $0x600] ss:$16 sps:$4 sm:$0xff]  }
 0x36b   :  { %3038 = vmatprep.subr.bf16.mxu1 %v4523_v57  ;;  %v1224_v57 = vpack.c.bf16 %v5174_v37, %v5174_v37  ;;  %v4608_v37 = vld [vmem:[#allocation6 + $0x640] ss:$16 sps:$4 sm:$0xff]  }
 0x36d   :  { %2875 = vmatpush1.bf16.msra.mxu0 %v4518_v60  ;;  %v4604_v60 = vld [vmem:[#allocation6 + $0x624] ss:$16 sps:$4 sm:$0xff]  }
 0x36e   :  { %3039 = vmatpush1.bf16.msra.mxu1 %v4521_v61  ;;  %2876 = vmatprep.subr.bf16.mxu0 %v4526_v62  ;;  %v1227_v61 = vpack.c.bf16 %v1211_v26, %v1211_v26  ;;  %v4607_v62 = vld [vmem:[#allocation6 + $0x62c] ss:$16 sps:$4 sm:$0xff]  }
 0x36f   :  { %3040 = vmatprep.subr.bf16.mxu1 %v4529_v63  ;;  %v4602_v63 = vld [vmem:[#allocation6 + $0x620] ss:$16 sps:$4 sm:$0xff]   ;;  %v4685_v26 = vld [vmem:[#allocation6 + $0x7cc] ss:$16 sps:$4 sm:$0xff]  }
 0x371   :  { %2877 = vmatpush1.bf16.msra.mxu0 %v4524_v0  ;;  %v4605_v0 = vld [vmem:[#allocation6 + $0x628] ss:$16 sps:$4 sm:$0xff]  }
 0x372   :  { %3041 = vmatpush1.bf16.msra.mxu1 %v4527_v1  ;;  %2878 = vmatprep.subr.bf16.mxu0 %v4532_v2  ;;  %v4610_v1 = vld [vmem:[#allocation6 + $0x644] ss:$16 sps:$4 sm:$0xff]   ;;  %v4613_v2 = vld [vmem:[#allocation6 + $0x64c] ss:$16 sps:$4 sm:$0xff]  }
 0x373   :  { %3042 = vmatprep.subr.bf16.mxu1 %v4535_v3  ;;  %v4611_v3 = vld [vmem:[#allocation6 + $0x648] ss:$16 sps:$4 sm:$0xff]  }
 0x375   :  { %2879 = vmatpush1.bf16.msra.mxu0 %v4530_v4  ;;  %v4616_v4 = vld [vmem:[#allocation6 + $0x664] ss:$16 sps:$4 sm:$0xff]  }
 0x376   :  { %3043 = vmatpush1.bf16.msra.mxu1 %v4533_v5  ;;  %2880 = vmatprep.subr.bf16.mxu0 %v4538_v6  ;;  %v4619_v5 = vld [vmem:[#allocation6 + $0x66c] ss:$16 sps:$4 sm:$0xff]   ;;  %v4614_v6 = vld [vmem:[#allocation6 + $0x660] ss:$16 sps:$4 sm:$0xff]  }
 0x377   :  { %3044 = vmatprep.subr.bf16.mxu1 %v4541_v7  ;;  %v4617_v7 = vld [vmem:[#allocation6 + $0x668] ss:$16 sps:$4 sm:$0xff]  }
 0x379   :  { %2881 = vmatpush1.bf16.msra.mxu0 %v4536_v8  ;;  %v4622_v8 = vld [vmem:[#allocation6 + $0x684] ss:$16 sps:$4 sm:$0xff]  }
 0x37a   :  { %3045 = vmatpush1.bf16.msra.mxu1 %v4539_v58  ;;  %2882 = vmatprep.subr.bf16.mxu0 %v4544_v9  ;;  %v4625_v58 = vld [vmem:[#allocation6 + $0x68c] ss:$16 sps:$4 sm:$0xff]   ;;  %v4620_v9 = vld [vmem:[#allocation6 + $0x680] ss:$16 sps:$4 sm:$0xff]  }
 0x37b   :  { %3046 = vmatprep.subr.bf16.mxu1 %v4547_v10  ;;  %v4623_v10 = vld [vmem:[#allocation6 + $0x688] ss:$16 sps:$4 sm:$0xff]  }
 0x37d   :  { %2883 = vmatpush1.bf16.msra.mxu0 %v4542_v11  ;;  %v4628_v11 = vld [vmem:[#allocation6 + $0x6a4] ss:$16 sps:$4 sm:$0xff]  }
 0x37e   :  { %3047 = vmatpush1.bf16.msra.mxu1 %v4545_v12  ;;  %2884 = vmatprep.subr.bf16.mxu0 %v4550_v13  ;;  %v4631_v12 = vld [vmem:[#allocation6 + $0x6ac] ss:$16 sps:$4 sm:$0xff]   ;;  %v4626_v13 = vld [vmem:[#allocation6 + $0x6a0] ss:$16 sps:$4 sm:$0xff]  }
 0x37f   :  { %3048 = vmatprep.subr.bf16.mxu1 %v4553_v14  ;;  %v4629_v14 = vld [vmem:[#allocation6 + $0x6a8] ss:$16 sps:$4 sm:$0xff]  }
 0x381   :  { %2885 = vmatpush1.bf16.msra.mxu0 %v4548_v15  ;;  %v4634_v15 = vld [vmem:[#allocation6 + $0x6c4] ss:$16 sps:$4 sm:$0xff]  }
 0x382   :  { %3049 = vmatpush1.bf16.msra.mxu1 %v4551_v16  ;;  %2886 = vmatprep.subr.bf16.mxu0 %v4556_v17  ;;  %v4637_v16 = vld [vmem:[#allocation6 + $0x6cc] ss:$16 sps:$4 sm:$0xff]   ;;  %v4632_v17 = vld [vmem:[#allocation6 + $0x6c0] ss:$16 sps:$4 sm:$0xff]  }
 0x383   :  { %3050 = vmatprep.subr.bf16.mxu1 %v4559_v19  ;;  %v4635_v19 = vld [vmem:[#allocation6 + $0x6c8] ss:$16 sps:$4 sm:$0xff]  }
 0x385   :  { %2887 = vmatpush1.bf16.msra.mxu0 %v4554_v20  ;;  %v4640_v20 = vld [vmem:[#allocation6 + $0x6e4] ss:$16 sps:$4 sm:$0xff]  }
 0x386   :  { %3051 = vmatpush1.bf16.msra.mxu1 %v4557_v21  ;;  %2888 = vmatprep.subr.bf16.mxu0 %v4562_v33  ;;  %v4643_v21 = vld [vmem:[#allocation6 + $0x6ec] ss:$16 sps:$4 sm:$0xff]   ;;  %v4638_v33 = vld [vmem:[#allocation6 + $0x6e0] ss:$16 sps:$4 sm:$0xff]  }
 0x387   :  { %3052 = vmatprep.subr.bf16.mxu1 %v4565_v38  ;;  %v4641_v38 = vld [vmem:[#allocation6 + $0x6e8] ss:$16 sps:$4 sm:$0xff]  }
 0x389   :  { %2889 = vmatpush1.bf16.msra.mxu0 %v4560_v44  ;;  %v4646_v44 = vld [vmem:[#allocation6 + $0x704] ss:$16 sps:$4 sm:$0xff]  }
 0x38a   :  { %3053 = vmatpush1.bf16.msra.mxu1 %v4563_v22  ;;  %2890 = vmatprep.subr.bf16.mxu0 %v4568_v23  ;;  %v4649_v22 = vld [vmem:[#allocation6 + $0x70c] ss:$16 sps:$4 sm:$0xff]   ;;  %v4644_v23 = vld [vmem:[#allocation6 + $0x700] ss:$16 sps:$4 sm:$0xff]  }
 0x38b   :  { %3054 = vmatprep.subr.bf16.mxu1 %v4571_v24  ;;  %v4647_v24 = vld [vmem:[#allocation6 + $0x708] ss:$16 sps:$4 sm:$0xff]  }
 0x38d   :  { %2891 = vmatpush1.bf16.msra.mxu0 %v4566_v25  ;;  %v4652_v25 = vld [vmem:[#allocation6 + $0x724] ss:$16 sps:$4 sm:$0xff]  }
 0x38e   :  { %3055 = vmatpush1.bf16.msra.mxu1 %v4569_v28  ;;  %2892 = vmatprep.subr.bf16.mxu0 %v4574_v29  ;;  %v4655_v28 = vld [vmem:[#allocation6 + $0x72c] ss:$16 sps:$4 sm:$0xff]   ;;  %v4650_v29 = vld [vmem:[#allocation6 + $0x720] ss:$16 sps:$4 sm:$0xff]  }
 0x38f   :  { %3056 = vmatprep.subr.bf16.mxu1 %v4577_v30  ;;  %v4653_v30 = vld [vmem:[#allocation6 + $0x728] ss:$16 sps:$4 sm:$0xff]  }
 0x391   :  { %2893 = vmatpush1.bf16.msra.mxu0 %v4572_v35  ;;  %v4658_v35 = vld [vmem:[#allocation6 + $0x744] ss:$16 sps:$4 sm:$0xff]  }
 0x392   :  { %3057 = vmatpush1.bf16.msra.mxu1 %v4575_v36  ;;  %2894 = vmatprep.subr.bf16.mxu0 %v4580_v41  ;;  %v4661_v36 = vld [vmem:[#allocation6 + $0x74c] ss:$16 sps:$4 sm:$0xff]   ;;  %v4656_v41 = vld [vmem:[#allocation6 + $0x740] ss:$16 sps:$4 sm:$0xff]  }
 0x393   :  { %3058 = vmatprep.subr.bf16.mxu1 %v4583_v42  ;;  %v4659_v42 = vld [vmem:[#allocation6 + $0x748] ss:$16 sps:$4 sm:$0xff]  }
 0x395   :  { %2895 = vmatpush1.bf16.msra.mxu0 %v4578_v45  ;;  %v4664_v45 = vld [vmem:[#allocation6 + $0x764] ss:$16 sps:$4 sm:$0xff]  }
 0x396   :  { %3059 = vmatpush1.bf16.msra.mxu1 %v4581_v47  ;;  %2896 = vmatprep.subr.bf16.mxu0 %v4586_v48  ;;  %v4667_v47 = vld [vmem:[#allocation6 + $0x76c] ss:$16 sps:$4 sm:$0xff]   ;;  %v4662_v48 = vld [vmem:[#allocation6 + $0x760] ss:$16 sps:$4 sm:$0xff]  }
 0x397   :  { %3060 = vmatprep.subr.bf16.mxu1 %v4589_v49  ;;  %v4665_v49 = vld [vmem:[#allocation6 + $0x768] ss:$16 sps:$4 sm:$0xff]  }
 0x399   :  { %2897 = vmatpush1.bf16.msra.mxu0 %v4584_v53  ;;  %v4673_v53 = vld [vmem:[#allocation6 + $0x78c] ss:$16 sps:$4 sm:$0xff]  }
 0x39a   :  { %3061 = vmatpush1.bf16.msra.mxu1 %v4587_v34  ;;  %2898 = vmatprep.subr.bf16.mxu0 %v4592_v50  ;;  %v4668_v34 = vld [vmem:[#allocation6 + $0x780] ss:$16 sps:$4 sm:$0xff]   ;;  %v4671_v50 = vld [vmem:[#allocation6 + $0x788] ss:$16 sps:$4 sm:$0xff]  }
 0x39b   :  { %3062 = vmatprep.subr.bf16.mxu1 %v4595_v59  ;;  %v4676_v59 = vld [vmem:[#allocation6 + $0x7a4] ss:$16 sps:$4 sm:$0xff]  }
 0x39d   :  { %2899 = vmatpush1.bf16.msra.mxu0 %v4590_v43  ;;  %v4679_v43 = vld [vmem:[#allocation6 + $0x7ac] ss:$16 sps:$4 sm:$0xff]  }
 0x39e   :  { %3063 = vmatpush1.bf16.msra.mxu1 %v4593_v55  ;;  %2909 = vmatprep.subr.bf16.mxu0 %v4598_v46  ;;  %v4674_v55 = vld [vmem:[#allocation6 + $0x7a0] ss:$16 sps:$4 sm:$0xff]   ;;  %v4677_v46 = vld [vmem:[#allocation6 + $0x7a8] ss:$16 sps:$4 sm:$0xff]  }
 0x39f   :  { %3073 = vmatprep.subr.bf16.mxu1 %v4601_v56  ;;  %v4682_v56 = vld [vmem:[#allocation6 + $0x7c4] ss:$16 sps:$4 sm:$0xff]  }
 0x3a0   :  { %2901 = vmatmul.mubr.bf16.vlgmr.msra.gmra.mrb[8].mxu0 %v1224_v57 }
 0x3a1   :  { %3065 = vmatmul.mubr.bf16.vlgmr.msra.gmra.mrb[32].mxu1 %v1224_v57  ;;  %2910 = vmatpush1.bf16.msra.mxu0 %v4596_v51  ;;  %v4680_v51 = vld [vmem:[#allocation6 + $0x7c0] ss:$16 sps:$4 sm:$0xff]   ;;  %v4683_v57 = vld [vmem:[#allocation6 + $0x7c8] ss:$16 sps:$4 sm:$0xff]  }
 0x3a2   :  { %2941 = vmatprep.mubr.bf16.mxu0 %v1227_v61  ;;  %3074 = vmatpush1.bf16.msra.mxu1 %v4599_v27  ;;  %v4688_v27 = vld [vmem:[#allocation6 + $0x7e4] ss:$16 sps:$4 sm:$0xff]  }
 0x3a3   :  { %3105 = vmatprep.mubr.bf16.mxu1 %v1227_v61  ;;  %2911 = vmatprep.subr.bf16.mxu0 %v4604_v60  ;;  %v4691_v60 = vld [vmem:[#allocation6 + $0x7ec] ss:$16 sps:$4 sm:$0xff]   ;;  %v4686_v61 = vld [vmem:[#allocation6 + $0x7e0] ss:$16 sps:$4 sm:$0xff]  }
 0x3a4   :  { %3075 = vmatprep.subr.bf16.mxu1 %v4607_v62  ;;  %v4689_v62 = vld [vmem:[#allocation6 + $0x7e8] ss:$16 sps:$4 sm:$0xff]  }
 0x3a5   :  { %2912 = vmatpush1.bf16.msra.mxu0 %v4602_v63  ;;  %v4694_v63 = vld [vmem:[#allocation8 + $0x4] ss:$8 sps:$4 sm:$0xff]  }
 0x3a6   :  { %3076 = vmatpush1.bf16.msra.mxu1 %v4605_v0  ;;  %2913 = vmatprep.subr.bf16.mxu0 %v4610_v1  ;;  %v4692_v0 = vld [vmem:[#allocation8] ss:$8 sps:$4 sm:$0xff]   ;;  %v1226_v1 = vpack.c.bf16 %v5183_v54, %v5183_v54  ;;  %v4709_v54 = vld [vmem:[#allocation8 + $0x54] ss:$8 sps:$4 sm:$0xff]  }
 0x3a7   :  { %3077 = vmatprep.subr.bf16.mxu1 %v4613_v2  ;;  %v4697_v2 = vld [vmem:[#allocation8 + $0x14] ss:$8 sps:$4 sm:$0xff]  }
 0x3a9   :  { %2914 = vmatpush1.bf16.msra.mxu0 %v4608_v37  ;;  %v4695_v37 = vld [vmem:[#allocation8 + $0x10] ss:$8 sps:$4 sm:$0xff]  }
 0x3aa   :  { %3078 = vmatpush1.bf16.msra.mxu1 %v4611_v3  ;;  %2915 = vmatprep.subr.bf16.mxu0 %v4616_v4  ;;  %v4700_v3 = vld [vmem:[#allocation8 + $0x24] ss:$8 sps:$4 sm:$0xff]   ;;  %v4698_v4 = vld [vmem:[#allocation8 + $0x20] ss:$8 sps:$4 sm:$0xff]  }
 0x3ab   :  { %3079 = vmatprep.subr.bf16.mxu1 %v4619_v5  ;;  %v4703_v5 = vld [vmem:[#allocation8 + $0x34] ss:$8 sps:$4 sm:$0xff]  }
 0x3ad   :  { %2916 = vmatpush1.bf16.msra.mxu0 %v4614_v6  ;;  %v4701_v6 = vld [vmem:[#allocation8 + $0x30] ss:$8 sps:$4 sm:$0xff]  }
 0x3ae   :  { %3080 = vmatpush1.bf16.msra.mxu1 %v4617_v7  ;;  %2917 = vmatprep.subr.bf16.mxu0 %v4622_v8  ;;  %v4706_v7 = vld [vmem:[#allocation8 + $0x44] ss:$8 sps:$4 sm:$0xff]   ;;  %v4704_v8 = vld [vmem:[#allocation8 + $0x40] ss:$8 sps:$4 sm:$0xff]  }
 0x3af   :  { %3081 = vmatprep.subr.bf16.mxu1 %v4625_v58  ;;  %v4707_v58 = vld [vmem:[#allocation8 + $0x50] ss:$8 sps:$4 sm:$0xff]  }
 0x3b1   :  { %2918 = vmatpush1.bf16.msra.mxu0 %v4620_v9  ;;  %v4712_v9 = vld [vmem:[#allocation8 + $0x64] ss:$8 sps:$4 sm:$0xff]  }
 0x3b2   :  { %3082 = vmatpush1.bf16.msra.mxu1 %v4623_v10  ;;  %2919 = vmatprep.subr.bf16.mxu0 %v4628_v11  ;;  %v4710_v10 = vld [vmem:[#allocation8 + $0x60] ss:$8 sps:$4 sm:$0xff]   ;;  %v4715_v11 = vld [vmem:[#allocation8 + $0x74] ss:$8 sps:$4 sm:$0xff]  }
 0x3b3   :  { %3083 = vmatprep.subr.bf16.mxu1 %v4631_v12  ;;  %v4713_v12 = vld [vmem:[#allocation8 + $0x70] ss:$8 sps:$4 sm:$0xff]  }
 0x3b5   :  { %2920 = vmatpush1.bf16.msra.mxu0 %v4626_v13  ;;  %v4718_v13 = vld [vmem:[#allocation8 + $0x84] ss:$8 sps:$4 sm:$0xff]  }
 0x3b6   :  { %3084 = vmatpush1.bf16.msra.mxu1 %v4629_v14  ;;  %2921 = vmatprep.subr.bf16.mxu0 %v4634_v15  ;;  %v4716_v14 = vld [vmem:[#allocation8 + $0x80] ss:$8 sps:$4 sm:$0xff]   ;;  %v4721_v15 = vld [vmem:[#allocation8 + $0x94] ss:$8 sps:$4 sm:$0xff]  }
 0x3b7   :  { %3085 = vmatprep.subr.bf16.mxu1 %v4637_v16  ;;  %v4719_v16 = vld [vmem:[#allocation8 + $0x90] ss:$8 sps:$4 sm:$0xff]  }
 0x3b9   :  { %2922 = vmatpush1.bf16.msra.mxu0 %v4632_v17  ;;  %v4724_v17 = vld [vmem:[#allocation8 + $0xa4] ss:$8 sps:$4 sm:$0xff]  }
 0x3ba   :  { %3086 = vmatpush1.bf16.msra.mxu1 %v4635_v19  ;;  %2923 = vmatprep.subr.bf16.mxu0 %v4640_v20  ;;  %v4722_v19 = vld [vmem:[#allocation8 + $0xa0] ss:$8 sps:$4 sm:$0xff]   ;;  %v4727_v20 = vld [vmem:[#allocation8 + $0xb4] ss:$8 sps:$4 sm:$0xff]  }
 0x3bb   :  { %3087 = vmatprep.subr.bf16.mxu1 %v4643_v21  ;;  %v4725_v21 = vld [vmem:[#allocation8 + $0xb0] ss:$8 sps:$4 sm:$0xff]  }
 0x3bd   :  { %2924 = vmatpush1.bf16.msra.mxu0 %v4638_v33  ;;  %v4730_v33 = vld [vmem:[#allocation8 + $0xc4] ss:$8 sps:$4 sm:$0xff]  }
 0x3be   :  { %3088 = vmatpush1.bf16.msra.mxu1 %v4641_v38  ;;  %2925 = vmatprep.subr.bf16.mxu0 %v4646_v44  ;;  %v4728_v38 = vld [vmem:[#allocation8 + $0xc0] ss:$8 sps:$4 sm:$0xff]   ;;  %v4733_v44 = vld [vmem:[#allocation8 + $0xd4] ss:$8 sps:$4 sm:$0xff]  }
 0x3bf   :  { %3089 = vmatprep.subr.bf16.mxu1 %v4649_v22  ;;  %v4731_v22 = vld [vmem:[#allocation8 + $0xd0] ss:$8 sps:$4 sm:$0xff]  }
 0x3c1   :  { %2926 = vmatpush1.bf16.msra.mxu0 %v4644_v23  ;;  %v4736_v23 = vld [vmem:[#allocation8 + $0xe4] ss:$8 sps:$4 sm:$0xff]  }
 0x3c2   :  { %3090 = vmatpush1.bf16.msra.mxu1 %v4647_v24  ;;  %2927 = vmatprep.subr.bf16.mxu0 %v4652_v25  ;;  %v4734_v24 = vld [vmem:[#allocation8 + $0xe0] ss:$8 sps:$4 sm:$0xff]   ;;  %v4739_v25 = vld [vmem:[#allocation8 + $0xf4] ss:$8 sps:$4 sm:$0xff]  }
 0x3c3   :  { %3091 = vmatprep.subr.bf16.mxu1 %v4655_v28  ;;  %v4737_v28 = vld [vmem:[#allocation8 + $0xf0] ss:$8 sps:$4 sm:$0xff]  }
 0x3c5   :  { %2928 = vmatpush1.bf16.msra.mxu0 %v4650_v29  ;;  %v4742_v29 = vld [vmem:[#allocation8 + $0x104] ss:$8 sps:$4 sm:$0xff]  }
 0x3c6   :  { %3092 = vmatpush1.bf16.msra.mxu1 %v4653_v30  ;;  %2929 = vmatprep.subr.bf16.mxu0 %v4658_v35  ;;  %v4788_v30 = vld [vmem:[%s5288_s11 + $0x40] sm:$0xff]  }
 0x3c7   :  { %3093 = vmatprep.subr.bf16.mxu1 %v4661_v36  ;;  %v4789_v35 = vld [vmem:[%s5288_s11] sm:$0xff]   ;;  %v4790_v36 = vld [vmem:[%s5288_s11 + $0x48] sm:$0xff]  }
 0x3c9   :  { %2930 = vmatpush1.bf16.msra.mxu0 %v4656_v41  ;;  %v4791_v41 = vld [vmem:[%s5288_s11 + $0x8] sm:$0xff]  }
 0x3ca   :  { %3094 = vmatpush1.bf16.msra.mxu1 %v4659_v42  ;;  %2931 = vmatprep.subr.bf16.mxu0 %v4664_v45  ;;  %v4792_v42 = vld [vmem:[%s5288_s11 + $0x50] sm:$0xff]  }
 0x3cb   :  { %3095 = vmatprep.subr.bf16.mxu1 %v4667_v47  ;;  %v4793_v45 = vld [vmem:[%s5288_s11 + $0x10] sm:$0xff]   ;;  %v4794_v47 = vld [vmem:[%s5288_s11 + $0x58] sm:$0xff]  }
 0x3cd   :  { %2932 = vmatpush1.bf16.msra.mxu0 %v4662_v48  ;;  %v4795_v48 = vld [vmem:[%s5288_s11 + $0x18] sm:$0xff]  }
 0x3ce   :  { %3096 = vmatpush1.bf16.msra.mxu1 %v4665_v49  ;;  %2933 = vmatprep.subr.bf16.mxu0 %v4670_v52  ;;  %v4796_v49 = vld [vmem:[%s5288_s11 + $0x60] sm:$0xff]  }
 0x3cf   :  { %3097 = vmatprep.subr.bf16.mxu1 %v4673_v53  ;;  %v4797_v52 = vld [vmem:[%s5288_s11 + $0x20] sm:$0xff]   ;;  %v4798_v53 = vld [vmem:[%s5288_s11 + $0x68] sm:$0xff]  }
 0x3d1   :  { %2934 = vmatpush1.bf16.msra.mxu0 %v4668_v34  ;;  %v4799_v34 = vld [vmem:[%s5288_s11 + $0x28] sm:$0xff]  }
 0x3d2   :  { %3098 = vmatpush1.bf16.msra.mxu1 %v4671_v50  ;;  %2935 = vmatprep.subr.bf16.mxu0 %v4676_v59  ;;  %v5230_v50 = vld [vmem:[%s5285_s8] sm:$0xf] }
 0x3d3   :  { %3099 = vmatprep.subr.bf16.mxu1 %v4679_v43  ;;  %v1489_v59 = vrot.slane %v5230_v50, %v5108_v31  ;;  %v1493_v43 = vrot.slane %v5230_v50, %v5111_v32 }
 0x3d5   :  { %2936 = vmatpush1.bf16.msra.mxu0 %v4674_v55  ;;  %v1501_v55 = vrot.slane %v5230_v50, %v1118_v40 }
 0x3d6   :  { %3100 = vmatpush1.bf16.msra.mxu1 %v4677_v46  ;;  %2937 = vmatprep.subr.bf16.mxu0 %v4682_v56 }
 0x3d7   :  { %3101 = vmatprep.subr.bf16.mxu1 %v4685_v26 }
 0x3d9   :  { %2938 = vmatpush1.bf16.msra.mxu0 %v4680_v51 }
 0x3da   :  { %3102 = vmatpush1.bf16.msra.mxu1 %v4683_v57  ;;  %2939 = vmatprep.subr.bf16.mxu0 %v4688_v27 }
 0x3db   :  { %3103 = vmatprep.subr.bf16.mxu1 %v4691_v60 }
 0x3dd   :  { %2940 = vmatpush1.bf16.msra.mxu0 %v4686_v61 }
 0x3de   :  { %3104 = vmatpush1.bf16.msra.mxu1 %v4689_v62  ;;  %3518 = vmatprep.subr.bf16.mxu0 %v4694_v63 }
 0x3df   :  { %4217 = vmatprep.subr.bf16.mxu1 %v4788_v30  ;;  %v1497_v30 = vrot.slane %v5230_v50, %v1114_v39  ;;  %v4801_v39 = vld [vmem:[%s5288_s11 + $0x30] sm:$0xff]  }
 0x3e0   :  { %2942 = vmatmul.mubr.bf16.vlgmr.msra.gmra.mrb[8].mxu0 %v1226_v1 }
 0x3e1   :  { %3106 = vmatmul.mubr.bf16.vlgmr.msra.gmra.mrb[32].mxu1 %v1226_v1  ;;  %3519 = vmatpush1.bf16.msra.mxu0 %v4692_v0 }
 0x3e2   :  { %3520 = vmatprep.subr.bf16.mxu0 %v4697_v2  ;;  %4218 = vmatpush3.bf16.msra.mxu1 %v4789_v35  ;;  %v4784_v35 = vld [vmem:[#allocation8 + $0x1e4] ss:$8 sps:$4 sm:$0xff]  }
 0x3e3   :  { %4219 = vmatprep.subr.bf16.mxu1 %v4790_v36  ;;  %v4782_v36 = vld [vmem:[#allocation8 + $0x1e0] ss:$8 sps:$4 sm:$0xff]  }
 0x3e5   :  { %3521 = vmatpush1.bf16.msra.mxu0 %v4695_v37 }
 0x3e6   :  { %3522 = vmatprep.subr.bf16.mxu0 %v4700_v3  ;;  %4220 = vmatpush3.bf16.msra.mxu1 %v4791_v41 }
 0x3e7   :  { %4221 = vmatprep.subr.bf16.mxu1 %v4792_v42  ;;  %v4787_v42 = vld [vmem:[#allocation8 + $0x1f4] ss:$8 sps:$4 sm:$0xff]  }
 0x3e9   :  { %3523 = vmatpush1.bf16.msra.mxu0 %v4698_v4  ;;  %v4740_v4 = vld [vmem:[#allocation8 + $0x100] ss:$8 sps:$4 sm:$0xff]  }
 0x3ea   :  { %3524 = vmatprep.subr.bf16.mxu0 %v4703_v5  ;;  %4222 = vmatpush3.bf16.msra.mxu1 %v4793_v45  ;;  %v4785_v45 = vld [vmem:[#allocation8 + $0x1f0] ss:$8 sps:$4 sm:$0xff]  }
 0x3eb   :  { %4223 = vmatprep.subr.bf16.mxu1 %v4794_v47 }
 0x3ed   :  { %3525 = vmatpush1.bf16.msra.mxu0 %v4701_v6  ;;  %v4745_v6 = vld [vmem:[#allocation8 + $0x114] ss:$8 sps:$4 sm:$0xff]  }
 0x3ee   :  { %3526 = vmatprep.subr.bf16.mxu0 %v4706_v7  ;;  %4224 = vmatpush3.bf16.msra.mxu1 %v4795_v48  ;;  %v4743_v7 = vld [vmem:[#allocation8 + $0x110] ss:$8 sps:$4 sm:$0xff]  }
 0x3ef   :  { %4225 = vmatprep.subr.bf16.mxu1 %v4796_v49  ;;  %v4802_v49 = vld [vmem:[%s5288_s11 + $0x78] sm:$0xff]  }
 0x3f1   :  { %3527 = vmatpush1.bf16.msra.mxu0 %v4704_v8  ;;  %v4748_v8 = vld [vmem:[#allocation8 + $0x124] ss:$8 sps:$4 sm:$0xff]  }
 0x3f2   :  { %3528 = vmatprep.subr.bf16.mxu0 %v4709_v54  ;;  %4226 = vmatpush3.bf16.msra.mxu1 %v4797_v52  ;;  %v4746_v54 = vld [vmem:[#allocation8 + $0x120] ss:$8 sps:$4 sm:$0xff]   ;;  %v4803_v52 = vld [vmem:[%s5288_s11 + $0x38] sm:$0xff]  }
 0x3f3   :  { %4227 = vmatprep.subr.bf16.mxu1 %v4798_v53  ;;  %v3186_v53 = vld [vmem:[%s5287_s10] sm:$0x3]  ;;  %s4910_s10 = smov [#allocation9]  }
 0x3f4   :  { %v3195_v50 = vrot.slane %v3186_v53, %v5111_v32  ;;  %s3787_s20 = sshll.u32 %s4910_s10, 4  ;;  %s3788_s20 = int_to_ptr.vmem [resolvable:$true] %s3787_s20 }
 0x3f5   :  { %3529 = vmatpush1.bf16.msra.mxu0 %v4707_v58  ;;  %v4751_v58 = vld [vmem:[#allocation8 + $0x134] ss:$8 sps:$4 sm:$0xff]   ;;  %s4870_s21 = scalar_lea.vmem %s3788_s20, 32  ;;  %p4875_p11 = scmp.lt.s32.totalorder %s3788_s20, %s3788_s20 }
 0x3f6   :  { %3530 = vmatprep.subr.bf16.mxu0 %v4712_v9  ;;  %4228 = vmatpush3.bf16.msra.mxu1 %v4799_v34  ;;  %v4749_v9 = vld [vmem:[#allocation8 + $0x130] ss:$8 sps:$4 sm:$0xff]   ;;  %v3191_v34 = vrot.slane %v3186_v53, %v5108_v31  ;;  %p4871_p10 = scmp.ne.s32.totalorder %s3788_s20, %s4870_s21  ;;  %p4876_p12 = scmp.lt.s32.totalorder %s4870_s21, %s4870_s21 }
 0x3f7   :  { %4229 = vmatprep.subr.bf16.mxu1 %v4800_v18 }
 0x3f8   :  { %p4877_p13 = por %p4876_p12, %p4875_p11 }
 0x3f9   :  { %3531 = vmatpush1.bf16.msra.mxu0 %v4710_v10  ;;  %v4754_v10 = vld [vmem:[#allocation8 + $0x144] ss:$8 sps:$4 sm:$0xff]  }
 0x3fa   :  { %3532 = vmatprep.subr.bf16.mxu0 %v4715_v11  ;;  %v4752_v11 = vld [vmem:[#allocation8 + $0x140] ss:$8 sps:$4 sm:$0xff]   ;;  %4230 = vmatpush3.bf16.msra.mxu1 %v4801_v39  ;;  %p4878_p0 = pnand %p4877_p13, %p4871_p10 }
 0x3fb   :  { %4231 = vmatprep.subr.bf16.mxu1 %v4802_v49 }
 0x3fd   :  { %3533 = vmatpush1.bf16.msra.mxu0 %v4713_v12  ;;  %v4757_v12 = vld [vmem:[#allocation8 + $0x154] ss:$8 sps:$4 sm:$0xff]  }
 0x3fe   :  { %3534 = vmatprep.subr.bf16.mxu0 %v4718_v13  ;;  %v4755_v13 = vld [vmem:[#allocation8 + $0x150] ss:$8 sps:$4 sm:$0xff]   ;;  %4232 = vmatpush3.bf16.msra.mxu1 %v4803_v52 }
 0x401   :  { %3535 = vmatpush1.bf16.msra.mxu0 %v4716_v14  ;;  %v4760_v14 = vld [vmem:[#allocation8 + $0x164] ss:$8 sps:$4 sm:$0xff]  }
 0x402   :  { %3536 = vmatprep.subr.bf16.mxu0 %v4721_v15  ;;  %v4758_v15 = vld [vmem:[#allocation8 + $0x160] ss:$8 sps:$4 sm:$0xff]  }
 0x405   :  { %3537 = vmatpush1.bf16.msra.mxu0 %v4719_v16  ;;  %v4763_v16 = vld [vmem:[#allocation8 + $0x174] ss:$8 sps:$4 sm:$0xff]  }
 0x406   :  { %3538 = vmatprep.subr.bf16.mxu0 %v4724_v17  ;;  %v4761_v17 = vld [vmem:[#allocation8 + $0x170] ss:$8 sps:$4 sm:$0xff]  }
 0x409   :  { %3539 = vmatpush1.bf16.msra.mxu0 %v4722_v19  ;;  %v4766_v19 = vld [vmem:[#allocation8 + $0x184] ss:$8 sps:$4 sm:$0xff]  }
 0x40a   :  { %3540 = vmatprep.subr.bf16.mxu0 %v4727_v20  ;;  %v4764_v20 = vld [vmem:[#allocation8 + $0x180] ss:$8 sps:$4 sm:$0xff]  }
 0x40d   :  { %3541 = vmatpush1.bf16.msra.mxu0 %v4725_v21  ;;  %v4769_v21 = vld [vmem:[#allocation8 + $0x194] ss:$8 sps:$4 sm:$0xff]  }
 0x40e   :  { %3542 = vmatprep.subr.bf16.mxu0 %v4730_v33  ;;  %v4767_v33 = vld [vmem:[#allocation8 + $0x190] ss:$8 sps:$4 sm:$0xff]  }
 0x411   :  { %3543 = vmatpush1.bf16.msra.mxu0 %v4728_v38  ;;  %v4772_v38 = vld [vmem:[#allocation8 + $0x1a4] ss:$8 sps:$4 sm:$0xff]  }
 0x412   :  { %3544 = vmatprep.subr.bf16.mxu0 %v4733_v44  ;;  %v4770_v44 = vld [vmem:[#allocation8 + $0x1a0] ss:$8 sps:$4 sm:$0xff]  }
 0x415   :  { %3545 = vmatpush1.bf16.msra.mxu0 %v4731_v22  ;;  %v4775_v22 = vld [vmem:[#allocation8 + $0x1b4] ss:$8 sps:$4 sm:$0xff]  }
 0x416   :  { %3546 = vmatprep.subr.bf16.mxu0 %v4736_v23  ;;  %v4773_v23 = vld [vmem:[#allocation8 + $0x1b0] ss:$8 sps:$4 sm:$0xff]  }
 0x419   :  { %3547 = vmatpush1.bf16.msra.mxu0 %v4734_v24  ;;  %v4778_v24 = vld [vmem:[#allocation8 + $0x1c4] ss:$8 sps:$4 sm:$0xff]  }
 0x41a   :  { %3548 = vmatprep.subr.bf16.mxu0 %v4739_v25  ;;  %v4776_v25 = vld [vmem:[#allocation8 + $0x1c0] ss:$8 sps:$4 sm:$0xff]  }
 0x41d   :  { %3549 = vmatpush1.bf16.msra.mxu0 %v4737_v28  ;;  %v4781_v28 = vld [vmem:[#allocation8 + $0x1d4] ss:$8 sps:$4 sm:$0xff]  }
 0x41e   :  { %3559 = vmatprep.subr.bf16.mxu0 %v4742_v29  ;;  %v4779_v29 = vld [vmem:[#allocation8 + $0x1d0] ss:$8 sps:$4 sm:$0xff]  }
 0x4b3   :  { %v2943_v46 = vpop.f32.mrb[8].mxu0 }
 0x4b4   :  { %v4257_v56 = vadd.f32 %v2943_v46, %v1489_v59  ;;  %v5239_v26 = vpop.f32.mrb[32].mxu1  ;;  %v2945_v51 = vpop.f32.mrb[9].mxu0 }
 0x4b5   :  { %v4258_v57 = vadd.f32 %v2945_v51, %v1493_v43  ;;  %v3109_v27 = vpop.f32.mrb[33].mxu1  ;;  %v2947_v60 = vpop.f32.mrb[10].mxu0  ;;  %v4259_v41 = vadd.f32 %v5239_v26, %v1497_v30 }
 0x4b6   :  { %v3114_v61 = vmax.f32 %v4257_v56, 0.0  ;;  %v4260_v62 = vadd.f32 %v3109_v27, %v1501_v55  ;;  %v3111_v63 = vpop.f32.mrb[34].mxu1  ;;  %v2948_v0 = vpop.f32.mrb[11].mxu0 }
 0x4b7   :  { %v3115_v1 = vmax.f32 %v4258_v57, 0.0  ;;  %v3112_v2 = vpop.f32.mrb[35].mxu1  ;;  %v3116_v47 = vmax.f32 %v4259_v41, 0.0 }
 0x4b8   :  { %v3117_v37 = vmax.f32 %v4260_v62, 0.0  ;;  %v3118_v5 = vpack.c.bf16 %v3114_v61, %v3114_v61  ;;  %v4191_v62 = vld [vmem:[%s5289_s12] ss:$0 sm:$0xff] }
 0x4b9   :  { %v3119_v3 = vpack.c.bf16 %v3115_v1, %v3115_v1  ;;  %v3120_v48 = vpack.c.bf16 %v3116_v47, %v3116_v47 }
 0x4ba   :  { %v3121_v40 = vpack.c.bf16 %v3117_v37, %v3117_v37 }
 0x4bb   :  { %3550 = vmatprep.mubr.bf16.mxu0 %v3119_v3 }
 0x4bc   :  { %3551 = vmatmul.mubr.bf16.vlgmr.msra.gmra.mrb[12].mxu0 %v3118_v5 }
 0x4bd   :  { %3560 = vmatpush1.bf16.msra.mxu0 %v4740_v4  ;;  %3591 = vmatprep.mubr.bf16.mxu0 %v3121_v40 }
 0x4be   :  { %3561 = vmatprep.subr.bf16.mxu0 %v4745_v6 }
 0x4c1   :  { %3562 = vmatpush1.bf16.msra.mxu0 %v4743_v7 }
 0x4c2   :  { %3563 = vmatprep.subr.bf16.mxu0 %v4748_v8 }
 0x4c5   :  { %3564 = vmatpush1.bf16.msra.mxu0 %v4746_v54 }
 0x4c6   :  { %3565 = vmatprep.subr.bf16.mxu0 %v4751_v58 }
 0x4c9   :  { %3566 = vmatpush1.bf16.msra.mxu0 %v4749_v9 }
 0x4ca   :  { %3567 = vmatprep.subr.bf16.mxu0 %v4754_v10 }
 0x4cd   :  { %3568 = vmatpush1.bf16.msra.mxu0 %v4752_v11 }
 0x4ce   :  { %3569 = vmatprep.subr.bf16.mxu0 %v4757_v12 }
 0x4d1   :  { %3570 = vmatpush1.bf16.msra.mxu0 %v4755_v13 }
 0x4d2   :  { %3571 = vmatprep.subr.bf16.mxu0 %v4760_v14 }
 0x4d5   :  { %3572 = vmatpush1.bf16.msra.mxu0 %v4758_v15 }
 0x4d6   :  { %3573 = vmatprep.subr.bf16.mxu0 %v4763_v16 }
 0x4d9   :  { %3574 = vmatpush1.bf16.msra.mxu0 %v4761_v17 }
 0x4da   :  { %3575 = vmatprep.subr.bf16.mxu0 %v4766_v19 }
 0x4dd   :  { %3576 = vmatpush1.bf16.msra.mxu0 %v4764_v20 }
 0x4de   :  { %3577 = vmatprep.subr.bf16.mxu0 %v4769_v21 }
 0x4e1   :  { %3578 = vmatpush1.bf16.msra.mxu0 %v4767_v33 }
 0x4e2   :  { %3579 = vmatprep.subr.bf16.mxu0 %v4772_v38 }
 0x4e5   :  { %3580 = vmatpush1.bf16.msra.mxu0 %v4770_v44 }
 0x4e6   :  { %3581 = vmatprep.subr.bf16.mxu0 %v4775_v22 }
 0x4e9   :  { %3582 = vmatpush1.bf16.msra.mxu0 %v4773_v23 }
 0x4ea   :  { %3583 = vmatprep.subr.bf16.mxu0 %v4778_v24 }
 0x4ed   :  { %3584 = vmatpush1.bf16.msra.mxu0 %v4776_v25 }
 0x4ee   :  { %3585 = vmatprep.subr.bf16.mxu0 %v4781_v28 }
 0x4f1   :  { %3586 = vmatpush1.bf16.msra.mxu0 %v4779_v29 }
 0x4f2   :  { %3587 = vmatprep.subr.bf16.mxu0 %v4784_v35 }
 0x4f5   :  { %3588 = vmatpush1.bf16.msra.mxu0 %v4782_v36 }
 0x4f6   :  { %3589 = vmatprep.subr.bf16.mxu0 %v4787_v42 }
 0x4f9   :  { %3590 = vmatpush1.bf16.msra.mxu0 %v4785_v45 }
 0x4fc   :  { %3592 = vmatmul.mubr.bf16.vlgmr.msra.gmra.mrb[12].mxu0 %v3120_v48 }
 0x5cf   :  { %v3593_v59 = vpop.f32.mrb[12].mxu0 }
 0x5d0   :  { %v4261_v43 = vadd.f32 %v3593_v59, %v3191_v34  ;;  %v3595_v55 = vpop.f32.mrb[13].mxu0 }
 0x5d1   :  { %v4262_v46 = vadd.f32 %v3595_v55, %v3195_v50  ;;  %v3597_v56 = vpop.f32.mrb[14].mxu0 }
 0x5d2   :  { %v3600_v26 = vmax.f32 %v4261_v43, 0.0  ;;  %v3598_v51 = vpop.f32.mrb[15].mxu0 }
 0x5d3   :  { %v3601_v57 = vmax.f32 %v4262_v46, 0.0 }
 0x5d4   :  { %v3602_v60 = vpack.c.bf16 %v3600_v26, %v3600_v26 }
 0x5d5   :  { %v3603_v27 = vpack.c.bf16 %v3601_v57, %v3601_v57 }
 0x5d7   :  { %3771 = vmatprep.mubr.bf16.mxu1 %v3603_v27 }
 0x5d8   :  { %3772 = vmatmul.mubr.bf16.vlgmr.msra.gmra.mrb[36].mxu1 %v3602_v60 }
 0x6ab   :  { %v4233_v61 = vpop.f32.mrb[36].mxu1 }
 0x6ac   :  { %v4234_v31 = vpop.f32.mrb[37].mxu1 }
 0x6ad   :  { %v4235_v32 = vadd.f32 %v4234_v31, %v4233_v61  ;;  %v4236_v63 = vpop.f32.mrb[38].mxu1 }
 0x6ae   :  { %v4237_v0 = vpop.f32.mrb[39].mxu1 }
 0x6af   :  { %v3774_v1 = vadd.f32 %v4235_v32, %v4191_v62 }
 0x6b1   :  { %3780 = vst.msk [vmem:[#allocation9] sm:$0x3] %vm3779_vm8, %v3774_v1 }
 0x6b2   :  { %4881 = shalt.err (!%p4878_p0)
}
 0x6b3   :  { %s4882_s12 = scalar_lea.hbm %s5290_s13, 32 }
 0x6b4   :  { %p4883_p1 = scmp.ne.s32.totalorder %s5290_s13, %s4882_s12  ;;  %p4886_p2 = scmp.lt.u32.totalorder %s4882_s12, %s5290_s13 }
 0x6b6   :  { %p4888_p3 = pnand %p4886_p2, %p4883_p1 }
 0x6b8   :  { %4891 = shalt.err (!%p4888_p3)
}
 0x6b9   :  { %3790 = dma.vmem_to_hbm [thread:$0]  %s3788_s20, 32, %s5290_s13, [#allocation5]  }
 0x6ba   :  { %4896 = dma.done.wait [#allocation5], 32  }
 0x6bb   :  { %4897 = vsyncadd [#allocation5], 4294967264 }
 0x6bc   :  { %3794 = vsyncpa [#allocation4], 1 }
 0x6bd   :  { %3795 = vsyncpa [#allocation7], 1 }
 0x6be   :  { %3796 = vsyncpa [#allocation5], 1 }

</bundles_post_ra>
